<compile_context>
chip_gen: v7x
topology: tpu7x:2x2x1
jax: 0.10.0
libtpu: 0.0.40
codegen_flags: <defaults>
</compile_context>

<pallas_src>
import math

import jax
import jax.numpy as jnp
from jax import lax
from jax.experimental import pallas as pl

# ----------------------------- configuration ------------------------------
B = 2                 # batch
C_IN = 4              # input channels
H_IN = W_IN = 16      # input spatial
FEAT_C = 32           # backbone feature channels
NUM_ANCHORS = 3       # anchors per location
NUM_CLASSES = 4
LVL_SHAPES = [(8, 8), (4, 4)]                  # per-level feature map sizes
LVL_SPATIALS = [h * w for h, w in LVL_SHAPES]  # [64, 16]
STRIDES = [H_IN // h for h, _ in LVL_SHAPES]   # [2, 4]
ANCHOR_SCALES = [1.0, 1.26, 1.587]
TOPK_NUM = 32         # model.num_preds
CONF_THR = 0.05
IOU_THR = 0.5
MAX_OUTPUT_NUM = 10
BBOX_CLIP = math.log(1000.0 / 16.0)            # standard RetinaNet dw/dh clamp
S_ALL = sum(LVL_SPATIALS)                      # 80 pooled positions per image
N_TOTAL = S_ALL * NUM_ANCHORS                  # 240 anchors per image


def _full_spec(shape):
    return pl.BlockSpec(shape, lambda: (0,) * len(shape))


# --------------------- kernel 1: fused model heads -------------------------
def heads_pallas(x_flat, pool_mat, wb, bb, wc, bc, wr, br):
    """Fused model(x): per-level avg-pool + NCHW->rows flatten (one pooling
    matmul), shared 1x1 backbone conv + ReLU, cls/reg 1x1 heads.

    x_flat:   (B, C_IN, H*W)     pool_mat: (S_ALL, H*W)
    Outputs:  cls (B, S_ALL, A*K), reg (B, S_ALL, A*4)  -- already in decode
    layout: flattening cls gives (level, spatial, anchor, class) order.
    Single pallas_call, no grid (launch-bound regime; see perf notes above).
    """
    Bq = x_flat.shape[0]
    n_cls, n_reg = wc.shape[1], wr.shape[1]

    def kernel(x_ref, p_ref, wb_ref, bb_ref, wc_ref, bc_ref, wr_ref, br_ref,
               cls_ref, reg_ref):
        pool = p_ref[...]                          # (S_ALL, H*W)
        wbv, bbv = wb_ref[...], bb_ref[...]
        wcv, bcv = wc_ref[...], bc_ref[...]
        wrv, brv = wr_ref[...], br_ref[...]
        for b in range(x_ref.shape[0]):            # static unroll over batch
            # fm[s, c] = sum_hw pool[s, hw] * x[b, c, hw]  (pool + flatten)
            fm = lax.dot_general(pool, x_ref[b], (((1,), (1,)), ((), ())),
                                 preferred_element_type=jnp.float32)  # (S,Cin)
            hid = jnp.maximum(
                jnp.dot(fm, wbv, preferred_element_type=jnp.float32) + bbv,
                0.0)                                                   # (S,32)
            cls_ref[b] = jnp.dot(hid, wcv,
                                 preferred_element_type=jnp.float32) + bcv
            reg_ref[b] = jnp.dot(hid, wrv,
                                 preferred_element_type=jnp.float32) + brv

    return pl.pallas_call(
        kernel,
        out_shape=(jax.ShapeDtypeStruct((Bq, S_ALL, n_cls), jnp.float32),
                   jax.ShapeDtypeStruct((Bq, S_ALL, n_reg), jnp.float32)),
        in_specs=[_full_spec(x_flat.shape), _full_spec(pool_mat.shape),
                  _full_spec(wb.shape), _full_spec(bb.shape),
                  _full_spec(wc.shape), _full_spec(bc.shape),
                  _full_spec(wr.shape), _full_spec(br.shape)],
        out_specs=(_full_spec((Bq, S_ALL, n_cls)),
                   _full_spec((Bq, S_ALL, n_reg))),
    )(x_flat, pool_mat, wb, bb, wc, bc, wr, br)


# --------- kernel 2: fused decode epilogue + greedy class-aware NMS --------
def decode_nms_pallas(anchors_soa, reg_aos, top_logits, anchor_idx, labels):
    """One pallas_call for everything after top_k:
      * one-hot MXU gather of the selected anchors / regression deltas,
      * box2d_decode (clamped dw/dh),
      * exact sigmoid of the selected logits,
      * class-aware pairwise IoU conflict matrix (VMEM-resident only),
      * greedy NMS (sequential fori_loop in-kernel),
      * compaction of the first max_output_num kept entries into
        (B, max_output_num, 6) = [x1, y1, x2, y2, score, label].

    anchors_soa: (4, N)       reg_aos: (B, N, 4)
    top_logits:  (B, T) f32   anchor_idx/labels: (B, T) int32
    """
    Bq, T = top_logits.shape
    N = anchors_soa.shape[1]

    def kernel(anc_ref, reg_ref, lg_ref, idx_ref, lab_ref, obj_ref):
        anchors = anc_ref[...]                      # (4, N)
        lg_all = lg_ref[...]                        # (B, T)
        idx_all = idx_ref[...]                      # (B, T) int32
        lab_all = lab_ref[...]                      # (B, T) int32

        lane = lax.broadcasted_iota(jnp.int32, (1, T), 1)       # candidate id
        ii2 = lax.broadcasted_iota(jnp.int32, (T, T), 0)
        jj2 = lax.broadcasted_iota(jnp.int32, (T, T), 1)
        off_diag = (ii2 != jj2)[None, :, :]                     # (1, T, T)
        tri = (ii2 <= jj2).astype(jnp.float32)                  # inclusive prefix
        m_iota = lax.broadcasted_iota(jnp.int32, (MAX_OUTPUT_NUM, T), 0)
        label_col = (lax.broadcasted_iota(jnp.int32, (MAX_OUTPUT_NUM, 6), 1)
                     == 5).astype(jnp.float32)                  # (10, 6)

        for b in range(lg_ref.shape[0]):            # static unroll over batch
            # ---- gather selected anchors / deltas via one-hot matmuls ------
            idx_b = idx_all[b:b + 1, :]                         # (1, T)
            onehot = (lax.broadcasted_iota(jnp.int32, (N, T), 0) == idx_b
                      ).astype(jnp.float32)                     # (N, T)
            anc = jnp.dot(anchors, onehot,
                          preferred_element_type=jnp.float32)   # (4, T)
            reg = lax.dot_general(reg_ref[b], onehot, (((0,), (0,)), ((), ())),
                                  preferred_element_type=jnp.float32)  # (4, T)

            # ---- box2d_decode (coordinate-major rows) ----------------------
            ax1, ay1, ax2, ay2 = anc[0:1], anc[1:2], anc[2:3], anc[3:4]
            dx, dy = reg[0:1], reg[1:2]
            dw = jnp.minimum(reg[2:3], BBOX_CLIP)
            dh = jnp.minimum(reg[3:4], BBOX_CLIP)
            aw = ax2 - ax1
            ah = ay2 - ay1
            cx = ax1 + 0.5 * aw
            cy = ay1 + 0.5 * ah
            pcx = dx * aw + cx
            pcy = dy * ah + cy
            pw = jnp.exp(dw) * aw
            ph = jnp.exp(dh) * ah
            x1 = pcx - 0.5 * pw
            y1 = pcy - 0.5 * ph
            x2 = pcx + 0.5 * pw
            y2 = pcy + 0.5 * ph                                  # (1, T) each

            # exact sigmoid, only on the TOPK selected logits
            scores = 1.0 / (1.0 + jnp.exp(-lg_all[b:b + 1, :]))  # (1, T)
            lab_b = lab_all[b:b + 1, :]                          # (1, T) int32

            # ---- class-aware pairwise IoU conflict matrix ------------------
            area = jnp.maximum(x2 - x1, 0.0) * jnp.maximum(y2 - y1, 0.0)
            xx1 = jnp.maximum(x1[:, :, None], x1[:, None, :])    # (1, T, T)
            yy1 = jnp.maximum(y1[:, :, None], y1[:, None, :])
            xx2 = jnp.minimum(x2[:, :, None], x2[:, None, :])
            yy2 = jnp.minimum(y2[:, :, None], y2[:, None, :])
            inter = jnp.maximum(xx2 - xx1, 0.0) * jnp.maximum(yy2 - yy1, 0.0)
            union = jnp.maximum(area[:, :, None] + area[:, None, :] - inter,
                                1e-6)
            iou = inter / union                                  # exact divide
            same = lab_b[:, :, None] == lab_b[:, None, :]
            conflict = ((iou > IOU_THR) & same & off_diag
                        ).astype(jnp.float32)[0]                 # (T, T)

            # ---- greedy NMS: inherently sequential -> in-kernel fori_loop --
            # TODO(synk): greedy NMS has no parallel formulation; it stays a
            # 32-step sequential loop (now inside the kernel, VMEM-resident).
            supp0 = (scores <= CONF_THR).astype(jnp.float32)     # (1, T)
            keep0 = jnp.zeros((1, T), jnp.float32)

            def nms_body(i, carry):
                keep, supp = carry
                at_i = (lane == i).astype(jnp.float32)                    # (1,T)
                supp_i = jnp.max(jnp.where(lane == i, supp, 0.0))         # {0,1}
                valid = 1.0 - supp_i
                keep = keep + at_i * valid
                row_i = jnp.max(jnp.where(ii2 == i, conflict, 0.0),
                                axis=0, keepdims=True)                    # (1,T)
                supp = jnp.maximum(supp, row_i * valid)
                return keep, supp

            keep, _ = lax.fori_loop(0, T, nms_body, (keep0, supp0))

            # ---- compact the first max_output_num kept entries -------------
            # (entries are already score-descending from top_k, so "first
            #  kept by index" == "highest-scoring kept")
            csum = jnp.dot(keep, tri,
                           preferred_element_type=jnp.float32)   # (1, T)
            rank = csum.astype(jnp.int32) - 1                    # (1, T)
            sel = keep * (m_iota == rank).astype(jnp.float32)    # (10, T)
            n_valid = jnp.sum(sel, axis=1, keepdims=True)        # (10, 1)

            featT = jnp.concatenate(
                [x1, y1, x2, y2, scores, lab_b.astype(jnp.float32)],
                axis=0)                                          # (6, T)
            out6 = lax.dot_general(sel, featT, (((1,), (1,)), ((), ())),
                                   preferred_element_type=jnp.float32)  # (10,6)
            # padding rows: boxes/scores already 0; set label column to -1.
            obj_ref[b] = out6 + (n_valid - 1.0) * label_col

    return pl.pallas_call(
        kernel,
        out_shape=jax.ShapeDtypeStruct((Bq, MAX_OUTPUT_NUM, 6), jnp.float32),
        in_specs=[_full_spec(anchors_soa.shape), _full_spec(reg_aos.shape),
                  _full_spec(top_logits.shape), _full_spec(anchor_idx.shape),
                  _full_spec(labels.shape)],
        out_specs=_full_spec((Bq, MAX_OUTPUT_NUM, 6)),
    )(anchors_soa, reg_aos, top_logits, anchor_idx, labels)


# ------------------------- synthetic model params --------------------------
def init_params(key):
    ks = jax.random.split(key, 3)
    n_cls = NUM_ANCHORS * NUM_CLASSES      # columns ordered (anchor, class)
    n_reg = NUM_ANCHORS * 4                # columns ordered (anchor, coord)
    return {
        "backbone_w": 0.1 * jax.random.normal(ks[0], (C_IN, FEAT_C), jnp.float32),
        "backbone_b": jnp.zeros((1, FEAT_C), jnp.float32),
        "cls_w": 0.1 * jax.random.normal(ks[1], (FEAT_C, n_cls), jnp.float32),
        "cls_b": jnp.full((1, n_cls), -2.0, jnp.float32),
        "reg_w": 0.1 * jax.random.normal(ks[2], (FEAT_C, n_reg), jnp.float32),
        "reg_b": jnp.zeros((1, n_reg), jnp.float32),
    }


def make_pool_matrix():
    """(S_ALL, H*W) matrix folding per-level avg-pool + row-major flatten
    into one matmul: fm[s, c] = sum_hw P[s, hw] * x[b, c, hw]."""
    mats = []
    for (h, w), stride in zip(LVL_SHAPES, STRIDES):
        iy = jnp.arange(H_IN) // stride                         # (H_IN,)
        ix = jnp.arange(W_IN) // stride                         # (W_IN,)
        cell = (iy[:, None] * w + ix[None, :]).reshape(-1)      # (H*W,)
        onehot = (jnp.arange(h * w)[:, None] == cell[None, :]).astype(jnp.float32)
        mats.append(onehot / float(stride * stride))
    return jnp.concatenate(mats, axis=0)                        # (S_ALL, H*W)


def make_anchors():
    """Anchors ordered (level, spatial row-major, anchor), matching decode."""
    all_anchors = []
    for (h, w), stride in zip(LVL_SHAPES, STRIDES):
        ys = (jnp.arange(h, dtype=jnp.float32) + 0.5) * stride
        xs = (jnp.arange(w, dtype=jnp.float32) + 0.5) * stride
        cy, cx = jnp.meshgrid(ys, xs, indexing="ij")
        cx = cx.reshape(-1, 1)
        cy = cy.reshape(-1, 1)
        half = 0.5 * stride * 2.0 * jnp.asarray(ANCHOR_SCALES, jnp.float32)
        x1 = cx - half[None, :]
        y1 = cy - half[None, :]
        x2 = cx + half[None, :]
        y2 = cy + half[None, :]
        anc = jnp.stack([x1, y1, x2, y2], axis=-1).reshape(-1, 4)
        all_anchors.append(anc)
    return jnp.concatenate(all_anchors, axis=0)                 # (N_TOTAL, 4)


# ----------------------------- full forward ---------------------------------
@jax.jit
def wrapper_forward(x, params, pool_mat, anchors_soa):
    b = x.shape[0]
    # Host-side glue kept to the bare minimum: contiguous (free) reshapes,
    # lax.top_k, and //,% on the top-k indices.
    x_flat = x.reshape(b, C_IN, H_IN * W_IN)
    cls_out, reg_out = heads_pallas(
        x_flat, pool_mat,
        params["backbone_w"], params["backbone_b"],
        params["cls_w"], params["cls_b"],
        params["reg_w"], params["reg_b"])
    cls_flat = cls_out.reshape(b, -1)            # (B, N_TOTAL*K) raw logits
    reg_aos = reg_out.reshape(b, -1, 4)          # (B, N_TOTAL, 4)
    # sigmoid is monotonic -> rank raw logits; sigmoid happens in kernel 2.
    # TODO(synk): torch.topk has no clean Pallas equivalent at this size;
    # jax.lax.top_k is the only non-trivial glue between the two kernels.
    top_logits, idx = jax.lax.top_k(cls_flat, TOPK_NUM)
    anchor_idx = (idx // NUM_CLASSES).astype(jnp.int32)
    labels = (idx % NUM_CLASSES).astype(jnp.int32)
    return decode_nms_pallas(anchors_soa, reg_aos, top_logits, anchor_idx,
                             labels)


if __name__ == "__main__":
    key = jax.random.PRNGKey(0)
    k_x, k_p = jax.random.split(key)
    x = jax.random.normal(k_x, (B, C_IN, H_IN, W_IN), jnp.float32)  # NCHW
    params = init_params(k_p)
    pool_mat = make_pool_matrix()                      # (80, 256)
    anchors_soa = jnp.transpose(make_anchors())        # (4, 240)

    objs = wrapper_forward(x, params, pool_mat, anchors_soa)
    objs = jax.block_until_ready(objs)
    assert objs.shape == (B, MAX_OUTPUT_NUM, 6)
    assert bool(jnp.all(jnp.isfinite(objs)))
    print("KERNEL_OK")
</pallas_src>

<mosaic_0001>
module attributes {stable_mosaic.version = 11 : i64} {
  func.func @kernel(%arg0: memref<2x4x256xf32, #tpu.memory_space<vmem>>, %arg1: memref<80x256xf32, #tpu.memory_space<vmem>>, %arg2: memref<4x32xf32, #tpu.memory_space<vmem>>, %arg3: memref<1x32xf32, #tpu.memory_space<vmem>>, %arg4: memref<32x12xf32, #tpu.memory_space<vmem>>, %arg5: memref<1x12xf32, #tpu.memory_space<vmem>>, %arg6: memref<32x12xf32, #tpu.memory_space<vmem>>, %arg7: memref<1x12xf32, #tpu.memory_space<vmem>>, %arg8: memref<2x80x12xf32, #tpu.memory_space<vmem>>, %arg9: memref<2x80x12xf32, #tpu.memory_space<vmem>>) attributes {dimension_semantics = [], scalar_prefetch = 0 : i64, scratch_operands = 0 : i64, tpu.core_type = #tpu.core_type<tc>} {
    %c0 = arith.constant 0 : index
    %c0_0 = arith.constant 0 : index
    %0 = vector.load %arg1[%c0, %c0_0] : memref<80x256xf32, #tpu.memory_space<vmem>>, vector<80x256xf32>
    %c0_1 = arith.constant 0 : index
    %c0_2 = arith.constant 0 : index
    %1 = vector.load %arg2[%c0_1, %c0_2] : memref<4x32xf32, #tpu.memory_space<vmem>>, vector<4x32xf32>
    %c0_3 = arith.constant 0 : index
    %c0_4 = arith.constant 0 : index
    %2 = vector.load %arg3[%c0_3, %c0_4] : memref<1x32xf32, #tpu.memory_space<vmem>>, vector<1x32xf32>
    %c0_5 = arith.constant 0 : index
    %c0_6 = arith.constant 0 : index
    %3 = vector.load %arg4[%c0_5, %c0_6] : memref<32x12xf32, #tpu.memory_space<vmem>>, vector<32x12xf32>
    %c0_7 = arith.constant 0 : index
    %c0_8 = arith.constant 0 : index
    %4 = vector.load %arg5[%c0_7, %c0_8] : memref<1x12xf32, #tpu.memory_space<vmem>>, vector<1x12xf32>
    %c0_9 = arith.constant 0 : index
    %c0_10 = arith.constant 0 : index
    %5 = vector.load %arg6[%c0_9, %c0_10] : memref<32x12xf32, #tpu.memory_space<vmem>>, vector<32x12xf32>
    %c0_11 = arith.constant 0 : index
    %c0_12 = arith.constant 0 : index
    %6 = vector.load %arg7[%c0_11, %c0_12] : memref<1x12xf32, #tpu.memory_space<vmem>>, vector<1x12xf32>
    %c0_13 = arith.constant 0 : index
    %c0_14 = arith.constant 0 : index
    %c0_15 = arith.constant 0 : index
    %7 = vector.load %arg0[%c0_13, %c0_14, %c0_15] : memref<2x4x256xf32, #tpu.memory_space<vmem>>, vector<1x4x256xf32>
    %8 = vector.shape_cast %7 : vector<1x4x256xf32> to vector<4x256xf32>
    %cst = arith.constant dense<0.000000e+00> : vector<80x4xf32>
    %9 = tpu.matmul %0, %8, %cst {dimension_numbers = #tpu.dot_dimension_numbers<[1], [1], [0], [0], [0, 0, 1, 0], [], []>} : vector<80x256xf32>, vector<4x256xf32>, vector<80x4xf32> -> vector<80x4xf32>
    %cst_16 = arith.constant dense<0.000000e+00> : vector<80x32xf32>
    %10 = tpu.matmul %9, %1, %cst_16 {dimension_numbers = #tpu.dot_dimension_numbers<[1], [0], [0], [1], [0, 0, 1, 1], [], []>} : vector<80x4xf32>, vector<4x32xf32>, vector<80x32xf32> -> vector<80x32xf32>
    %11 = vector.broadcast %2 : vector<1x32xf32> to vector<80x32xf32>
    %12 = arith.addf %10, %11 : vector<80x32xf32>
    %cst_17 = arith.constant 0.000000e+00 : f32
    %13 = vector.broadcast %cst_17 : f32 to vector<80x32xf32>
    %14 = arith.maximumf %12, %13 : vector<80x32xf32>
    %cst_18 = arith.constant dense<0.000000e+00> : vector<80x12xf32>
    %15 = tpu.matmul %14, %3, %cst_18 {dimension_numbers = #tpu.dot_dimension_numbers<[1], [0], [0], [1], [0, 0, 1, 1], [], []>} : vector<80x32xf32>, vector<32x12xf32>, vector<80x12xf32> -> vector<80x12xf32>
    %16 = vector.broadcast %4 : vector<1x12xf32> to vector<80x12xf32>
    %17 = arith.addf %15, %16 : vector<80x12xf32>
    %c0_19 = arith.constant 0 : index
    %c0_20 = arith.constant 0 : index
    %c0_21 = arith.constant 0 : index
    %18 = vector.load %arg8[%c0_19, %c0_20, %c0_21] : memref<2x80x12xf32, #tpu.memory_space<vmem>>, vector<1x80x12xf32>
    %19 = vector.shape_cast %18 : vector<1x80x12xf32> to vector<80x12xf32>
    %20 = vector.shape_cast %17 : vector<80x12xf32> to vector<1x80x12xf32>
    tpu.vector_store %arg8[%c0_19, %c0_20, %c0_21], %20 {strides = array<i32>} : memref<2x80x12xf32, #tpu.memory_space<vmem>>, vector<1x80x12xf32>,
    %cst_22 = arith.constant dense<0.000000e+00> : vector<80x12xf32>
    %21 = tpu.matmul %14, %5, %cst_22 {dimension_numbers = #tpu.dot_dimension_numbers<[1], [0], [0], [1], [0, 0, 1, 1], [], []>} : vector<80x32xf32>, vector<32x12xf32>, vector<80x12xf32> -> vector<80x12xf32>
    %22 = vector.broadcast %6 : vector<1x12xf32> to vector<80x12xf32>
    %23 = arith.addf %21, %22 : vector<80x12xf32>
    %c0_23 = arith.constant 0 : index
    %c0_24 = arith.constant 0 : index
    %c0_25 = arith.constant 0 : index
    %24 = vector.load %arg9[%c0_23, %c0_24, %c0_25] : memref<2x80x12xf32, #tpu.memory_space<vmem>>, vector<1x80x12xf32>
    %25 = vector.shape_cast %24 : vector<1x80x12xf32> to vector<80x12xf32>
    %26 = vector.shape_cast %23 : vector<80x12xf32> to vector<1x80x12xf32>
    tpu.vector_store %arg9[%c0_23, %c0_24, %c0_25], %26 {strides = array<i32>} : memref<2x80x12xf32, #tpu.memory_space<vmem>>, vector<1x80x12xf32>,
    %c1 = arith.constant 1 : index
    %c0_26 = arith.constant 0 : index
    %c0_27 = arith.constant 0 : index
    %27 = vector.load %arg0[%c1, %c0_26, %c0_27] : memref<2x4x256xf32, #tpu.memory_space<vmem>>, vector<1x4x256xf32>
    %28 = vector.shape_cast %27 : vector<1x4x256xf32> to vector<4x256xf32>
    %cst_28 = arith.constant dense<0.000000e+00> : vector<80x4xf32>
    %29 = tpu.matmul %0, %28, %cst_28 {dimension_numbers = #tpu.dot_dimension_numbers<[1], [1], [0], [0], [0, 0, 1, 0], [], []>} : vector<80x256xf32>, vector<4x256xf32>, vector<80x4xf32> -> vector<80x4xf32>
    %cst_29 = arith.constant dense<0.000000e+00> : vector<80x32xf32>
    %30 = tpu.matmul %29, %1, %cst_29 {dimension_numbers = #tpu.dot_dimension_numbers<[1], [0], [0], [1], [0, 0, 1, 1], [], []>} : vector<80x4xf32>, vector<4x32xf32>, vector<80x32xf32> -> vector<80x32xf32>
    %31 = vector.broadcast %2 : vector<1x32xf32> to vector<80x32xf32>
    %32 = arith.addf %30, %31 : vector<80x32xf32>
    %cst_30 = arith.constant 0.000000e+00 : f32
    %33 = vector.broadcast %cst_30 : f32 to vector<80x32xf32>
    %34 = arith.maximumf %32, %33 : vector<80x32xf32>
    %cst_31 = arith.constant dense<0.000000e+00> : vector<80x12xf32>
    %35 = tpu.matmul %34, %3, %cst_31 {dimension_numbers = #tpu.dot_dimension_numbers<[1], [0], [0], [1], [0, 0, 1, 1], [], []>} : vector<80x32xf32>, vector<32x12xf32>, vector<80x12xf32> -> vector<80x12xf32>
    %36 = vector.broadcast %4 : vector<1x12xf32> to vector<80x12xf32>
    %37 = arith.addf %35, %36 : vector<80x12xf32>
    %c1_32 = arith.constant 1 : index
    %c0_33 = arith.constant 0 : index
    %c0_34 = arith.constant 0 : index
    %38 = vector.load %arg8[%c1_32, %c0_33, %c0_34] : memref<2x80x12xf32, #tpu.memory_space<vmem>>, vector<1x80x12xf32>
    %39 = vector.shape_cast %38 : vector<1x80x12xf32> to vector<80x12xf32>
    %40 = vector.shape_cast %37 : vector<80x12xf32> to vector<1x80x12xf32>
    tpu.vector_store %arg8[%c1_32, %c0_33, %c0_34], %40 {strides = array<i32>} : memref<2x80x12xf32, #tpu.memory_space<vmem>>, vector<1x80x12xf32>,
    %cst_35 = arith.constant dense<0.000000e+00> : vector<80x12xf32>
    %41 = tpu.matmul %34, %5, %cst_35 {dimension_numbers = #tpu.dot_dimension_numbers<[1], [0], [0], [1], [0, 0, 1, 1], [], []>} : vector<80x32xf32>, vector<32x12xf32>, vector<80x12xf32> -> vector<80x12xf32>
    %42 = vector.broadcast %6 : vector<1x12xf32> to vector<80x12xf32>
    %43 = arith.addf %41, %42 : vector<80x12xf32>
    %c1_36 = arith.constant 1 : index
    %c0_37 = arith.constant 0 : index
    %c0_38 = arith.constant 0 : index
    %44 = vector.load %arg9[%c1_36, %c0_37, %c0_38] : memref<2x80x12xf32, #tpu.memory_space<vmem>>, vector<1x80x12xf32>
    %45 = vector.shape_cast %44 : vector<1x80x12xf32> to vector<80x12xf32>
    %46 = vector.shape_cast %43 : vector<80x12xf32> to vector<1x80x12xf32>
    tpu.vector_store %arg9[%c1_36, %c0_37, %c0_38], %46 {strides = array<i32>} : memref<2x80x12xf32, #tpu.memory_space<vmem>>, vector<1x80x12xf32>,
    return
  }
}

module attributes {stable_mosaic.version = 11 : i64} {
  func.func @kernel(%arg0: memref<4x240xf32, #tpu.memory_space<vmem>>, %arg1: memref<2x240x4xf32, #tpu.memory_space<vmem>>, %arg2: memref<2x32xf32, #tpu.memory_space<vmem>>, %arg3: memref<2x32xi32, #tpu.memory_space<vmem>>, %arg4: memref<2x32xi32, #tpu.memory_space<vmem>>, %arg5: memref<2x10x6xf32, #tpu.memory_space<vmem>>) attributes {dimension_semantics = [], scalar_prefetch = 0 : i64, scratch_operands = 0 : i64, tpu.core_type = #tpu.core_type<tc>} {
    %c0 = arith.constant 0 : index
    %c0_0 = arith.constant 0 : index
    %0 = vector.load %arg0[%c0, %c0_0] : memref<4x240xf32, #tpu.memory_space<vmem>>, vector<4x240xf32>
    %c0_1 = arith.constant 0 : index
    %c0_2 = arith.constant 0 : index
    %1 = vector.load %arg2[%c0_1, %c0_2] : memref<2x32xf32, #tpu.memory_space<vmem>>, vector<2x32xf32>
    %c0_3 = arith.constant 0 : index
    %c0_4 = arith.constant 0 : index
    %2 = vector.load %arg3[%c0_3, %c0_4] : memref<2x32xi32, #tpu.memory_space<vmem>>, vector<2x32xi32>
    %c0_5 = arith.constant 0 : index
    %c0_6 = arith.constant 0 : index
    %3 = vector.load %arg4[%c0_5, %c0_6] : memref<2x32xi32, #tpu.memory_space<vmem>>, vector<2x32xi32>
    %4 = tpu.iota {dimensions = array<i32: 1>} : vector<1x32xi32>
    %5 = tpu.iota {dimensions = array<i32: 0>} : vector<32x32xi32>
    %6 = tpu.iota {dimensions = array<i32: 1>} : vector<32x32xi32>
    %7 = arith.cmpi ne, %5, %6 : vector<32x32xi32>
    %8 = vector.shape_cast %7 : vector<32x32xi1> to vector<1x32x32xi1>
    %9 = arith.cmpi sle, %5, %6 : vector<32x32xi32>
    %10 = arith.extui %9 : vector<32x32xi1> to vector<32x32xi32>
    %11 = arith.sitofp %10 : vector<32x32xi32> to vector<32x32xf32>
    %12 = tpu.iota {dimensions = array<i32: 0>} : vector<10x32xi32>
    %13 = tpu.iota {dimensions = array<i32: 1>} : vector<10x6xi32>
    %c5_i32 = arith.constant 5 : i32
    %14 = vector.broadcast %c5_i32 : i32 to vector<10x6xi32>
    %15 = arith.cmpi eq, %13, %14 : vector<10x6xi32>
    %16 = arith.extui %15 : vector<10x6xi1> to vector<10x6xi32>
    %17 = arith.sitofp %16 : vector<10x6xi32> to vector<10x6xf32>
    %18 = vector.extract_strided_slice %2 {offsets = [0, 0], sizes = [1, 32], strides = [1, 1]} : vector<2x32xi32> to vector<1x32xi32>
    %19 = tpu.iota {dimensions = array<i32: 0>} : vector<240x32xi32>
    %20 = vector.broadcast %18 : vector<1x32xi32> to vector<240x32xi32>
    %21 = arith.cmpi eq, %19, %20 : vector<240x32xi32>
    %22 = arith.extui %21 : vector<240x32xi1> to vector<240x32xi32>
    %23 = arith.sitofp %22 : vector<240x32xi32> to vector<240x32xf32>
    %cst = arith.constant dense<0.000000e+00> : vector<4x32xf32>
    %24 = tpu.matmul %0, %23, %cst {dimension_numbers = #tpu.dot_dimension_numbers<[1], [0], [0], [1], [0, 0, 1, 1], [], []>} : vector<4x240xf32>, vector<240x32xf32>, vector<4x32xf32> -> vector<4x32xf32>
    %c0_7 = arith.constant 0 : index
    %c0_8 = arith.constant 0 : index
    %c0_9 = arith.constant 0 : index
    %25 = vector.load %arg1[%c0_7, %c0_8, %c0_9] : memref<2x240x4xf32, #tpu.memory_space<vmem>>, vector<1x240x4xf32>
    %26 = vector.shape_cast %25 : vector<1x240x4xf32> to vector<240x4xf32>
    %cst_10 = arith.constant dense<0.000000e+00> : vector<4x32xf32>
    %27 = tpu.matmul %26, %23, %cst_10 {dimension_numbers = #tpu.dot_dimension_numbers<[0], [0], [1], [1], [0, 1, 1, 1], [], []>} : vector<240x4xf32>, vector<240x32xf32>, vector<4x32xf32> -> vector<4x32xf32>
    %28 = vector.extract_strided_slice %24 {offsets = [0, 0], sizes = [1, 32], strides = [1, 1]} : vector<4x32xf32> to vector<1x32xf32>
    %29 = vector.extract_strided_slice %24 {offsets = [1, 0], sizes = [1, 32], strides = [1, 1]} : vector<4x32xf32> to vector<1x32xf32>
    %30 = vector.extract_strided_slice %24 {offsets = [2, 0], sizes = [1, 32], strides = [1, 1]} : vector<4x32xf32> to vector<1x32xf32>
    %31 = vector.extract_strided_slice %24 {offsets = [3, 0], sizes = [1, 32], strides = [1, 1]} : vector<4x32xf32> to vector<1x32xf32>
    %32 = vector.extract_strided_slice %27 {offsets = [0, 0], sizes = [1, 32], strides = [1, 1]} : vector<4x32xf32> to vector<1x32xf32>
    %33 = vector.extract_strided_slice %27 {offsets = [1, 0], sizes = [1, 32], strides = [1, 1]} : vector<4x32xf32> to vector<1x32xf32>
    %34 = vector.extract_strided_slice %27 {offsets = [2, 0], sizes = [1, 32], strides = [1, 1]} : vector<4x32xf32> to vector<1x32xf32>
    %cst_11 = arith.constant 4.13516665 : f32
    %35 = vector.broadcast %cst_11 : f32 to vector<1x32xf32>
    %36 = arith.minimumf %34, %35 : vector<1x32xf32>
    %37 = vector.extract_strided_slice %27 {offsets = [3, 0], sizes = [1, 32], strides = [1, 1]} : vector<4x32xf32> to vector<1x32xf32>
    %cst_12 = arith.constant 4.13516665 : f32
    %38 = vector.broadcast %cst_12 : f32 to vector<1x32xf32>
    %39 = arith.minimumf %37, %38 : vector<1x32xf32>
    %40 = arith.subf %30, %28 : vector<1x32xf32>
    %41 = arith.subf %31, %29 : vector<1x32xf32>
    %cst_13 = arith.constant 5.000000e-01 : f32
    %42 = vector.broadcast %cst_13 : f32 to vector<1x32xf32>
    %43 = arith.mulf %42, %40 : vector<1x32xf32>
    %44 = arith.addf %28, %43 : vector<1x32xf32>
    %cst_14 = arith.constant 5.000000e-01 : f32
    %45 = vector.broadcast %cst_14 : f32 to vector<1x32xf32>
    %46 = arith.mulf %45, %41 : vector<1x32xf32>
    %47 = arith.addf %29, %46 : vector<1x32xf32>
    %48 = arith.mulf %32, %40 : vector<1x32xf32>
    %49 = arith.addf %48, %44 : vector<1x32xf32>
    %50 = arith.mulf %33, %41 : vector<1x32xf32>
    %51 = arith.addf %50, %47 : vector<1x32xf32>
    %52 = math.exp %36 : vector<1x32xf32>
    %53 = arith.mulf %52, %40 : vector<1x32xf32>
    %54 = math.exp %39 : vector<1x32xf32>
    %55 = arith.mulf %54, %41 : vector<1x32xf32>
    %cst_15 = arith.constant 5.000000e-01 : f32
    %56 = vector.broadcast %cst_15 : f32 to vector<1x32xf32>
    %57 = arith.mulf %56, %53 : vector<1x32xf32>
    %58 = arith.subf %49, %57 : vector<1x32xf32>
    %cst_16 = arith.constant 5.000000e-01 : f32
    %59 = vector.broadcast %cst_16 : f32 to vector<1x32xf32>
    %60 = arith.mulf %59, %55 : vector<1x32xf32>
    %61 = arith.subf %51, %60 : vector<1x32xf32>
    %cst_17 = arith.constant 5.000000e-01 : f32
    %62 = vector.broadcast %cst_17 : f32 to vector<1x32xf32>
    %63 = arith.mulf %62, %53 : vector<1x32xf32>
    %64 = arith.addf %49, %63 : vector<1x32xf32>
    %cst_18 = arith.constant 5.000000e-01 : f32
    %65 = vector.broadcast %cst_18 : f32 to vector<1x32xf32>
    %66 = arith.mulf %65, %55 : vector<1x32xf32>
    %67 = arith.addf %51, %66 : vector<1x32xf32>
    %68 = vector.extract_strided_slice %1 {offsets = [0, 0], sizes = [1, 32], strides = [1, 1]} : vector<2x32xf32> to vector<1x32xf32>
    %cst_19 = arith.constant 0.000000e+00 : f32
    %69 = vector.broadcast %cst_19 : f32 to vector<1x32xf32>
    %70 = arith.subf %69, %68 : vector<1x32xf32>
    %71 = math.exp %70 : vector<1x32xf32>
    %cst_20 = arith.constant 1.000000e+00 : f32
    %72 = vector.broadcast %cst_20 : f32 to vector<1x32xf32>
    %73 = arith.addf %72, %71 : vector<1x32xf32>
    %cst_21 = arith.constant 1.000000e+00 : f32
    %74 = vector.broadcast %cst_21 : f32 to vector<1x32xf32>
    %75 = arith.divf %74, %73 : vector<1x32xf32>
    %76 = vector.extract_strided_slice %3 {offsets = [0, 0], sizes = [1, 32], strides = [1, 1]} : vector<2x32xi32> to vector<1x32xi32>
    %77 = arith.subf %64, %58 : vector<1x32xf32>
    %cst_22 = arith.constant 0.000000e+00 : f32
    %78 = vector.broadcast %cst_22 : f32 to vector<1x32xf32>
    %79 = arith.maximumf %77, %78 : vector<1x32xf32>
    %80 = arith.subf %67, %61 : vector<1x32xf32>
    %cst_23 = arith.constant 0.000000e+00 : f32
    %81 = vector.broadcast %cst_23 : f32 to vector<1x32xf32>
    %82 = arith.maximumf %80, %81 : vector<1x32xf32>
    %83 = arith.mulf %79, %82 : vector<1x32xf32>
    %84 = vector.shape_cast %58 : vector<1x32xf32> to vector<1x32x1xf32>
    %85 = vector.shape_cast %58 : vector<1x32xf32> to vector<1x1x32xf32>
    %86 = vector.broadcast %84 : vector<1x32x1xf32> to vector<1x32x32xf32>
    %87 = vector.broadcast %85 : vector<1x1x32xf32> to vector<1x32x32xf32>
    %88 = arith.maximumf %86, %87 : vector<1x32x32xf32>
    %89 = vector.shape_cast %61 : vector<1x32xf32> to vector<1x32x1xf32>
    %90 = vector.shape_cast %61 : vector<1x32xf32> to vector<1x1x32xf32>
    %91 = vector.broadcast %89 : vector<1x32x1xf32> to vector<1x32x32xf32>
    %92 = vector.broadcast %90 : vector<1x1x32xf32> to vector<1x32x32xf32>
    %93 = arith.maximumf %91, %92 : vector<1x32x32xf32>
    %94 = vector.shape_cast %64 : vector<1x32xf32> to vector<1x32x1xf32>
    %95 = vector.shape_cast %64 : vector<1x32xf32> to vector<1x1x32xf32>
    %96 = vector.broadcast %94 : vector<1x32x1xf32> to vector<1x32x32xf32>
    %97 = vector.broadcast %95 : vector<1x1x32xf32> to vector<1x32x32xf32>
    %98 = arith.minimumf %96, %97 : vector<1x32x32xf32>
    %99 = vector.shape_cast %67 : vector<1x32xf32> to vector<1x32x1xf32>
    %100 = vector.shape_cast %67 : vector<1x32xf32> to vector<1x1x32xf32>
    %101 = vector.broadcast %99 : vector<1x32x1xf32> to vector<1x32x32xf32>
    %102 = vector.broadcast %100 : vector<1x1x32xf32> to vector<1x32x32xf32>
    %103 = arith.minimumf %101, %102 : vector<1x32x32xf32>
    %104 = arith.subf %98, %88 : vector<1x32x32xf32>
    %cst_24 = arith.constant 0.000000e+00 : f32
    %105 = vector.broadcast %cst_24 : f32 to vector<1x32x32xf32>
    %106 = arith.maximumf %104, %105 : vector<1x32x32xf32>
    %107 = arith.subf %103, %93 : vector<1x32x32xf32>
    %cst_25 = arith.constant 0.000000e+00 : f32
    %108 = vector.broadcast %cst_25 : f32 to vector<1x32x32xf32>
    %109 = arith.maximumf %107, %108 : vector<1x32x32xf32>
    %110 = arith.mulf %106, %109 : vector<1x32x32xf32>
    %111 = vector.shape_cast %83 : vector<1x32xf32> to vector<1x32x1xf32>
    %112 = vector.shape_cast %83 : vector<1x32xf32> to vector<1x1x32xf32>
    %113 = vector.broadcast %111 : vector<1x32x1xf32> to vector<1x32x32xf32>
    %114 = vector.broadcast %112 : vector<1x1x32xf32> to vector<1x32x32xf32>
    %115 = arith.addf %113, %114 : vector<1x32x32xf32>
    %116 = arith.subf %115, %110 : vector<1x32x32xf32>
    %cst_26 = arith.constant 9.99999997E-7 : f32
    %117 = vector.broadcast %cst_26 : f32 to vector<1x32x32xf32>
    %118 = arith.maximumf %116, %117 : vector<1x32x32xf32>
    %119 = arith.divf %110, %118 : vector<1x32x32xf32>
    %120 = vector.shape_cast %76 : vector<1x32xi32> to vector<1x32x1xi32>
    %121 = vector.shape_cast %76 : vector<1x32xi32> to vector<1x1x32xi32>
    %122 = vector.broadcast %120 : vector<1x32x1xi32> to vector<1x32x32xi32>
    %123 = vector.broadcast %121 : vector<1x1x32xi32> to vector<1x32x32xi32>
    %124 = arith.cmpi eq, %122, %123 : vector<1x32x32xi32>
    %cst_27 = arith.constant 5.000000e-01 : f32
    %125 = vector.broadcast %cst_27 : f32 to vector<1x32x32xf32>
    %126 = arith.cmpf ogt, %119, %125 : vector<1x32x32xf32>
    %127 = arith.andi %126, %124 : vector<1x32x32xi1>
    %128 = arith.andi %127, %8 : vector<1x32x32xi1>
    %129 = arith.extui %128 : vector<1x32x32xi1> to vector<1x32x32xi32>
    %130 = arith.sitofp %129 : vector<1x32x32xi32> to vector<1x32x32xf32>
    %131 = vector.shape_cast %130 : vector<1x32x32xf32> to vector<32x32xf32>
    %cst_28 = arith.constant 5.000000e-02 : f32
    %132 = vector.broadcast %cst_28 : f32 to vector<1x32xf32>
    %133 = arith.cmpf ole, %75, %132 : vector<1x32xf32>
    %134 = arith.extui %133 : vector<1x32xi1> to vector<1x32xi32>
    %135 = arith.sitofp %134 : vector<1x32xi32> to vector<1x32xf32>
    %cst_29 = arith.constant 0.000000e+00 : f32
    %136 = vector.broadcast %cst_29 : f32 to vector<1x32xf32>
    %c0_i32 = arith.constant 0 : i32
    %c32_i32 = arith.constant 32 : i32
    %137 = arith.addi %c0_i32, %c32_i32 : i32
    %c1_i32 = arith.constant 1 : i32
    %138:2 = scf.for %arg6 = %c0_i32 to %137 step %c1_i32 iter_args(%arg7 = %136, %arg8 = %135) -> (vector<1x32xf32>, vector<1x32xf32>)  : i32 {
      %306 = vector.broadcast %arg6 : i32 to vector<1x32xi32>
      %307 = arith.cmpi eq, %4, %306 : vector<1x32xi32>
      %308 = arith.extui %307 : vector<1x32xi1> to vector<1x32xi32>
      %309 = arith.sitofp %308 : vector<1x32xi32> to vector<1x32xf32>
      %310 = vector.broadcast %arg6 : i32 to vector<1x32xi32>
      %311 = arith.cmpi eq, %4, %310 : vector<1x32xi32>
      %cst_74 = arith.constant 0.000000e+00 : f32
      %312 = vector.broadcast %cst_74 : f32 to vector<1x32xf32>
      %313 = arith.select %311, %arg8, %312 : vector<1x32xi1>, vector<1x32xf32>
      %314 = vector.shape_cast %313 : vector<1x32xf32> to vector<1x1x32xf32>
      %cst_75 = arith.constant dense<0xFF800000> : vector<1xf32>
      %315 = vector.multi_reduction <maximumf>, %314, %cst_75 [1, 2] : vector<1x1x32xf32> to vector<1xf32>
      %316 = vector.shape_cast %315 : vector<1xf32> to vector<1x1x1xf32>
      %317 = vector.extract %316[0, 0, 0] : f32 from vector<1x1x1xf32>
      %cst_76 = arith.constant 1.000000e+00 : f32
      %318 = arith.subf %cst_76, %317 : f32
      %319 = vector.broadcast %318 : f32 to vector<1x32xf32>
      %320 = arith.mulf %309, %319 : vector<1x32xf32>
      %321 = arith.addf %arg7, %320 : vector<1x32xf32>
      %322 = vector.broadcast %arg6 : i32 to vector<32x32xi32>
      %323 = arith.cmpi eq, %5, %322 : vector<32x32xi32>
      %cst_77 = arith.constant 0.000000e+00 : f32
      %324 = vector.broadcast %cst_77 : f32 to vector<32x32xf32>
      %325 = arith.select %323, %131, %324 : vector<32x32xi1>, vector<32x32xf32>
      %cst_78 = arith.constant dense<0xFF800000> : vector<32xf32>
      %326 = vector.multi_reduction <maximumf>, %325, %cst_78 [0] : vector<32x32xf32> to vector<32xf32>
      %327 = vector.shape_cast %326 : vector<32xf32> to vector<1x32xf32>
      %328 = vector.broadcast %318 : f32 to vector<1x32xf32>
      %329 = arith.mulf %327, %328 : vector<1x32xf32>
      %330 = arith.maximumf %arg8, %329 : vector<1x32xf32>
      scf.yield %321, %330 : vector<1x32xf32>, vector<1x32xf32>
    }
    %c32_i32_30 = arith.constant 32 : i32
    %cst_31 = arith.constant dense<0.000000e+00> : vector<1x32xf32>
    %139 = tpu.matmul %138#0, %11, %cst_31 {dimension_numbers = #tpu.dot_dimension_numbers<[1], [0], [0], [1], [0, 0, 1, 1], [], []>} : vector<1x32xf32>, vector<32x32xf32>, vector<1x32xf32> -> vector<1x32xf32>
    %140 = arith.fptosi %139 : vector<1x32xf32> to vector<1x32xi32>
    %c1_i32_32 = arith.constant 1 : i32
    %141 = vector.broadcast %c1_i32_32 : i32 to vector<1x32xi32>
    %142 = arith.subi %140, %141 : vector<1x32xi32>
    %143 = vector.broadcast %142 : vector<1x32xi32> to vector<10x32xi32>
    %144 = arith.cmpi eq, %12, %143 : vector<10x32xi32>
    %145 = arith.extui %144 : vector<10x32xi1> to vector<10x32xi32>
    %146 = arith.sitofp %145 : vector<10x32xi32> to vector<10x32xf32>
    %147 = vector.broadcast %138#0 : vector<1x32xf32> to vector<10x32xf32>
    %148 = arith.mulf %147, %146 : vector<10x32xf32>
    %cst_33 = arith.constant dense<0.000000e+00> : vector<10xf32>
    %149 = vector.multi_reduction <add>, %148, %cst_33 [1] : vector<10x32xf32> to vector<10xf32>
    %150 = vector.shape_cast %149 : vector<10xf32> to vector<10x1xf32>
    %151 = arith.sitofp %76 : vector<1x32xi32> to vector<1x32xf32>
    %152 = tpu.concatenate %58, %61, %64, %67, %75, %151 in 0 : vector<1x32xf32>, vector<1x32xf32>, vector<1x32xf32>, vector<1x32xf32>, vector<1x32xf32>, vector<1x32xf32> -> vector<6x32xf32>
    %cst_34 = arith.constant dense<0.000000e+00> : vector<10x6xf32>
    %153 = tpu.matmul %148, %152, %cst_34 {dimension_numbers = #tpu.dot_dimension_numbers<[1], [1], [0], [0], [0, 0, 1, 0], [], []>} : vector<10x32xf32>, vector<6x32xf32>, vector<10x6xf32> -> vector<10x6xf32>
    %cst_35 = arith.constant 1.000000e+00 : f32
    %154 = vector.broadcast %cst_35 : f32 to vector<10x1xf32>
    %155 = arith.subf %150, %154 : vector<10x1xf32>
    %156 = vector.broadcast %155 : vector<10x1xf32> to vector<10x6xf32>
    %157 = arith.mulf %156, %17 : vector<10x6xf32>
    %158 = arith.addf %153, %157 : vector<10x6xf32>
    %c0_36 = arith.constant 0 : index
    %c0_37 = arith.constant 0 : index
    %c0_38 = arith.constant 0 : index
    %159 = vector.load %arg5[%c0_36, %c0_37, %c0_38] : memref<2x10x6xf32, #tpu.memory_space<vmem>>, vector<1x10x6xf32>
    %160 = vector.shape_cast %159 : vector<1x10x6xf32> to vector<10x6xf32>
    %161 = vector.shape_cast %158 : vector<10x6xf32> to vector<1x10x6xf32>
    tpu.vector_store %arg5[%c0_36, %c0_37, %c0_38], %161 {strides = array<i32>} : memref<2x10x6xf32, #tpu.memory_space<vmem>>, vector<1x10x6xf32>,
    %162 = vector.extract_strided_slice %2 {offsets = [1, 0], sizes = [1, 32], strides = [1, 1]} : vector<2x32xi32> to vector<1x32xi32>
    %163 = tpu.iota {dimensions = array<i32: 0>} : vector<240x32xi32>
    %164 = vector.broadcast %162 : vector<1x32xi32> to vector<240x32xi32>
    %165 = arith.cmpi eq, %163, %164 : vector<240x32xi32>
    %166 = arith.extui %165 : vector<240x32xi1> to vector<240x32xi32>
    %167 = arith.sitofp %166 : vector<240x32xi32> to vector<240x32xf32>
    %cst_39 = arith.constant dense<0.000000e+00> : vector<4x32xf32>
    %168 = tpu.matmul %0, %167, %cst_39 {dimension_numbers = #tpu.dot_dimension_numbers<[1], [0], [0], [1], [0, 0, 1, 1], [], []>} : vector<4x240xf32>, vector<240x32xf32>, vector<4x32xf32> -> vector<4x32xf32>
    %c1 = arith.constant 1 : index
    %c0_40 = arith.constant 0 : index
    %c0_41 = arith.constant 0 : index
    %169 = vector.load %arg1[%c1, %c0_40, %c0_41] : memref<2x240x4xf32, #tpu.memory_space<vmem>>, vector<1x240x4xf32>
    %170 = vector.shape_cast %169 : vector<1x240x4xf32> to vector<240x4xf32>
    %cst_42 = arith.constant dense<0.000000e+00> : vector<4x32xf32>
    %171 = tpu.matmul %170, %167, %cst_42 {dimension_numbers = #tpu.dot_dimension_numbers<[0], [0], [1], [1], [0, 1, 1, 1], [], []>} : vector<240x4xf32>, vector<240x32xf32>, vector<4x32xf32> -> vector<4x32xf32>
    %172 = vector.extract_strided_slice %168 {offsets = [0, 0], sizes = [1, 32], strides = [1, 1]} : vector<4x32xf32> to vector<1x32xf32>
    %173 = vector.extract_strided_slice %168 {offsets = [1, 0], sizes = [1, 32], strides = [1, 1]} : vector<4x32xf32> to vector<1x32xf32>
    %174 = vector.extract_strided_slice %168 {offsets = [2, 0], sizes = [1, 32], strides = [1, 1]} : vector<4x32xf32> to vector<1x32xf32>
    %175 = vector.extract_strided_slice %168 {offsets = [3, 0], sizes = [1, 32], strides = [1, 1]} : vector<4x32xf32> to vector<1x32xf32>
    %176 = vector.extract_strided_slice %171 {offsets = [0, 0], sizes = [1, 32], strides = [1, 1]} : vector<4x32xf32> to vector<1x32xf32>
    %177 = vector.extract_strided_slice %171 {offsets = [1, 0], sizes = [1, 32], strides = [1, 1]} : vector<4x32xf32> to vector<1x32xf32>
    %178 = vector.extract_strided_slice %171 {offsets = [2, 0], sizes = [1, 32], strides = [1, 1]} : vector<4x32xf32> to vector<1x32xf32>
    %cst_43 = arith.constant 4.13516665 : f32
    %179 = vector.broadcast %cst_43 : f32 to vector<1x32xf32>
    %180 = arith.minimumf %178, %179 : vector<1x32xf32>
    %181 = vector.extract_strided_slice %171 {offsets = [3, 0], sizes = [1, 32], strides = [1, 1]} : vector<4x32xf32> to vector<1x32xf32>
    %cst_44 = arith.constant 4.13516665 : f32
    %182 = vector.broadcast %cst_44 : f32 to vector<1x32xf32>
    %183 = arith.minimumf %181, %182 : vector<1x32xf32>
    %184 = arith.subf %174, %172 : vector<1x32xf32>
    %185 = arith.subf %175, %173 : vector<1x32xf32>
    %cst_45 = arith.constant 5.000000e-01 : f32
    %186 = vector.broadcast %cst_45 : f32 to vector<1x32xf32>
    %187 = arith.mulf %186, %184 : vector<1x32xf32>
    %188 = arith.addf %172, %187 : vector<1x32xf32>
    %cst_46 = arith.constant 5.000000e-01 : f32
    %189 = vector.broadcast %cst_46 : f32 to vector<1x32xf32>
    %190 = arith.mulf %189, %185 : vector<1x32xf32>
    %191 = arith.addf %173, %190 : vector<1x32xf32>
    %192 = arith.mulf %176, %184 : vector<1x32xf32>
    %193 = arith.addf %192, %188 : vector<1x32xf32>
    %194 = arith.mulf %177, %185 : vector<1x32xf32>
    %195 = arith.addf %194, %191 : vector<1x32xf32>
    %196 = math.exp %180 : vector<1x32xf32>
    %197 = arith.mulf %196, %184 : vector<1x32xf32>
    %198 = math.exp %183 : vector<1x32xf32>
    %199 = arith.mulf %198, %185 : vector<1x32xf32>
    %cst_47 = arith.constant 5.000000e-01 : f32
    %200 = vector.broadcast %cst_47 : f32 to vector<1x32xf32>
    %201 = arith.mulf %200, %197 : vector<1x32xf32>
    %202 = arith.subf %193, %201 : vector<1x32xf32>
    %cst_48 = arith.constant 5.000000e-01 : f32
    %203 = vector.broadcast %cst_48 : f32 to vector<1x32xf32>
    %204 = arith.mulf %203, %199 : vector<1x32xf32>
    %205 = arith.subf %195, %204 : vector<1x32xf32>
    %cst_49 = arith.constant 5.000000e-01 : f32
    %206 = vector.broadcast %cst_49 : f32 to vector<1x32xf32>
    %207 = arith.mulf %206, %197 : vector<1x32xf32>
    %208 = arith.addf %193, %207 : vector<1x32xf32>
    %cst_50 = arith.constant 5.000000e-01 : f32
    %209 = vector.broadcast %cst_50 : f32 to vector<1x32xf32>
    %210 = arith.mulf %209, %199 : vector<1x32xf32>
    %211 = arith.addf %195, %210 : vector<1x32xf32>
    %212 = vector.extract_strided_slice %1 {offsets = [1, 0], sizes = [1, 32], strides = [1, 1]} : vector<2x32xf32> to vector<1x32xf32>
    %cst_51 = arith.constant 0.000000e+00 : f32
    %213 = vector.broadcast %cst_51 : f32 to vector<1x32xf32>
    %214 = arith.subf %213, %212 : vector<1x32xf32>
    %215 = math.exp %214 : vector<1x32xf32>
    %cst_52 = arith.constant 1.000000e+00 : f32
    %216 = vector.broadcast %cst_52 : f32 to vector<1x32xf32>
    %217 = arith.addf %216, %215 : vector<1x32xf32>
    %cst_53 = arith.constant 1.000000e+00 : f32
    %218 = vector.broadcast %cst_53 : f32 to vector<1x32xf32>
    %219 = arith.divf %218, %217 : vector<1x32xf32>
    %220 = vector.extract_strided_slice %3 {offsets = [1, 0], sizes = [1, 32], strides = [1, 1]} : vector<2x32xi32> to vector<1x32xi32>
    %221 = arith.subf %208, %202 : vector<1x32xf32>
    %cst_54 = arith.constant 0.000000e+00 : f32
    %222 = vector.broadcast %cst_54 : f32 to vector<1x32xf32>
    %223 = arith.maximumf %221, %222 : vector<1x32xf32>
    %224 = arith.subf %211, %205 : vector<1x32xf32>
    %cst_55 = arith.constant 0.000000e+00 : f32
    %225 = vector.broadcast %cst_55 : f32 to vector<1x32xf32>
    %226 = arith.maximumf %224, %225 : vector<1x32xf32>
    %227 = arith.mulf %223, %226 : vector<1x32xf32>
    %228 = vector.shape_cast %202 : vector<1x32xf32> to vector<1x32x1xf32>
    %229 = vector.shape_cast %202 : vector<1x32xf32> to vector<1x1x32xf32>
    %230 = vector.broadcast %228 : vector<1x32x1xf32> to vector<1x32x32xf32>
    %231 = vector.broadcast %229 : vector<1x1x32xf32> to vector<1x32x32xf32>
    %232 = arith.maximumf %230, %231 : vector<1x32x32xf32>
    %233 = vector.shape_cast %205 : vector<1x32xf32> to vector<1x32x1xf32>
    %234 = vector.shape_cast %205 : vector<1x32xf32> to vector<1x1x32xf32>
    %235 = vector.broadcast %233 : vector<1x32x1xf32> to vector<1x32x32xf32>
    %236 = vector.broadcast %234 : vector<1x1x32xf32> to vector<1x32x32xf32>
    %237 = arith.maximumf %235, %236 : vector<1x32x32xf32>
    %238 = vector.shape_cast %208 : vector<1x32xf32> to vector<1x32x1xf32>
    %239 = vector.shape_cast %208 : vector<1x32xf32> to vector<1x1x32xf32>
    %240 = vector.broadcast %238 : vector<1x32x1xf32> to vector<1x32x32xf32>
    %241 = vector.broadcast %239 : vector<1x1x32xf32> to vector<1x32x32xf32>
    %242 = arith.minimumf %240, %241 : vector<1x32x32xf32>
    %243 = vector.shape_cast %211 : vector<1x32xf32> to vector<1x32x1xf32>
    %244 = vector.shape_cast %211 : vector<1x32xf32> to vector<1x1x32xf32>
    %245 = vector.broadcast %243 : vector<1x32x1xf32> to vector<1x32x32xf32>
    %246 = vector.broadcast %244 : vector<1x1x32xf32> to vector<1x32x32xf32>
    %247 = arith.minimumf %245, %246 : vector<1x32x32xf32>
    %248 = arith.subf %242, %232 : vector<1x32x32xf32>
    %cst_56 = arith.constant 0.000000e+00 : f32
    %249 = vector.broadcast %cst_56 : f32 to vector<1x32x32xf32>
    %250 = arith.maximumf %248, %249 : vector<1x32x32xf32>
    %251 = arith.subf %247, %237 : vector<1x32x32xf32>
    %cst_57 = arith.constant 0.000000e+00 : f32
    %252 = vector.broadcast %cst_57 : f32 to vector<1x32x32xf32>
    %253 = arith.maximumf %251, %252 : vector<1x32x32xf32>
    %254 = arith.mulf %250, %253 : vector<1x32x32xf32>
    %255 = vector.shape_cast %227 : vector<1x32xf32> to vector<1x32x1xf32>
    %256 = vector.shape_cast %227 : vector<1x32xf32> to vector<1x1x32xf32>
    %257 = vector.broadcast %255 : vector<1x32x1xf32> to vector<1x32x32xf32>
    %258 = vector.broadcast %256 : vector<1x1x32xf32> to vector<1x32x32xf32>
    %259 = arith.addf %257, %258 : vector<1x32x32xf32>
    %260 = arith.subf %259, %254 : vector<1x32x32xf32>
    %cst_58 = arith.constant 9.99999997E-7 : f32
    %261 = vector.broadcast %cst_58 : f32 to vector<1x32x32xf32>
    %262 = arith.maximumf %260, %261 : vector<1x32x32xf32>
    %263 = arith.divf %254, %262 : vector<1x32x32xf32>
    %264 = vector.shape_cast %220 : vector<1x32xi32> to vector<1x32x1xi32>
    %265 = vector.shape_cast %220 : vector<1x32xi32> to vector<1x1x32xi32>
    %266 = vector.broadcast %264 : vector<1x32x1xi32> to vector<1x32x32xi32>
    %267 = vector.broadcast %265 : vector<1x1x32xi32> to vector<1x32x32xi32>
    %268 = arith.cmpi eq, %266, %267 : vector<1x32x32xi32>
    %cst_59 = arith.constant 5.000000e-01 : f32
    %269 = vector.broadcast %cst_59 : f32 to vector<1x32x32xf32>
    %270 = arith.cmpf ogt, %263, %269 : vector<1x32x32xf32>
    %271 = arith.andi %270, %268 : vector<1x32x32xi1>
    %272 = arith.andi %271, %8 : vector<1x32x32xi1>
    %273 = arith.extui %272 : vector<1x32x32xi1> to vector<1x32x32xi32>
    %274 = arith.sitofp %273 : vector<1x32x32xi32> to vector<1x32x32xf32>
    %275 = vector.shape_cast %274 : vector<1x32x32xf32> to vector<32x32xf32>
    %cst_60 = arith.constant 5.000000e-02 : f32
    %276 = vector.broadcast %cst_60 : f32 to vector<1x32xf32>
    %277 = arith.cmpf ole, %219, %276 : vector<1x32xf32>
    %278 = arith.extui %277 : vector<1x32xi1> to vector<1x32xi32>
    %279 = arith.sitofp %278 : vector<1x32xi32> to vector<1x32xf32>
    %cst_61 = arith.constant 0.000000e+00 : f32
    %280 = vector.broadcast %cst_61 : f32 to vector<1x32xf32>
    %c0_i32_62 = arith.constant 0 : i32
    %c32_i32_63 = arith.constant 32 : i32
    %281 = arith.addi %c0_i32_62, %c32_i32_63 : i32
    %c1_i32_64 = arith.constant 1 : i32
    %282:2 = scf.for %arg6 = %c0_i32_62 to %281 step %c1_i32_64 iter_args(%arg7 = %280, %arg8 = %279) -> (vector<1x32xf32>, vector<1x32xf32>)  : i32 {
      %306 = vector.broadcast %arg6 : i32 to vector<1x32xi32>
      %307 = arith.cmpi eq, %4, %306 : vector<1x32xi32>
      %308 = arith.extui %307 : vector<1x32xi1> to vector<1x32xi32>
      %309 = arith.sitofp %308 : vector<1x32xi32> to vector<1x32xf32>
      %310 = vector.broadcast %arg6 : i32 to vector<1x32xi32>
      %311 = arith.cmpi eq, %4, %310 : vector<1x32xi32>
      %cst_74 = arith.constant 0.000000e+00 : f32
      %312 = vector.broadcast %cst_74 : f32 to vector<1x32xf32>
      %313 = arith.select %311, %arg8, %312 : vector<1x32xi1>, vector<1x32xf32>
      %314 = vector.shape_cast %313 : vector<1x32xf32> to vector<1x1x32xf32>
      %cst_75 = arith.constant dense<0xFF800000> : vector<1xf32>
      %315 = vector.multi_reduction <maximumf>, %314, %cst_75 [1, 2] : vector<1x1x32xf32> to vector<1xf32>
      %316 = vector.shape_cast %315 : vector<1xf32> to vector<1x1x1xf32>
      %317 = vector.extract %316[0, 0, 0] : f32 from vector<1x1x1xf32>
      %cst_76 = arith.constant 1.000000e+00 : f32
      %318 = arith.subf %cst_76, %317 : f32
      %319 = vector.broadcast %318 : f32 to vector<1x32xf32>
      %320 = arith.mulf %309, %319 : vector<1x32xf32>
      %321 = arith.addf %arg7, %320 : vector<1x32xf32>
      %322 = vector.broadcast %arg6 : i32 to vector<32x32xi32>
      %323 = arith.cmpi eq, %5, %322 : vector<32x32xi32>
      %cst_77 = arith.constant 0.000000e+00 : f32
      %324 = vector.broadcast %cst_77 : f32 to vector<32x32xf32>
      %325 = arith.select %323, %275, %324 : vector<32x32xi1>, vector<32x32xf32>
      %cst_78 = arith.constant dense<0xFF800000> : vector<32xf32>
      %326 = vector.multi_reduction <maximumf>, %325, %cst_78 [0] : vector<32x32xf32> to vector<32xf32>
      %327 = vector.shape_cast %326 : vector<32xf32> to vector<1x32xf32>
      %328 = vector.broadcast %318 : f32 to vector<1x32xf32>
      %329 = arith.mulf %327, %328 : vector<1x32xf32>
      %330 = arith.maximumf %arg8, %329 : vector<1x32xf32>
      scf.yield %321, %330 : vector<1x32xf32>, vector<1x32xf32>
    }
    %c32_i32_65 = arith.constant 32 : i32
    %cst_66 = arith.constant dense<0.000000e+00> : vector<1x32xf32>
    %283 = tpu.matmul %282#0, %11, %cst_66 {dimension_numbers = #tpu.dot_dimension_numbers<[1], [0], [0], [1], [0, 0, 1, 1], [], []>} : vector<1x32xf32>, vector<32x32xf32>, vector<1x32xf32> -> vector<1x32xf32>
    %284 = arith.fptosi %283 : vector<1x32xf32> to vector<1x32xi32>
    %c1_i32_67 = arith.constant 1 : i32
    %285 = vector.broadcast %c1_i32_67 : i32 to vector<1x32xi32>
    %286 = arith.subi %284, %285 : vector<1x32xi32>
    %287 = vector.broadcast %286 : vector<1x32xi32> to vector<10x32xi32>
    %288 = arith.cmpi eq, %12, %287 : vector<10x32xi32>
    %289 = arith.extui %288 : vector<10x32xi1> to vector<10x32xi32>
    %290 = arith.sitofp %289 : vector<10x32xi32> to vector<10x32xf32>
    %291 = vector.broadcast %282#0 : vector<1x32xf32> to vector<10x32xf32>
    %292 = arith.mulf %291, %290 : vector<10x32xf32>
    %cst_68 = arith.constant dense<0.000000e+00> : vector<10xf32>
    %293 = vector.multi_reduction <add>, %292, %cst_68 [1] : vector<10x32xf32> to vector<10xf32>
    %294 = vector.shape_cast %293 : vector<10xf32> to vector<10x1xf32>
    %295 = arith.sitofp %220 : vector<1x32xi32> to vector<1x32xf32>
    %296 = tpu.concatenate %202, %205, %208, %211, %219, %295 in 0 : vector<1x32xf32>, vector<1x32xf32>, vector<1x32xf32>, vector<1x32xf32>, vector<1x32xf32>, vector<1x32xf32> -> vector<6x32xf32>
    %cst_69 = arith.constant dense<0.000000e+00> : vector<10x6xf32>
    %297 = tpu.matmul %292, %296, %cst_69 {dimension_numbers = #tpu.dot_dimension_numbers<[1], [1], [0], [0], [0, 0, 1, 0], [], []>} : vector<10x32xf32>, vector<6x32xf32>, vector<10x6xf32> -> vector<10x6xf32>
    %cst_70 = arith.constant 1.000000e+00 : f32
    %298 = vector.broadcast %cst_70 : f32 to vector<10x1xf32>
    %299 = arith.subf %294, %298 : vector<10x1xf32>
    %300 = vector.broadcast %299 : vector<10x1xf32> to vector<10x6xf32>
    %301 = arith.mulf %300, %17 : vector<10x6xf32>
    %302 = arith.addf %297, %301 : vector<10x6xf32>
    %c1_71 = arith.constant 1 : index
    %c0_72 = arith.constant 0 : index
    %c0_73 = arith.constant 0 : index
    %303 = vector.load %arg5[%c1_71, %c0_72, %c0_73] : memref<2x10x6xf32, #tpu.memory_space<vmem>>, vector<1x10x6xf32>
    %304 = vector.shape_cast %303 : vector<1x10x6xf32> to vector<10x6xf32>
    %305 = vector.shape_cast %302 : vector<10x6xf32> to vector<1x10x6xf32>
    tpu.vector_store %arg5[%c1_71, %c0_72, %c0_73], %305 {strides = array<i32>} : memref<2x10x6xf32, #tpu.memory_space<vmem>>, vector<1x10x6xf32>,
    return
  }
}

</mosaic_0001>

<bundles_post_ra>
// kernel: wrapper_forward.2
= control target key start
LH: loop header
LB: loop body
LE: loop exit
PB: predicated region body
PF: predicated region fallthrough
CT: control target
= control target key end

     0   :  { %vm219_vm0 = vcmask 1043456   ;;  %vm188_vm1 = vcmask 31744   ;;  %vm354_vm2 = vcmask 261120   ;;  %vm500_vm3 = vcmask 97280   ;;  %s2021_s0 = inlined_call_operand.vmem [shape: f32[2,4,256], index: 0, kind: input, shape index: {}]   ;;  %s2022_s1 = inlined_call_operand.vmem [shape: f32[80,256], index: 1, kind: input, shape index: {}]   ;;  %s2023_s2 = inlined_call_operand.vmem [shape: f32[4,32], index: 2, kind: input, shape index: {}]   ;;  %s2024_s4 = inlined_call_operand.vmem [shape: f32[32,12], index: 4, kind: input, shape index: {}]   ;;  %s2025_s6 = inlined_call_operand.vmem [shape: f32[32,12], index: 6, kind: input, shape index: {}]   ;;  %s2026_s3 = inlined_call_operand.vmem [shape: f32[1,32], index: 3, kind: input, shape index: {}]   ;;  %s2027_s5 = inlined_call_operand.vmem [shape: f32[1,12], index: 5, kind: input, shape index: {}]   ;;  %s2028_s8 = inlined_call_operand.vmem [shape: f32[2,80,12], index: 8, kind: output, shape index: {0}]   ;;  %s2029_s7 = inlined_call_operand.vmem [shape: f32[1,12], index: 7, kind: input, shape index: {}]   ;;  %s2030_s9 = inlined_call_operand.vmem [shape: f32[2,80,12], index: 9, kind: output, shape index: {1}]  }
   0x1   :  { %v63_v0 = vld [vmem:[%s2021_s0] sm:$0xff]  ;;  %v32_v1 = vld [vmem:[%s2022_s1 + $0x8] sm:$0xff]  ;;  %v34_v4 = vld [vmem:[%s2022_s1 + $0x18] sm:$0xff] }
   0x2   :  { %v65_v2 = vcombine.high %v63_v0, %v63_v0  ;;  %131 = vmatprep.mubr.f32.mxu0 %v32_v1  ;;  %v31_v3 = vld [vmem:[%s2022_s1] sm:$0xff]  ;;  %v33_v5 = vld [vmem:[%s2022_s1 + $0x10] sm:$0xff]  ;;  %v36_v6 = vld [vmem:[%s2022_s1 + $0x28] sm:$0xff] }
   0x3   :  { %v35_v7 = vld [vmem:[%s2022_s1 + $0x20] sm:$0xff]  ;;  %v38_v8 = vld [vmem:[%s2022_s1 + $0x38] sm:$0xff]  ;;  %v37_v9 = vld [vmem:[%s2022_s1 + $0x30] sm:$0xff] }
   0x4   :  { %67 = vmatprep.subr.mxu0 %v65_v2  ;;  %v40_v10 = vld [vmem:[%s2022_s1 + $0x48] sm:$0xff]  ;;  %v39_v11 = vld [vmem:[%s2022_s1 + $0x40] sm:$0xff]  ;;  %v42_v12 = vld [vmem:[%s2022_s1 + $0x58] sm:$0xff] }
   0x5   :  { %68 = vmatpush1.xpose.msra.mxu0 %v63_v0  ;;  %v41_v13 = vld [vmem:[%s2022_s1 + $0x50] sm:$0xff]  ;;  %v44_v14 = vld [vmem:[%s2022_s1 + $0x68] sm:$0xff]  ;;  %v43_v15 = vld [vmem:[%s2022_s1 + $0x60] sm:$0xff] }
   0x6   :  { %v46_v16 = vld [vmem:[%s2022_s1 + $0x78] sm:$0xff]  ;;  %v45_v17 = vld [vmem:[%s2022_s1 + $0x70] sm:$0xff]  ;;  %v48_v18 = vld [vmem:[%s2022_s1 + $0x88] sm:$0xff] }
   0x7   :  { %v47_v19 = vld [vmem:[%s2022_s1 + $0x80] sm:$0xff]  ;;  %v50_v20 = vld [vmem:[%s2022_s1 + $0x98] sm:$0xff]  ;;  %v49_v21 = vld [vmem:[%s2022_s1 + $0x90] sm:$0xff] }
   0x8   :  { %132 = vmatmul.mubr.f32.vlgmr.msra.gmra.mrb[0].mxu0 %v31_v3  ;;  %v1241_v22 = vld [vmem:[%s2021_s0 + $0x8] sm:$0xff]  ;;  %v1650_v23 = vld [vmem:[%s2023_s2] sm:$0xf]  ;;  %v55_v48 = vld [vmem:[%s2024_s4 + $0x10] sm:$0xff] }
   0x9   :  { %136 = vmatprep.mubr.f32.mxu0 %v34_v4  ;;  %1371 = vmatprep.subr.msk.mxu1 %vm219_vm0, %v1650_v23  ;;  %v645_v24 = vcombine.high %v1241_v22, %v1241_v22  ;;  %v53_v25 = vld [vmem:[%s2024_s4] sm:$0xff]  ;;  %v54_v26 = vld [vmem:[%s2024_s4 + $0x8] sm:$0xff]  ;;  %v56_v49 = vld [vmem:[%s2024_s4 + $0x18] sm:$0xff] }
   0xa   :  { %1372 = vmatpush3.msk.msra.mxu1 %vm219_vm0, %v1650_v23  ;;  %v1662_v27 = vpack.c.bf16 %v54_v26, %v53_v25  ;;  %v1682_v50 = vpack.c.bf16 %v56_v49, %v55_v48  ;;  %v58_v51 = vld [vmem:[%s2025_s6] sm:$0xff]  ;;  %v59_v52 = vld [vmem:[%s2025_s6 + $0x8] sm:$0xff]  ;;  %v60_v54 = vld [vmem:[%s2025_s6 + $0x10] sm:$0xff] }
   0xb   :  { %647 = vmatprep.subr.mxu0 %v645_v24  ;;  %v1505_v53 = vpack.c.bf16 %v59_v52, %v58_v51  ;;  %v61_v55 = vld [vmem:[%s2025_s6 + $0x18] sm:$0xff] }
   0xc   :  { %137 = vmatmul.mubr.f32.gmra.mrb[2].mxu0 %v33_v5  ;;  %1498 = vmatprep.subr.bf16.mxu1 %v1662_v27  ;;  %v1509_v56 = vpack.c.bf16 %v61_v55, %v60_v54 }
   0xd   :  { %141 = vmatprep.mubr.f32.mxu0 %v36_v6  ;;  %648 = vmatpush1.xpose.msra.mxu0 %v1241_v22 }
   0xe   :  { %1522 = vmatprep.subr.bf16.mxu0 %v1505_v53 }
  0x10   :  { %142 = vmatmul.mubr.f32.gmra.mrb[4].mxu0 %v35_v7 }
  0x11   :  { %146 = vmatprep.mubr.f32.mxu0 %v38_v8 }
  0x14   :  { %147 = vmatmul.mubr.f32.gmra.mrb[6].mxu0 %v37_v9 }
  0x15   :  { %151 = vmatprep.mubr.f32.mxu0 %v40_v10 }
  0x18   :  { %152 = vmatmul.mubr.f32.gmra.mrb[8].mxu0 %v39_v11 }
  0x19   :  { %156 = vmatprep.mubr.f32.mxu0 %v42_v12 }
  0x1c   :  { %157 = vmatmul.mubr.f32.gmra.mrb[10].mxu0 %v41_v13 }
  0x1d   :  { %161 = vmatprep.mubr.f32.mxu0 %v44_v14 }
  0x20   :  { %162 = vmatmul.mubr.f32.gmra.mrb[12].mxu0 %v43_v15 }
  0x21   :  { %166 = vmatprep.mubr.f32.mxu0 %v46_v16 }
  0x24   :  { %167 = vmatmul.mubr.f32.gmra.mrb[14].mxu0 %v45_v17 }
  0x25   :  { %171 = vmatprep.mubr.f32.mxu0 %v48_v18 }
  0x28   :  { %172 = vmatmul.mubr.f32.gmra.mrb[16].mxu0 %v47_v19 }
  0x29   :  { %176 = vmatprep.mubr.f32.mxu0 %v50_v20 }
  0x2c   :  { %177 = vmatmul.mubr.f32.gmra.mrb[18].mxu0 %v49_v21 }
  0x2d   :  { %711 = vmatprep.mubr.f32.mxu0 %v32_v1 }
  0x30   :  { %712 = vmatmul.mubr.f32.vlgmr.msra.gmra.mrb[20].mxu0 %v31_v3 }
  0x31   :  { %716 = vmatprep.mubr.f32.mxu0 %v34_v4  ;;  %1524 = vmatpush3.bf16.msra.mxu0 %v1505_v53 }
  0x32   :  { %1526 = vmatprep.subr.bf16.mxu0 %v1509_v56 }
  0x34   :  { %717 = vmatmul.mubr.f32.gmra.mrb[22].mxu0 %v33_v5 }
  0x35   :  { %721 = vmatprep.mubr.f32.mxu0 %v36_v6  ;;  %1528 = vmatpush3.bf16.msra.mxu0 %v1509_v56 }
  0x38   :  { %722 = vmatmul.mubr.f32.gmra.mrb[24].mxu0 %v35_v7 }
  0x39   :  { %726 = vmatprep.mubr.f32.mxu0 %v38_v8 }
  0x3c   :  { %727 = vmatmul.mubr.f32.gmra.mrb[26].mxu0 %v37_v9 }
  0x3d   :  { %731 = vmatprep.mubr.f32.mxu0 %v40_v10 }
  0x40   :  { %732 = vmatmul.mubr.f32.gmra.mrb[28].mxu0 %v39_v11 }
  0x41   :  { %736 = vmatprep.mubr.f32.mxu0 %v42_v12 }
  0x44   :  { %737 = vmatmul.mubr.f32.gmra.mrb[30].mxu0 %v41_v13  ;;  %v1721_v13 = vld [vmem:[%s2026_s3] ss:$0 sm:$0xff] }
  0x45   :  { %741 = vmatprep.mubr.f32.mxu0 %v44_v14 }
  0x48   :  { %742 = vmatmul.mubr.f32.gmra.mrb[32].mxu0 %v43_v15 }
  0x49   :  { %746 = vmatprep.mubr.f32.mxu0 %v46_v16 }
  0x4c   :  { %747 = vmatmul.mubr.f32.gmra.mrb[34].mxu0 %v45_v17 }
  0x4d   :  { %751 = vmatprep.mubr.f32.mxu0 %v48_v18 }
  0x50   :  { %752 = vmatmul.mubr.f32.gmra.mrb[36].mxu0 %v47_v19 }
  0x51   :  { %756 = vmatprep.mubr.f32.mxu0 %v50_v20 }
  0x54   :  { %757 = vmatmul.mubr.f32.gmra.mrb[38].mxu0 %v49_v21 }
  0xdb   :  { %v133_v28 = vpop.f32.mrb[0].mxu0 }
  0xdc   :  { %v135_v29 = vpop.f32.mrb[1].mxu0  ;;  %1373 = vmatprep.mubr.msk.f32.mxu1 %vm188_vm1, %v133_v28 }
  0xdf   :  { %v138_v30 = vpop.f32.mrb[2].mxu0 }
  0xe0   :  { %v140_v31 = vpop.f32.mrb[3].mxu0  ;;  %1374 = vmatmul.mubr.msk.f32.vlgmr.msra.gmra.mrb[0].mxu1 %vm188_vm1, %v138_v30 }
  0xe1   :  { %1500 = vmatpush3.bf16.msra.mxu1 %v1662_v27 }
  0xe2   :  { %1502 = vmatprep.subr.bf16.mxu1 %v1682_v50 }
  0xe3   :  { %v143_v32 = vpop.f32.mrb[4].mxu0 }
  0xe4   :  { %v145_v33 = vpop.f32.mrb[5].mxu0  ;;  %1376 = vmatprep.mubr.msk.f32.mxu1 %vm188_vm1, %v143_v32 }
  0xe5   :  { %1504 = vmatpush3.bf16.msra.mxu1 %v1682_v50 }
  0xe6   :  { %1506 = vmatprep.subr.bf16.mxu1 %v1505_v53 }
  0xe7   :  { %v148_v34 = vpop.f32.mrb[6].mxu0 }
  0xe8   :  { %v150_v35 = vpop.f32.mrb[7].mxu0  ;;  %1377 = vmatmul.mubr.msk.f32.gmra.mrb[2].mxu1 %vm188_vm1, %v148_v34 }
  0xeb   :  { %v153_v36 = vpop.f32.mrb[8].mxu0 }
  0xec   :  { %v155_v37 = vpop.f32.mrb[9].mxu0  ;;  %1379 = vmatprep.mubr.msk.f32.mxu1 %vm188_vm1, %v153_v36 }
  0xef   :  { %v158_v38 = vpop.f32.mrb[10].mxu0 }
  0xf0   :  { %v160_v39 = vpop.f32.mrb[11].mxu0  ;;  %1380 = vmatmul.mubr.msk.f32.gmra.mrb[4].mxu1 %vm188_vm1, %v158_v38 }
  0xf3   :  { %v163_v40 = vpop.f32.mrb[12].mxu0 }
  0xf4   :  { %v165_v41 = vpop.f32.mrb[13].mxu0  ;;  %1382 = vmatprep.mubr.msk.f32.mxu1 %vm188_vm1, %v163_v40 }
  0xf7   :  { %v168_v42 = vpop.f32.mrb[14].mxu0 }
  0xf8   :  { %v170_v43 = vpop.f32.mrb[15].mxu0  ;;  %1383 = vmatmul.mubr.msk.f32.gmra.mrb[6].mxu1 %vm188_vm1, %v168_v42 }
  0xfb   :  { %v173_v44 = vpop.f32.mrb[16].mxu0 }
  0xfc   :  { %v175_v45 = vpop.f32.mrb[17].mxu0  ;;  %1385 = vmatprep.mubr.msk.f32.mxu1 %vm188_vm1, %v173_v44 }
  0xff   :  { %v178_v46 = vpop.f32.mrb[18].mxu0 }
 0x100   :  { %v180_v47 = vpop.f32.mrb[19].mxu0  ;;  %1386 = vmatmul.mubr.msk.f32.gmra.mrb[8].mxu1 %vm188_vm1, %v178_v46 }
 0x103   :  { %v1698_v57 = vpop.f32.mrb[20].mxu0 }
 0x104   :  { %v715_v58 = vpop.f32.mrb[21].mxu0 }
 0x107   :  { %v1700_v59 = vpop.f32.mrb[22].mxu0 }
 0x108   :  { %v720_v60 = vpop.f32.mrb[23].mxu0 }
 0x10b   :  { %v1702_v61 = vpop.f32.mrb[24].mxu0 }
 0x10c   :  { %v725_v62 = vpop.f32.mrb[25].mxu0 }
 0x10f   :  { %v1704_v63 = vpop.f32.mrb[26].mxu0 }
 0x110   :  { %v730_v0 = vpop.f32.mrb[27].mxu0 }
 0x113   :  { %v1706_v1 = vpop.f32.mrb[28].mxu0 }
 0x114   :  { %v735_v2 = vpop.f32.mrb[29].mxu0 }
 0x117   :  { %v1708_v3 = vpop.f32.mrb[30].mxu0 }
 0x118   :  { %v740_v4 = vpop.f32.mrb[31].mxu0 }
 0x11b   :  { %v1710_v5 = vpop.f32.mrb[32].mxu0 }
 0x11c   :  { %v745_v6 = vpop.f32.mrb[33].mxu0 }
 0x11f   :  { %v1712_v7 = vpop.f32.mrb[34].mxu0 }
 0x120   :  { %v750_v8 = vpop.f32.mrb[35].mxu0 }
 0x123   :  { %v1714_v9 = vpop.f32.mrb[36].mxu0 }
 0x124   :  { %v755_v10 = vpop.f32.mrb[37].mxu0 }
 0x127   :  { %v1716_v11 = vpop.f32.mrb[38].mxu0 }
 0x128   :  { %v760_v12 = vpop.f32.mrb[39].mxu0 }
 0x1b3   :  { %v1375_v14 = vpop.f32.mrb[0].mxu1 }
 0x1b4   :  { %v295_v15 = vadd.f32 %v1375_v14, %v1721_v13  ;;  %v289_v16 = vpop.f32.mrb[1].mxu1 }
 0x1b5   :  { %v290_v17 = vadd.f32 %v1721_v13, %v289_v16 }
 0x1b6   :  { %v339_v19 = vmax.f32 %v295_v15, 0.0 }
 0x1b7   :  { %v338_v18 = vmax.f32 %v290_v17, 0.0 }
 0x1b9   :  { %1396 = vmatprep.mubr.msk.f32.mxu1 %vm354_vm2, %v338_v18 }
 0x1ba   :  { %1397 = vmatmul.mubr.msk.f32.vlgmr.msra.gmra.mrb[10].mxu1 %vm354_vm2, %v339_v19 }
 0x1bb   :  { %v1378_v20 = vpop.f32.mrb[2].mxu1  ;;  %1508 = vmatpush3.bf16.msra.mxu1 %v1505_v53 }
 0x1bc   :  { %v305_v21 = vadd.f32 %v1378_v20, %v1721_v13  ;;  %v299_v22 = vpop.f32.mrb[3].mxu1  ;;  %1510 = vmatprep.subr.bf16.mxu1 %v1509_v56 }
 0x1bd   :  { %v300_v24 = vadd.f32 %v1721_v13, %v299_v22 }
 0x1be   :  { %v341_v26 = vmax.f32 %v305_v21, 0.0 }
 0x1bf   :  { %v340_v25 = vmax.f32 %v300_v24, 0.0  ;;  %1512 = vmatpush3.bf16.msra.mxu1 %v1509_v56 }
 0x1c0   :  { %1434 = vmatprep.subr.msk.mxu1 %vm219_vm0, %v1650_v23 }
 0x1c1   :  { %1399 = vmatprep.mubr.msk.f32.mxu1 %vm354_vm2, %v340_v25 }
 0x1c2   :  { %1400 = vmatmul.mubr.msk.f32.gmra.mrb[12].mxu1 %vm354_vm2, %v341_v26 }
 0x1c3   :  { %v1381_v28 = vpop.f32.mrb[4].mxu1 }
 0x1c4   :  { %v315_v29 = vadd.f32 %v1381_v28, %v1721_v13  ;;  %v309_v30 = vpop.f32.mrb[5].mxu1 }
 0x1c5   :  { %v310_v31 = vadd.f32 %v1721_v13, %v309_v30 }
 0x1c6   :  { %v343_v33 = vmax.f32 %v315_v29, 0.0 }
 0x1c7   :  { %v342_v32 = vmax.f32 %v310_v31, 0.0 }
 0x1c9   :  { %1402 = vmatprep.mubr.msk.f32.mxu1 %vm354_vm2, %v342_v32 }
 0x1ca   :  { %1403 = vmatmul.mubr.msk.f32.gmra.mrb[14].mxu1 %vm354_vm2, %v343_v33 }
 0x1cb   :  { %v1384_v34 = vpop.f32.mrb[6].mxu1 }
 0x1cc   :  { %v325_v35 = vadd.f32 %v1384_v34, %v1721_v13  ;;  %v319_v36 = vpop.f32.mrb[7].mxu1 }
 0x1cd   :  { %v320_v37 = vadd.f32 %v1721_v13, %v319_v36 }
 0x1ce   :  { %v345_v39 = vmax.f32 %v325_v35, 0.0 }
 0x1cf   :  { %v344_v38 = vmax.f32 %v320_v37, 0.0 }
 0x1d1   :  { %1405 = vmatprep.mubr.msk.f32.mxu1 %vm354_vm2, %v344_v38 }
 0x1d2   :  { %1406 = vmatmul.mubr.msk.f32.gmra.mrb[16].mxu1 %vm354_vm2, %v345_v39 }
 0x1d3   :  { %v1387_v40 = vpop.f32.mrb[8].mxu1 }
 0x1d4   :  { %v335_v41 = vadd.f32 %v1387_v40, %v1721_v13  ;;  %v329_v42 = vpop.f32.mrb[9].mxu1 }
 0x1d5   :  { %v330_v43 = vadd.f32 %v1721_v13, %v329_v42 }
 0x1d6   :  { %v347_v45 = vmax.f32 %v335_v41, 0.0 }
 0x1d7   :  { %v346_v44 = vmax.f32 %v330_v43, 0.0 }
 0x1d9   :  { %1408 = vmatprep.mubr.msk.f32.mxu1 %vm354_vm2, %v346_v44 }
 0x1da   :  { %1409 = vmatmul.mubr.msk.f32.gmra.mrb[18].mxu1 %vm354_vm2, %v347_v45 }
 0x1db   :  { %1419 = vmatprep.mubr.msk.f32.mxu1 %vm354_vm2, %v338_v18 }
 0x1de   :  { %1420 = vmatmul.mubr.msk.f32.vlgmr.msra.gmra.mrb[20].mxu1 %vm354_vm2, %v339_v19 }
 0x1df   :  { %1435 = vmatpush3.msk.msra.mxu1 %vm219_vm0, %v1650_v23  ;;  %1422 = vmatprep.mubr.msk.f32.mxu1 %vm354_vm2, %v340_v25  ;;  %v1784_v23 = vld [vmem:[%s2027_s5] ss:$0 sm:$0xff] }
 0x1e0   :  { %1514 = vmatprep.subr.bf16.mxu1 %v1662_v27 }
 0x1e2   :  { %1423 = vmatmul.mubr.msk.f32.gmra.mrb[22].mxu1 %vm354_vm2, %v341_v26 }
 0x1e3   :  { %1425 = vmatprep.mubr.msk.f32.mxu1 %vm354_vm2, %v342_v32 }
 0x1e6   :  { %1426 = vmatmul.mubr.msk.f32.gmra.mrb[24].mxu1 %vm354_vm2, %v343_v33 }
 0x1e7   :  { %1428 = vmatprep.mubr.msk.f32.mxu1 %vm354_vm2, %v344_v38 }
 0x1ea   :  { %1429 = vmatmul.mubr.msk.f32.gmra.mrb[26].mxu1 %vm354_vm2, %v345_v39 }
 0x1eb   :  { %1431 = vmatprep.mubr.msk.f32.mxu1 %vm354_vm2, %v346_v44 }
 0x1ee   :  { %1432 = vmatmul.mubr.msk.f32.gmra.mrb[28].mxu1 %vm354_vm2, %v347_v45 }
 0x1ef   :  { %1436 = vmatprep.mubr.msk.f32.mxu1 %vm188_vm1, %v1698_v57 }
 0x1f2   :  { %1437 = vmatmul.mubr.msk.f32.vlgmr.msra.gmra.mrb[30].mxu1 %vm188_vm1, %v1700_v59 }
 0x1f3   :  { %1439 = vmatprep.mubr.msk.f32.mxu1 %vm188_vm1, %v1702_v61  ;;  %1516 = vmatpush3.bf16.msra.mxu1 %v1662_v27 }
 0x1f4   :  { %1518 = vmatprep.subr.bf16.mxu1 %v1682_v50 }
 0x1f6   :  { %1440 = vmatmul.mubr.msk.f32.gmra.mrb[32].mxu1 %vm188_vm1, %v1704_v63 }
 0x1f7   :  { %1442 = vmatprep.mubr.msk.f32.mxu1 %vm188_vm1, %v1706_v1  ;;  %1520 = vmatpush3.bf16.msra.mxu1 %v1682_v50  ;;  %v1831_v1 = vld [vmem:[%s2029_s7] ss:$0 sm:$0xff] }
 0x1fa   :  { %1443 = vmatmul.mubr.msk.f32.gmra.mrb[34].mxu1 %vm188_vm1, %v1708_v3 }
 0x1fb   :  { %1445 = vmatprep.mubr.msk.f32.mxu1 %vm188_vm1, %v1710_v5 }
 0x1fe   :  { %1446 = vmatmul.mubr.msk.f32.gmra.mrb[36].mxu1 %vm188_vm1, %v1712_v7 }
 0x1ff   :  { %1448 = vmatprep.mubr.msk.f32.mxu1 %vm188_vm1, %v1714_v9 }
 0x202   :  { %1449 = vmatmul.mubr.msk.f32.gmra.mrb[38].mxu1 %vm188_vm1, %v1716_v11 }
 0x28d   :  { %v1398_v27 = vpop.f32.mrb[10].mxu1 }
 0x28e   :  { %v457_v46 = vadd.f32 %v1398_v27, %v1784_v23  ;;  %v451_v47 = vpop.f32.mrb[11].mxu1 }
 0x28f   :  { %v452_v48 = vadd.f32 %v1784_v23, %v451_v47 }
 0x290   :  { %502 = vst.msk [vmem:[%s2028_s8 + $0x8] sm:$0xff] %vm500_vm3, %v457_v46 }
 0x291   :  { %501 = vst.msk [vmem:[%s2028_s8] sm:$0xff] %vm500_vm3, %v452_v48 }
 0x295   :  { %v1401_v49 = vpop.f32.mrb[12].mxu1 }
 0x296   :  { %v467_v50 = vadd.f32 %v1401_v49, %v1784_v23  ;;  %v461_v51 = vpop.f32.mrb[13].mxu1 }
 0x297   :  { %v462_v52 = vadd.f32 %v1784_v23, %v461_v51 }
 0x298   :  { %504 = vst.msk [vmem:[%s2028_s8 + $0x18] sm:$0xff] %vm500_vm3, %v467_v50 }
 0x299   :  { %503 = vst.msk [vmem:[%s2028_s8 + $0x10] sm:$0xff] %vm500_vm3, %v462_v52 }
 0x29d   :  { %v1404_v53 = vpop.f32.mrb[14].mxu1 }
 0x29e   :  { %v477_v54 = vadd.f32 %v1404_v53, %v1784_v23  ;;  %v471_v55 = vpop.f32.mrb[15].mxu1 }
 0x29f   :  { %v472_v56 = vadd.f32 %v1784_v23, %v471_v55 }
 0x2a0   :  { %506 = vst.msk [vmem:[%s2028_s8 + $0x28] sm:$0xff] %vm500_vm3, %v477_v54 }
 0x2a1   :  { %505 = vst.msk [vmem:[%s2028_s8 + $0x20] sm:$0xff] %vm500_vm3, %v472_v56 }
 0x2a5   :  { %v1407_v57 = vpop.f32.mrb[16].mxu1 }
 0x2a6   :  { %v487_v58 = vadd.f32 %v1407_v57, %v1784_v23  ;;  %v481_v59 = vpop.f32.mrb[17].mxu1 }
 0x2a7   :  { %v482_v60 = vadd.f32 %v1784_v23, %v481_v59 }
 0x2a8   :  { %508 = vst.msk [vmem:[%s2028_s8 + $0x38] sm:$0xff] %vm500_vm3, %v487_v58 }
 0x2a9   :  { %507 = vst.msk [vmem:[%s2028_s8 + $0x30] sm:$0xff] %vm500_vm3, %v482_v60 }
 0x2ad   :  { %v1410_v61 = vpop.f32.mrb[18].mxu1 }
 0x2ae   :  { %v497_v62 = vadd.f32 %v1410_v61, %v1784_v23  ;;  %v491_v63 = vpop.f32.mrb[19].mxu1 }
 0x2af   :  { %v492_v0 = vadd.f32 %v1784_v23, %v491_v63 }
 0x2b0   :  { %510 = vst.msk [vmem:[%s2028_s8 + $0x48] sm:$0xff] %vm500_vm3, %v497_v62 }
 0x2b1   :  { %509 = vst.msk [vmem:[%s2028_s8 + $0x40] sm:$0xff] %vm500_vm3, %v492_v0  ;;  %v1421_v2 = vpop.f32.mrb[20].mxu1 }
 0x2b2   :  { %v589_v3 = vadd.f32 %v1421_v2, %v1831_v1  ;;  %v583_v4 = vpop.f32.mrb[21].mxu1 }
 0x2b3   :  { %v584_v5 = vadd.f32 %v1831_v1, %v583_v4 }
 0x2b4   :  { %633 = vst.msk [vmem:[%s2030_s9 + $0x8] sm:$0xff] %vm500_vm3, %v589_v3 }
 0x2b5   :  { %632 = vst.msk [vmem:[%s2030_s9] sm:$0xff] %vm500_vm3, %v584_v5  ;;  %v1424_v6 = vpop.f32.mrb[22].mxu1 }
 0x2b6   :  { %v599_v7 = vadd.f32 %v1424_v6, %v1831_v1  ;;  %v593_v8 = vpop.f32.mrb[23].mxu1 }
 0x2b7   :  { %v594_v9 = vadd.f32 %v1831_v1, %v593_v8 }
 0x2b8   :  { %635 = vst.msk [vmem:[%s2030_s9 + $0x18] sm:$0xff] %vm500_vm3, %v599_v7 }
 0x2b9   :  { %634 = vst.msk [vmem:[%s2030_s9 + $0x10] sm:$0xff] %vm500_vm3, %v594_v9  ;;  %v1427_v10 = vpop.f32.mrb[24].mxu1 }
 0x2ba   :  { %v609_v11 = vadd.f32 %v1427_v10, %v1831_v1  ;;  %v603_v12 = vpop.f32.mrb[25].mxu1 }
 0x2bb   :  { %v604_v14 = vadd.f32 %v1831_v1, %v603_v12 }
 0x2bc   :  { %637 = vst.msk [vmem:[%s2030_s9 + $0x28] sm:$0xff] %vm500_vm3, %v609_v11 }
 0x2bd   :  { %636 = vst.msk [vmem:[%s2030_s9 + $0x20] sm:$0xff] %vm500_vm3, %v604_v14  ;;  %v1430_v15 = vpop.f32.mrb[26].mxu1 }
 0x2be   :  { %v619_v16 = vadd.f32 %v1430_v15, %v1831_v1  ;;  %v613_v17 = vpop.f32.mrb[27].mxu1 }
 0x2bf   :  { %v614_v18 = vadd.f32 %v1831_v1, %v613_v17 }
 0x2c0   :  { %639 = vst.msk [vmem:[%s2030_s9 + $0x38] sm:$0xff] %vm500_vm3, %v619_v16 }
 0x2c1   :  { %638 = vst.msk [vmem:[%s2030_s9 + $0x30] sm:$0xff] %vm500_vm3, %v614_v18  ;;  %v1433_v19 = vpop.f32.mrb[28].mxu1 }
 0x2c2   :  { %v629_v20 = vadd.f32 %v1433_v19, %v1831_v1  ;;  %v623_v21 = vpop.f32.mrb[29].mxu1 }
 0x2c3   :  { %v624_v22 = vadd.f32 %v1831_v1, %v623_v21 }
 0x2c4   :  { %641 = vst.msk [vmem:[%s2030_s9 + $0x48] sm:$0xff] %vm500_vm3, %v629_v20 }
 0x2c5   :  { %640 = vst.msk [vmem:[%s2030_s9 + $0x40] sm:$0xff] %vm500_vm3, %v624_v22  ;;  %v1438_v24 = vpop.f32.mrb[30].mxu1 }
 0x2c6   :  { %v864_v25 = vadd.f32 %v1438_v24, %v1721_v13  ;;  %v858_v26 = vpop.f32.mrb[31].mxu1 }
 0x2c7   :  { %v859_v28 = vadd.f32 %v1721_v13, %v858_v26 }
 0x2c8   :  { %v908_v31 = vmax.f32 %v864_v25, 0.0 }
 0x2c9   :  { %v907_v29 = vmax.f32 %v859_v28, 0.0  ;;  %v1441_v30 = vpop.f32.mrb[32].mxu1 }
 0x2ca   :  { %v874_v32 = vadd.f32 %v1441_v30, %v1721_v13  ;;  %v868_v33 = vpop.f32.mrb[33].mxu1 }
 0x2cb   :  { %v869_v34 = vadd.f32 %v1721_v13, %v868_v33  ;;  %1459 = vmatprep.mubr.msk.f32.mxu1 %vm354_vm2, %v907_v29  ;;  %1482 = vmatprep.mubr.msk.f32.mxu0 %vm354_vm2, %v907_v29 }
 0x2cc   :  { %1460 = vmatmul.mubr.msk.f32.vlgmr.msra.gmra.mrb[40].mxu1 %vm354_vm2, %v908_v31  ;;  %1483 = vmatmul.mubr.msk.f32.vlgmr.msra.gmra.mrb[40].mxu0 %vm354_vm2, %v908_v31  ;;  %v910_v37 = vmax.f32 %v874_v32, 0.0 }
 0x2cd   :  { %v909_v35 = vmax.f32 %v869_v34, 0.0  ;;  %v1444_v36 = vpop.f32.mrb[34].mxu1 }
 0x2ce   :  { %v884_v38 = vadd.f32 %v1444_v36, %v1721_v13  ;;  %v878_v39 = vpop.f32.mrb[35].mxu1 }
 0x2cf   :  { %v879_v40 = vadd.f32 %v1721_v13, %v878_v39  ;;  %1462 = vmatprep.mubr.msk.f32.mxu1 %vm354_vm2, %v909_v35  ;;  %1485 = vmatprep.mubr.msk.f32.mxu0 %vm354_vm2, %v909_v35 }
 0x2d0   :  { %1463 = vmatmul.mubr.msk.f32.gmra.mrb[42].mxu1 %vm354_vm2, %v910_v37  ;;  %1486 = vmatmul.mubr.msk.f32.gmra.mrb[42].mxu0 %vm354_vm2, %v910_v37  ;;  %v912_v43 = vmax.f32 %v884_v38, 0.0 }
 0x2d1   :  { %v911_v41 = vmax.f32 %v879_v40, 0.0  ;;  %v1447_v42 = vpop.f32.mrb[36].mxu1 }
 0x2d2   :  { %v894_v44 = vadd.f32 %v1447_v42, %v1721_v13  ;;  %v888_v45 = vpop.f32.mrb[37].mxu1 }
 0x2d3   :  { %v889_v27 = vadd.f32 %v1721_v13, %v888_v45  ;;  %1465 = vmatprep.mubr.msk.f32.mxu1 %vm354_vm2, %v911_v41  ;;  %1488 = vmatprep.mubr.msk.f32.mxu0 %vm354_vm2, %v911_v41 }
 0x2d4   :  { %1466 = vmatmul.mubr.msk.f32.gmra.mrb[44].mxu1 %vm354_vm2, %v912_v43  ;;  %1489 = vmatmul.mubr.msk.f32.gmra.mrb[44].mxu0 %vm354_vm2, %v912_v43  ;;  %v914_v48 = vmax.f32 %v894_v44, 0.0 }
 0x2d5   :  { %v913_v46 = vmax.f32 %v889_v27, 0.0  ;;  %v1450_v47 = vpop.f32.mrb[38].mxu1 }
 0x2d6   :  { %v904_v49 = vadd.f32 %v1450_v47, %v1721_v13  ;;  %v898_v50 = vpop.f32.mrb[39].mxu1 }
 0x2d7   :  { %v899_v51 = vadd.f32 %v1721_v13, %v898_v50  ;;  %1468 = vmatprep.mubr.msk.f32.mxu1 %vm354_vm2, %v913_v46  ;;  %1491 = vmatprep.mubr.msk.f32.mxu0 %vm354_vm2, %v913_v46 }
 0x2d8   :  { %1469 = vmatmul.mubr.msk.f32.gmra.mrb[46].mxu1 %vm354_vm2, %v914_v48  ;;  %1492 = vmatmul.mubr.msk.f32.gmra.mrb[46].mxu0 %vm354_vm2, %v914_v48  ;;  %v916_v53 = vmax.f32 %v904_v49, 0.0 }
 0x2d9   :  { %v915_v52 = vmax.f32 %v899_v51, 0.0 }
 0x2db   :  { %1471 = vmatprep.mubr.msk.f32.mxu1 %vm354_vm2, %v915_v52  ;;  %1494 = vmatprep.mubr.msk.f32.mxu0 %vm354_vm2, %v915_v52 }
 0x2dc   :  { %1472 = vmatmul.mubr.msk.f32.gmra.mrb[48].mxu1 %vm354_vm2, %v916_v53  ;;  %1495 = vmatmul.mubr.msk.f32.gmra.mrb[48].mxu0 %vm354_vm2, %v916_v53 }
 0x39f   :  { %v1461_v54 = vpop.f32.mrb[40].mxu1  ;;  %v1484_v13 = vpop.f32.mrb[40].mxu0 }
 0x3a0   :  { %v1019_v55 = vadd.f32 %v1461_v54, %v1784_v23  ;;  %v1145_v56 = vadd.f32 %v1484_v13, %v1831_v1  ;;  %v1013_v57 = vpop.f32.mrb[41].mxu1  ;;  %v1139_v58 = vpop.f32.mrb[41].mxu0 }
 0x3a1   :  { %v1014_v59 = vadd.f32 %v1784_v23, %v1013_v57  ;;  %v1140_v60 = vadd.f32 %v1831_v1, %v1139_v58 }
 0x3a2   :  { %1264 = vst.msk [vmem:[%s2028_s8 + $0x58] sm:$0xff] %vm500_vm3, %v1019_v55  ;;  %1284 = vst.msk [vmem:[%s2030_s9 + $0x58] sm:$0xff] %vm500_vm3, %v1145_v56 }
 0x3a3   :  { %1263 = vst.msk [vmem:[%s2028_s8 + $0x50] sm:$0xff] %vm500_vm3, %v1014_v59  ;;  %1283 = vst.msk [vmem:[%s2030_s9 + $0x50] sm:$0xff] %vm500_vm3, %v1140_v60  ;;  %v1464_v61 = vpop.f32.mrb[42].mxu1  ;;  %v1487_v62 = vpop.f32.mrb[42].mxu0 }
 0x3a4   :  { %v1029_v63 = vadd.f32 %v1464_v61, %v1784_v23  ;;  %v1155_v0 = vadd.f32 %v1487_v62, %v1831_v1  ;;  %v1023_v2 = vpop.f32.mrb[43].mxu1  ;;  %v1149_v3 = vpop.f32.mrb[43].mxu0 }
 0x3a5   :  { %v1024_v4 = vadd.f32 %v1784_v23, %v1023_v2  ;;  %v1150_v5 = vadd.f32 %v1831_v1, %v1149_v3 }
 0x3a6   :  { %1266 = vst.msk [vmem:[%s2028_s8 + $0x68] sm:$0xff] %vm500_vm3, %v1029_v63  ;;  %1286 = vst.msk [vmem:[%s2030_s9 + $0x68] sm:$0xff] %vm500_vm3, %v1155_v0 }
 0x3a7   :  { %1265 = vst.msk [vmem:[%s2028_s8 + $0x60] sm:$0xff] %vm500_vm3, %v1024_v4  ;;  %1285 = vst.msk [vmem:[%s2030_s9 + $0x60] sm:$0xff] %vm500_vm3, %v1150_v5  ;;  %v1467_v6 = vpop.f32.mrb[44].mxu1  ;;  %v1490_v7 = vpop.f32.mrb[44].mxu0 }
 0x3a8   :  { %v1039_v8 = vadd.f32 %v1467_v6, %v1784_v23  ;;  %v1165_v9 = vadd.f32 %v1490_v7, %v1831_v1  ;;  %v1033_v10 = vpop.f32.mrb[45].mxu1  ;;  %v1159_v11 = vpop.f32.mrb[45].mxu0 }
 0x3a9   :  { %v1034_v12 = vadd.f32 %v1784_v23, %v1033_v10  ;;  %v1160_v14 = vadd.f32 %v1831_v1, %v1159_v11 }
 0x3aa   :  { %1268 = vst.msk [vmem:[%s2028_s8 + $0x78] sm:$0xff] %vm500_vm3, %v1039_v8  ;;  %1288 = vst.msk [vmem:[%s2030_s9 + $0x78] sm:$0xff] %vm500_vm3, %v1165_v9 }
 0x3ab   :  { %1267 = vst.msk [vmem:[%s2028_s8 + $0x70] sm:$0xff] %vm500_vm3, %v1034_v12  ;;  %1287 = vst.msk [vmem:[%s2030_s9 + $0x70] sm:$0xff] %vm500_vm3, %v1160_v14  ;;  %v1470_v15 = vpop.f32.mrb[46].mxu1  ;;  %v1493_v16 = vpop.f32.mrb[46].mxu0 }
 0x3ac   :  { %v1049_v17 = vadd.f32 %v1470_v15, %v1784_v23  ;;  %v1175_v18 = vadd.f32 %v1493_v16, %v1831_v1  ;;  %v1043_v19 = vpop.f32.mrb[47].mxu1  ;;  %v1169_v20 = vpop.f32.mrb[47].mxu0 }
 0x3ad   :  { %v1044_v21 = vadd.f32 %v1784_v23, %v1043_v19  ;;  %v1170_v22 = vadd.f32 %v1831_v1, %v1169_v20 }
 0x3ae   :  { %1270 = vst.msk [vmem:[%s2028_s8 + $0x88] sm:$0xff] %vm500_vm3, %v1049_v17  ;;  %1290 = vst.msk [vmem:[%s2030_s9 + $0x88] sm:$0xff] %vm500_vm3, %v1175_v18 }
 0x3af   :  { %1269 = vst.msk [vmem:[%s2028_s8 + $0x80] sm:$0xff] %vm500_vm3, %v1044_v21  ;;  %1289 = vst.msk [vmem:[%s2030_s9 + $0x80] sm:$0xff] %vm500_vm3, %v1170_v22  ;;  %v1473_v24 = vpop.f32.mrb[48].mxu1  ;;  %v1496_v25 = vpop.f32.mrb[48].mxu0 }
 0x3b0   :  { %v1059_v26 = vadd.f32 %v1473_v24, %v1784_v23  ;;  %v1185_v28 = vadd.f32 %v1496_v25, %v1831_v1  ;;  %v1053_v29 = vpop.f32.mrb[49].mxu1  ;;  %v1179_v30 = vpop.f32.mrb[49].mxu0 }
 0x3b1   :  { %v1054_v31 = vadd.f32 %v1784_v23, %v1053_v29  ;;  %v1180_v32 = vadd.f32 %v1831_v1, %v1179_v30 }
 0x3b2   :  { %1272 = vst.msk [vmem:[%s2028_s8 + $0x98] sm:$0xff] %vm500_vm3, %v1059_v26  ;;  %1292 = vst.msk [vmem:[%s2030_s9 + $0x98] sm:$0xff] %vm500_vm3, %v1185_v28 }
 0x3b3   :  { %1271 = vst.msk [vmem:[%s2028_s8 + $0x90] sm:$0xff] %vm500_vm3, %v1054_v31  ;;  %1291 = vst.msk [vmem:[%s2030_s9 + $0x90] sm:$0xff] %vm500_vm3, %v1180_v32 }

// kernel: wrapper_forward.3
= control target key start
LH: loop header
LB: loop body
LE: loop exit
PB: predicated region body
PF: predicated region fallthrough
CT: control target
= control target key end

     0   :  { %v24_v0 = vlaneseq  ;;  %v3478_v3 = vmov 0.0|0.0   ;;  %v3475_v22 = vmov 1.0|1.0   ;;  %vm3499_vm15 = vcmask 916480   ;;  %s3469_s1 = inlined_call_operand.vmem [shape: f32[2,240,4], index: 1, kind: input, shape index: {}]   ;;  %s3470_s5 = inlined_call_operand.vmem [shape: f32[2,10,6], index: 5, kind: output, shape index: {}]   ;;  %s3471_s3 = inlined_call_operand.vmem [shape: s32[2,32], index: 3, kind: input, shape index: {}]   ;;  %s3472_s0 = inlined_call_operand.vmem [shape: f32[4,240], index: 0, kind: input, shape index: {}]   ;;  %s3473_s2 = inlined_call_operand.vmem [shape: f32[2,32], index: 2, kind: input, shape index: {}]   ;;  %s3474_s4 = inlined_call_operand.vmem [shape: s32[2,32], index: 4, kind: input, shape index: {}]  }
   0x1   :  { %v261_v1 = vld [vmem:[%s3469_s1 + $0x80] sm:$0xff]  ;;  %2036 = vmatprep.subr.bf16.mxu0 %v3478_v3  ;;  %2081 = vmatprep.subr.bf16.mxu1 %v3478_v3  ;;  %v262_v4 = vld [vmem:[%s3469_s1 + $0x88] sm:$0xff]  ;;  %v263_v11 = vld [vmem:[%s3469_s1 + $0x90] sm:$0xff] }
   0x2   :  { %v245_v2 = vld [vmem:[%s3469_s1] sm:$0xff]  ;;  %307 = vxpose.xlu0.b32.start [1/14] (short) (narrow) %v261_v1, 8  ;;  %v246_v5 = vld [vmem:[%s3469_s1 + $0x8] sm:$0xff]  ;;  %v2413_v6 = vand.u32 127, %v24_v0  ;;  %v2415_v7 = vshrl.u32 %v24_v0, 7  ;;  %v247_v12 = vld [vmem:[%s3469_s1 + $0x10] sm:$0xff] }
   0x3   :  { %275 = vxpose.xlu1.b32.start [1/16] (narrow) %v245_v2, 8  ;;  %v264_v14 = vld [vmem:[%s3469_s1 + $0x98] sm:$0xff]  ;;  %v2452_v16 = vld [vmem:[%s3471_s3] sm:$0x3]  ;;  %v266_v25 = vld [vmem:[%s3469_s1 + $0xa8] sm:$0xff] }
   0x4   :  { %v2418_v8 = vadd.s32 8, %v2415_v7  ;;  %vm35_vm0 = vcmp.le.s32.totalorder %v2415_v7, %v2413_v6  ;;  %v2423_v9 = vadd.s32 16, %v2415_v7  ;;  %v2426_v10 = vadd.s32 24, %v2415_v7  ;;  %v248_v15 = vld [vmem:[%s3469_s1 + $0x18] sm:$0xff]  ;;  %v265_v20 = vld [vmem:[%s3469_s1 + $0xa0] sm:$0xff]  ;;  %v250_v26 = vld [vmem:[%s3469_s1 + $0x28] sm:$0xff] }
   0x5   :  { %v2439_v13 = vsub.s32 0, %v2415_v7  ;;  %v2459_v18 = vadd.s32 32, %v2415_v7  ;;  %v2468_v19 = vadd.s32 40, %v2415_v7  ;;  %v249_v21 = vld [vmem:[%s3469_s1 + $0x20] sm:$0xff]  ;;  %v2487_v23 = vadd.s32 48, %v2415_v7  ;;  %v267_v30 = vld [vmem:[%s3469_s1 + $0xb0] sm:$0xff] }
   0x6   :  { %308 = vxpose.xlu0.b32.cont [2/14] (short) (narrow) %v262_v4, 8  ;;  %vm36_vm1 = vcmp.le.s32.totalorder %v2418_v8, %v2413_v6  ;;  %vm37_vm2 = vcmp.le.s32.totalorder %v2423_v9, %v2413_v6  ;;  %vm38_vm3 = vcmp.le.s32.totalorder %v2426_v10, %v2413_v6  ;;  %v2490_v24 = vadd.s32 56, %v2415_v7  ;;  %v2503_v27 = vld [vmem:[%s3472_s0] sm:$0xff]  ;;  %v251_v31 = vld [vmem:[%s3469_s1 + $0x30] sm:$0xff]  ;;  %v268_v35 = vld [vmem:[%s3469_s1 + $0xb8] sm:$0xff] }
   0x7   :  { %276 = vxpose.xlu1.b32.cont [2/16] (narrow) %v246_v5, 8  ;;  %3516 = vst [vmem:[#allocation2_spill] sm:$0xff] %v2439_v13  ;;  %v2456_v17 = vrot.slane %v2452_v16, %v2439_v13  ;;  %3517 = vst [vmem:[#allocation3_spill] sm:$0xff] %v2503_v27  ;;  %v2512_v28 = vadd.s32 64, %v2415_v7  ;;  %v2515_v29 = vadd.s32 72, %v2415_v7  ;;  %v2525_v32 = vcombine.high %v2503_v27, %v2503_v27  ;;  %v252_v36 = vld [vmem:[%s3469_s1 + $0x38] sm:$0xff] }
   0x8   :  { %v2536_v33 = vadd.s32 80, %v2415_v7  ;;  %v2539_v34 = vadd.s32 88, %v2415_v7  ;;  %v2558_v37 = vadd.s32 96, %v2415_v7  ;;  %v2561_v38 = vadd.s32 104, %v2415_v7  ;;  %v269_v39 = vld [vmem:[%s3469_s1 + $0xc0] sm:$0xff]  ;;  %v270_v43 = vld [vmem:[%s3469_s1 + $0xc8] sm:$0xff] }
   0x9   :  { %vm80_vm4 = vcmp.eq.s32.totalorder %v2415_v7, %v2456_v17  ;;  %vm81_vm5 = vcmp.eq.s32.totalorder %v2418_v8, %v2456_v17  ;;  %vm82_vm6 = vcmp.eq.s32.totalorder %v2423_v9, %v2456_v17  ;;  %vm83_vm8 = vcmp.eq.s32.totalorder %v2426_v10, %v2456_v17  ;;  %3518 = vst [vmem:[#allocation4_spill] sm:$0xff] %v2525_v32  ;;  %v253_v40 = vld [vmem:[%s3469_s1 + $0x40] sm:$0xff]  ;;  %v254_v44 = vld [vmem:[%s3469_s1 + $0x48] sm:$0xff]  ;;  %v271_v47 = vld [vmem:[%s3469_s1 + $0xd0] sm:$0xff] }
   0xa   :  { %309 = vxpose.xlu0.b32.cont [3/14] (short) (narrow) %v263_v11, 8  ;;  %vm2037_vm7 = vmpackc.low %vm81_vm5, %vm80_vm4  ;;  %vm84_vm10 = vcmp.eq.s32.totalorder %v2459_v18, %v2456_v17  ;;  %vm85_vm11 = vcmp.eq.s32.totalorder %v2468_v19, %v2456_v17  ;;  %vm86_vm13 = vcmp.eq.s32.totalorder %v2487_v23, %v2456_v17  ;;  %vm87_vm14 = vcmp.eq.s32.totalorder %v2490_v24, %v2456_v17  ;;  %v255_v48 = vld [vmem:[%s3469_s1 + $0x50] sm:$0xff]  ;;  %v272_v51 = vld [vmem:[%s3469_s1 + $0xd8] sm:$0xff] }
   0xb   :  { %277 = vxpose.xlu1.b32.cont [3/16] (narrow) %v247_v12, 8  ;;  %2038 = vmatpush1.bf16.msk.msra.mxu0 %vm2037_vm7, %v3475_v22  ;;  %vm2040_vm9 = vmpackc.low %vm83_vm8, %vm82_vm6  ;;  %vm88_vm5 = vcmp.eq.s32.totalorder %v2512_v28, %v2456_v17  ;;  %vm89_vm6 = vcmp.eq.s32.totalorder %v2515_v29, %v2456_v17  ;;  %vm90_vm8 = vcmp.eq.s32.totalorder %v2536_v33, %v2456_v17  ;;  %v2578_v41 = vadd.s32 112, %v2415_v7  ;;  %v256_v52 = vld [vmem:[%s3469_s1 + $0x58] sm:$0xff]  ;;  %v273_v55 = vld [vmem:[%s3469_s1 + $0xe0] sm:$0xff] }
   0xc   :  { %2083 = vmatpush1.bf16.msk.msra.mxu1 %vm2037_vm7, %v3475_v22  ;;  %2039 = vmatprep.subr.bf16.mxu0 %v3478_v3  ;;  %vm2043_vm12 = vmpackc.low %vm85_vm11, %vm84_vm10  ;;  %vm92_vm11 = vcmp.eq.s32.totalorder %v2558_v37, %v2456_v17  ;;  %v2581_v42 = vadd.s32 120, %v2415_v7  ;;  %v2598_v45 = vadd.s32 128, %v2415_v7  ;;  %v2601_v46 = vadd.s32 136, %v2415_v7  ;;  %v257_v56 = vld [vmem:[%s3469_s1 + $0x60] sm:$0xff]  ;;  %v274_v59 = vld [vmem:[%s3469_s1 + $0xe8] sm:$0xff] }
   0xd   :  { %2084 = vmatprep.subr.bf16.mxu1 %v3478_v3  ;;  %vm2046_vm4 = vmpackc.low %vm87_vm14, %vm86_vm13  ;;  %1795 = vmatprep.mubr.msk.f32.mxu0 %vm3499_vm15, %v2525_v32  ;;  %vm94_vm14 = vcmp.eq.s32.totalorder %v2578_v41, %v2456_v17  ;;  %v2618_v49 = vadd.s32 144, %v2415_v7  ;;  %v2621_v50 = vadd.s32 152, %v2415_v7  ;;  %v2638_v53 = vadd.s32 160, %v2415_v7  ;;  %v258_v60 = vld [vmem:[%s3469_s1 + $0x68] sm:$0xff]  ;;  %v259_v63 = vld [vmem:[%s3469_s1 + $0x70] sm:$0xff] }
   0xe   :  { %310 = vxpose.xlu0.b32.cont [4/14] (short) (narrow) %v264_v14, 8  ;;  %vm2049_vm7 = vmpackc.low %vm89_vm6, %vm88_vm5  ;;  %vm96_vm6 = vcmp.eq.s32.totalorder %v2598_v45, %v2456_v17  ;;  %v2641_v54 = vadd.s32 168, %v2415_v7  ;;  %v2658_v57 = vadd.s32 176, %v2415_v7  ;;  %v2661_v58 = vadd.s32 184, %v2415_v7  ;;  %v260_v2 = vld [vmem:[%s3469_s1 + $0x78] sm:$0xff] }
   0xf   :  { %278 = vxpose.xlu1.b32.cont [4/16] (narrow) %v248_v15, 8  ;;  %2041 = vmatpush1.bf16.msk.msra.mxu0 %vm2040_vm9, %v3475_v22  ;;  %v2678_v61 = vadd.s32 192, %v2415_v7  ;;  %v2681_v62 = vadd.s32 200, %v2415_v7  ;;  %v2695_v0 = vadd.s32 208, %v2415_v7  ;;  %v2698_v1 = vadd.s32 216, %v2415_v7 }
  0x10   :  { %2086 = vmatpush1.bf16.msk.msra.mxu1 %vm2040_vm9, %v3475_v22  ;;  %2042 = vmatprep.subr.bf16.mxu0 %v3478_v3  ;;  %vm91_vm9 = vcmp.eq.s32.totalorder %v2539_v34, %v2456_v17  ;;  %3519 = vst [vmem:[#allocation5_spill] sm:$0xff] %v2658_v57  ;;  %3520 = vst [vmem:[#allocation6_spill] sm:$0xff] %v2661_v58  ;;  %v2712_v4 = vadd.s32 224, %v2415_v7  ;;  %v2715_v5 = vadd.s32 232, %v2415_v7 }
  0x11   :  { %2087 = vmatprep.subr.bf16.mxu1 %v3478_v3  ;;  %vm2052_vm10 = vmpackc.low %vm91_vm9, %vm90_vm8  ;;  %vm98_vm9 = vcmp.eq.s32.totalorder %v2618_v49, %v2456_v17  ;;  %3521 = vst [vmem:[#allocation7_spill] sm:$0xff] %v2678_v61 }
  0x12   :  { %311 = vxpose.xlu0.b32.cont [5/14] (short) (narrow) %v265_v20, 8  ;;  %3522 = vst [vmem:[#allocation8_spill] sm:$0xff] %v2681_v62  ;;  %3523 = vst [vmem:[#allocation9_spill] sm:$0xff] %v2695_v0 }
  0x13   :  { %279 = vxpose.xlu1.b32.cont [5/16] (narrow) %v249_v21, 8  ;;  %2044 = vmatpush1.bf16.msk.msra.mxu0 %vm2043_vm12, %v3475_v22  ;;  %3524 = vst [vmem:[#allocation10_spill] sm:$0xff] %v2698_v1  ;;  %3525 = vst [vmem:[#allocation11_spill] sm:$0xff] %v2712_v4 }
  0x14   :  { %2089 = vmatpush1.bf16.msk.msra.mxu1 %vm2043_vm12, %v3475_v22  ;;  %2045 = vmatprep.subr.bf16.mxu0 %v3478_v3  ;;  %vm93_vm12 = vcmp.eq.s32.totalorder %v2561_v38, %v2456_v17  ;;  %3526 = vst [vmem:[#allocation12_spill] sm:$0xff] %v2715_v5 }
  0x15   :  { %2090 = vmatprep.subr.bf16.mxu1 %v3478_v3  ;;  %vm2055_vm13 = vmpackc.low %vm93_vm12, %vm92_vm11  ;;  %vm100_vm12 = vcmp.eq.s32.totalorder %v2638_v53, %v2456_v17 }
  0x16   :  { %312 = vxpose.xlu0.b32.cont [6/14] (short) (narrow) %v266_v25, 8 }
  0x17   :  { %280 = vxpose.xlu1.b32.cont [6/16] (narrow) %v250_v26, 8  ;;  %2047 = vmatpush1.bf16.msk.msra.mxu0 %vm2046_vm4, %v3475_v22 }
  0x18   :  { %2092 = vmatpush1.bf16.msk.msra.mxu1 %vm2046_vm4, %v3475_v22  ;;  %2048 = vmatprep.subr.bf16.mxu0 %v3478_v3  ;;  %vm95_vm4 = vcmp.eq.s32.totalorder %v2581_v42, %v2456_v17 }
  0x19   :  { %2093 = vmatprep.subr.bf16.mxu1 %v3478_v3  ;;  %vm2058_vm5 = vmpackc.low %vm95_vm4, %vm94_vm14  ;;  %vm102_vm4 = vcmp.eq.s32.totalorder %v2658_v57, %v2456_v17 }
  0x1a   :  { %313 = vxpose.xlu0.b32.cont [7/14] (short) (narrow) %v267_v30, 8 }
  0x1b   :  { %281 = vxpose.xlu1.b32.cont [7/16] (narrow) %v251_v31, 8  ;;  %2050 = vmatpush1.bf16.msk.msra.mxu0 %vm2049_vm7, %v3475_v22 }
  0x1c   :  { %2095 = vmatpush1.bf16.msk.msra.mxu1 %vm2049_vm7, %v3475_v22  ;;  %2051 = vmatprep.subr.bf16.mxu0 %v3478_v3  ;;  %vm97_vm7 = vcmp.eq.s32.totalorder %v2601_v46, %v2456_v17 }
  0x1d   :  { %2096 = vmatprep.subr.bf16.mxu1 %v3478_v3  ;;  %vm2061_vm8 = vmpackc.low %vm97_vm7, %vm96_vm6  ;;  %vm104_vm7 = vcmp.eq.s32.totalorder %v2678_v61, %v2456_v17 }
  0x1e   :  { %314 = vxpose.xlu0.b32.cont [8/14] (short) (narrow) %v268_v35, 8 }
  0x1f   :  { %282 = vxpose.xlu1.b32.cont [8/16] (narrow) %v252_v36, 8  ;;  %2053 = vmatpush1.bf16.msk.msra.mxu0 %vm2052_vm10, %v3475_v22 }
  0x20   :  { %2098 = vmatpush1.bf16.msk.msra.mxu1 %vm2052_vm10, %v3475_v22  ;;  %2054 = vmatprep.subr.bf16.mxu0 %v3478_v3  ;;  %vm99_vm10 = vcmp.eq.s32.totalorder %v2621_v50, %v2456_v17 }
  0x21   :  { %2099 = vmatprep.subr.bf16.mxu1 %v3478_v3  ;;  %vm2064_vm11 = vmpackc.low %vm99_vm10, %vm98_vm9  ;;  %vm106_vm10 = vcmp.eq.s32.totalorder %v2695_v0, %v2456_v17 }
  0x22   :  { %315 = vxpose.xlu0.b32.cont [9/14] (short) (narrow) %v269_v39, 8 }
  0x23   :  { %283 = vxpose.xlu1.b32.cont [9/16] (narrow) %v253_v40, 8  ;;  %2056 = vmatpush1.bf16.msk.msra.mxu0 %vm2055_vm13, %v3475_v22 }
  0x24   :  { %2101 = vmatpush1.bf16.msk.msra.mxu1 %vm2055_vm13, %v3475_v22  ;;  %2057 = vmatprep.subr.bf16.mxu0 %v3478_v3  ;;  %vm101_vm13 = vcmp.eq.s32.totalorder %v2641_v54, %v2456_v17 }
  0x25   :  { %2102 = vmatprep.subr.bf16.mxu1 %v3478_v3  ;;  %vm2067_vm14 = vmpackc.low %vm101_vm13, %vm100_vm12  ;;  %vm108_vm13 = vcmp.eq.s32.totalorder %v2712_v4, %v2456_v17 }
  0x26   :  { %316 = vxpose.xlu0.b32.cont [10/14] (short) (narrow) %v270_v43, 8 }
  0x27   :  { %284 = vxpose.xlu1.b32.cont [10/16] (narrow) %v254_v44, 8  ;;  %2059 = vmatpush1.bf16.msk.msra.mxu0 %vm2058_vm5, %v3475_v22 }
  0x28   :  { %2104 = vmatpush1.bf16.msk.msra.mxu1 %vm2058_vm5, %v3475_v22  ;;  %2060 = vmatprep.subr.bf16.mxu0 %v3478_v3  ;;  %vm103_vm5 = vcmp.eq.s32.totalorder %v2661_v58, %v2456_v17 }
  0x29   :  { %2105 = vmatprep.subr.bf16.mxu1 %v3478_v3  ;;  %vm2070_vm6 = vmpackc.low %vm103_vm5, %vm102_vm4  ;;  %vm47_vm5 = vcmp.eq.s32.totalorder %v2413_v6, 5 }
  0x2a   :  { %317 = vxpose.xlu0.b32.cont [11/14] (short) (narrow) %v271_v47, 8 }
  0x2b   :  { %285 = vxpose.xlu1.b32.cont [11/16] (narrow) %v255_v48, 8  ;;  %2062 = vmatpush1.bf16.msk.msra.mxu0 %vm2061_vm8, %v3475_v22 }
  0x2c   :  { %2107 = vmatpush1.bf16.msk.msra.mxu1 %vm2061_vm8, %v3475_v22  ;;  %2063 = vmatprep.subr.bf16.mxu0 %v3478_v3  ;;  %vm105_vm8 = vcmp.eq.s32.totalorder %v2681_v62, %v2456_v17 }
  0x2d   :  { %2108 = vmatprep.subr.bf16.mxu1 %v3478_v3  ;;  %vm2073_vm9 = vmpackc.low %vm105_vm8, %vm104_vm7  ;;  %vm3500_vm8 = vcmp.ne.s32.totalorder %v2418_v8, %v2413_v6 }
  0x2e   :  { %318 = vxpose.xlu0.b32.cont [12/14] (short) (narrow) %v272_v51, 8 }
  0x2f   :  { %286 = vxpose.xlu1.b32.cont [12/16] (narrow) %v256_v52, 8  ;;  %2065 = vmatpush1.bf16.msk.msra.mxu0 %vm2064_vm11, %v3475_v22 }
  0x30   :  { %2110 = vmatpush1.bf16.msk.msra.mxu1 %vm2064_vm11, %v3475_v22  ;;  %2066 = vmatprep.subr.bf16.mxu0 %v3478_v3  ;;  %vm107_vm11 = vcmp.eq.s32.totalorder %v2698_v1, %v2456_v17 }
  0x31   :  { %2111 = vmatprep.subr.bf16.mxu1 %v3478_v3  ;;  %vm2076_vm12 = vmpackc.low %vm107_vm11, %vm106_vm10 }
  0x32   :  { %319 = vxpose.xlu0.b32.cont [13/14] (short) (narrow) %v273_v55, 8 }
  0x33   :  { %287 = vxpose.xlu1.b32.cont [13/16] (narrow) %v257_v56, 8  ;;  %2068 = vmatpush1.bf16.msk.msra.mxu0 %vm2067_vm14, %v3475_v22 }
  0x34   :  { %2113 = vmatpush1.bf16.msk.msra.mxu1 %vm2067_vm14, %v3475_v22  ;;  %2069 = vmatprep.subr.bf16.mxu0 %v3478_v3  ;;  %vm109_vm14 = vcmp.eq.s32.totalorder %v2715_v5, %v2456_v17 }
  0x35   :  { %2114 = vmatprep.subr.bf16.mxu1 %v3478_v3  ;;  %vm2079_vm4 = vmpackc.low %vm109_vm14, %vm108_vm13 }
  0x36   :  { %320 = vxpose.xlu0.b32.end [14/14] (short) (narrow) %v274_v59, 8 }
  0x37   :  { %288 = vxpose.xlu1.b32.cont [14/16] (narrow) %v258_v60, 8  ;;  %2071 = vmatpush1.bf16.msk.msra.mxu0 %vm2070_vm6, %v3475_v22  ;;  %v2746_v60 = vsub.s32 1, %v2415_v7 }
  0x38   :  { %2116 = vmatpush1.bf16.msk.msra.mxu1 %vm2070_vm6, %v3475_v22  ;;  %2072 = vmatprep.subr.bf16.mxu0 %v3478_v3 }
  0x39   :  { %2117 = vmatprep.subr.bf16.mxu1 %v3478_v3 }
  0x3b   :  { %289 = vxpose.xlu1.b32.cont [15/16] (narrow) %v259_v63, 8  ;;  %2074 = vmatpush1.bf16.msk.msra.mxu0 %vm2073_vm9, %v3475_v22 }
  0x3c   :  { %2119 = vmatpush1.bf16.msk.msra.mxu1 %vm2073_vm9, %v3475_v22  ;;  %2075 = vmatprep.subr.bf16.mxu0 %v3478_v3 }
  0x3d   :  { %2120 = vmatprep.subr.bf16.mxu1 %v3478_v3 }
  0x3f   :  { %290 = vxpose.xlu1.b32.end [16/16] (narrow) %v260_v2, 8  ;;  %2077 = vmatpush1.bf16.msk.msra.mxu0 %vm2076_vm12, %v3475_v22 }
  0x40   :  { %2122 = vmatpush1.bf16.msk.msra.mxu1 %vm2076_vm12, %v3475_v22  ;;  %2078 = vmatprep.subr.bf16.mxu0 %v3478_v3  ;;  %vm3508_vm12 = vcmp.ne.s32.totalorder %v2415_v7, %v2413_v6 }
  0x41   :  { %2123 = vmatprep.subr.bf16.mxu1 %v3478_v3 }
  0x43   :  { %2080 = vmatpush1.bf16.msk.msra.mxu0 %vm2079_vm4, %v3475_v22 }
  0x44   :  { %2125 = vmatpush1.bf16.msk.msra.mxu1 %vm2079_vm4, %v3475_v22 }
  0x46   :  { %240 = vmatmul.mubr.f32.vlgmr.msra.gmra.mrb[0].mxu0 %v2503_v27 }
  0x82   :  { %v323_v11 = vpop.trf.xlu0 }
  0x83   :  { %v291_v12 = vpop.trf.xlu1  ;;  %1826 = vmatprep.mubr.msk.f32.mxu1 %vm3499_vm15, %v323_v11  ;;  %v21_v11 = vld [vmem:[%s3473_s2] sm:$0x3] }
  0x84   :  { %407 = vmatmul.mubr.f32.vlgmr.msra.gmra.mrb[0].mxu1 %v291_v12  ;;  %v436_v12 = vsub.f32 0.0, %v21_v11 }
 0x119   :  { %v241_v14 = vpop.f32.mrb[0].mxu0 }
 0x11a   :  { %v243_v15 = vpop.f32.mrb[1].mxu0  ;;  %v414_v17 = vrot.slane %v241_v14, 6 }
 0x11b   :  { %v437_v15 = vmul.f32 1.442695, %v436_v12 }
 0x11c   :  { %v416_v20 = vsub.f32 %v241_v14, %v414_v17 }
 0x11e   :  { %v417_v21 = vmul.f32 0.5, %v416_v20  ;;  %v423_v26 = vrot.slane %v416_v20, 2 }
 0x120   :  { %v419_v25 = vrot.slane %v417_v21, 2 }
 0x122   :  { %v421_v30 = vadd.f32 %v419_v25, %v241_v14 }
 0x157   :  { %v408_v31 = vpop.f32.mrb[0].mxu1 }
 0x158   :  { %v412_v35 = vmin.f32 %v408_v31, 4.1351666  ;;  %v425_v36 = vmul.f32 %v423_v26, %v408_v31  ;;  %v410_v39 = vpop.f32.mrb[1].mxu1 }
 0x15a   :  { %v426_v40 = vadd.f32 %v425_v36, %v421_v30  ;;  %v427_v43 = vmul.f32 1.442695, %v412_v35  ;;  %v3481_v30 = vmov 0.0   ;;  %v2789_v36 = vld [vmem:[%s3474_s4] sm:$0x3]  ;;  %s2862_s4 = smov 0  }
 0x15b   :  { %v2782_v31 = vsel %vm47_vm5, 1.0, %v3481_v30  ;;  %v2795_v39 = vrot.slane %v2789_v36, %v2439_v13 }
 0x15c   :  { %2291 = vpow2.f32 %v427_v43  ;;  %3527 = vst [vmem:[#allocation13_spill] sm:$0xff] %v2782_v31 }
 0x15d   :  { %2293 = vpow2.f32 %v437_v15 }
 0x166   :  { %v2292_v44 = vpop.eup %2291 }
 0x167   :  { %v429_v47 = vmul.f32 %v2292_v44, %v416_v20  ;;  %v2294_v26 = vpop.eup %2293 }
 0x168   :  { %v439_v35 = vadd.f32 1.0, %v2294_v26 }
 0x169   :  { %v430_v48 = vmul.f32 0.5, %v429_v47 }
 0x16a   :  { %2295 = vrcp.f32 %v439_v35 }
 0x16b   :  { %v432_v51 = vrot.slane %v430_v48, 2 }
 0x16d   :  { %v2733_v52 = vsub.f32 %v426_v40, %v432_v51  ;;  %v2735_v55 = vadd.f32 %v432_v51, %v426_v40 }
 0x16f   :  { %v442_v56 = vsub.f32 %v2735_v55, %v2733_v52  ;;  %v2741_v59 = vrot.slane %v2733_v52, %v2439_v13  ;;  %v2752_v63 = vrot.slane %v2733_v52, %v2746_v60  ;;  %v2760_v2 = vrot.slane %v2735_v55, %v2439_v13 }
 0x170   :  { %v2771_v20 = vrot.slane %v2735_v55, %v2746_v60 }
 0x171   :  { %457 = vbcast.lane.b32.xlu1 %v2741_v59, 264  ;;  %453 = vbcast.lane.b32.xlu0 %v2741_v59, 256  ;;  %v443_v14 = vmax.f32 %v442_v56, 0.0 }
 0x173   :  { %v445_v17 = vrot.slane %v443_v14, 1 }
 0x174   :  { %v2799_v40 = vpop.eup %2295 }
 0x175   :  { %461 = vbcast.lane.b32.xlu1 %v2741_v59, 272  ;;  %465 = vbcast.lane.b32.xlu0 %v2741_v59, 280  ;;  %v447_v21 = vmul.f32 %v445_v17, %v443_v14  ;;  %vm642_vm6 = vcmp.le.f32.partialorder %v2799_v40, 0.05 }
 0x176   :  { %v2805_v43 = vsel %vm642_vm6, 1.0, %v3481_v30   ;;  %vm3506_vm6 = vcmp.ne.s32.totalorder %v2426_v10, %v2413_v6 }
 0x177   :  { %v2778_v25 = vrot.slane %v447_v21, %v2439_v13 }
 0x179   :  { %476 = vbcast.lane.b32.xlu1 %v2752_v63, 256  ;;  %480 = vbcast.lane.b32.xlu0 %v2752_v63, 264 }
 0x17d   :  { %484 = vbcast.lane.b32.xlu1 %v2752_v63, 272  ;;  %488 = vbcast.lane.b32.xlu0 %v2752_v63, 280 }
 0x181   :  { %499 = vbcast.lane.b32.xlu1 %v2760_v2, 256  ;;  %503 = vbcast.lane.b32.xlu0 %v2760_v2, 264 }
 0x185   :  { %507 = vbcast.lane.b32.xlu1 %v2760_v2, 272  ;;  %511 = vbcast.lane.b32.xlu0 %v2760_v2, 280 }
 0x189   :  { %522 = vbcast.lane.b32.xlu1 %v2771_v20, 256  ;;  %526 = vbcast.lane.b32.xlu0 %v2771_v20, 264 }
 0x18d   :  { %530 = vbcast.lane.b32.xlu1 %v2771_v20, 272  ;;  %534 = vbcast.lane.b32.xlu0 %v2771_v20, 280 }
 0x191   :  { %569 = vbcast.lane.b32.xlu0 %v2778_v25, 264  ;;  %565 = vbcast.lane.b32.xlu1 %v2778_v25, 256 }
 0x195   :  { %577 = vbcast.lane.b32.xlu0 %v2778_v25, 280  ;;  %573 = vbcast.lane.b32.xlu1 %v2778_v25, 272 }
 0x199   :  { %608 = vbcast.lane.b32.xlu0 %v2795_v39, 264  ;;  %604 = vbcast.lane.b32.xlu1 %v2795_v39, 256 }
 0x19d   :  { %616 = vbcast.lane.b32.xlu0 %v2795_v39, 280  ;;  %612 = vbcast.lane.b32.xlu1 %v2795_v39, 272 }
 0x1e3   :  { %v458_v44 = vpop.permute.xlu1 %457  ;;  %v454_v47 = vpop.permute.xlu0 %453 }
 0x1e4   :  { %v468_v3 = vmax.f32 %v458_v44, %v2741_v59  ;;  %v467_v30 = vmax.f32 %v454_v47, %v2741_v59 }
 0x1e7   :  { %v462_v48 = vpop.permute.xlu1 %461  ;;  %v466_v51 = vpop.permute.xlu0 %465 }
 0x1e8   :  { %v469_v47 = vmax.f32 %v462_v48, %v2741_v59  ;;  %v470_v61 = vmax.f32 %v466_v51, %v2741_v59 }
 0x1eb   :  { %v477_v56 = vpop.permute.xlu1 %476  ;;  %v481_v11 = vpop.permute.xlu0 %480 }
 0x1ec   :  { %v490_v32 = vmax.f32 %v477_v56, %v2752_v63  ;;  %v491_v13 = vmax.f32 %v481_v11, %v2752_v63 }
 0x1ef   :  { %v485_v12 = vpop.permute.xlu1 %484  ;;  %v489_v14 = vpop.permute.xlu0 %488 }
 0x1f0   :  { %v492_v56 = vmax.f32 %v485_v12, %v2752_v63  ;;  %v493_v11 = vmax.f32 %v489_v14, %v2752_v63 }
 0x1f3   :  { %v500_v15 = vpop.permute.xlu1 %499  ;;  %v504_v17 = vpop.permute.xlu0 %503 }
 0x1f4   :  { %v513_v35 = vmin.f32 %v500_v15, %v2760_v2  ;;  %v514_v22 = vmin.f32 %v504_v17, %v2760_v2 }
 0x1f6   :  { %v540_v1 = vsub.f32 %v513_v35, %v467_v30  ;;  %v541_v0 = vsub.f32 %v514_v22, %v468_v3 }
 0x1f7   :  { %v508_v21 = vpop.permute.xlu1 %507  ;;  %v512_v26 = vpop.permute.xlu0 %511 }
 0x1f8   :  { %v515_v15 = vmin.f32 %v508_v21, %v2760_v2  ;;  %v516_v17 = vmin.f32 %v512_v26, %v2760_v2  ;;  %v544_v30 = vmax.f32 %v540_v1, 0.0  ;;  %v545_v2 = vmax.f32 %v541_v0, 0.0 }
 0x1fb   :  { %v523_v31 = vpop.permute.xlu1 %522  ;;  %v527_v27 = vpop.permute.xlu0 %526 }
 0x1fc   :  { %v536_v5 = vmin.f32 %v523_v31, %v2771_v20  ;;  %v537_v4 = vmin.f32 %v527_v27, %v2771_v20 }
 0x1fe   :  { %v548_v62 = vsub.f32 %v536_v5, %v490_v32  ;;  %v549_v44 = vsub.f32 %v537_v4, %v491_v13  ;;  %v542_v32 = vsub.f32 %v515_v15, %v469_v47  ;;  %v543_v13 = vsub.f32 %v516_v17, %v470_v61 }
 0x1ff   :  { %v531_v58 = vpop.permute.xlu1 %530  ;;  %v535_v31 = vpop.permute.xlu0 %534 }
 0x200   :  { %v552_v57 = vmax.f32 %v548_v62, 0.0  ;;  %v553_v27 = vmax.f32 %v549_v44, 0.0  ;;  %v538_v3 = vmin.f32 %v531_v58, %v2771_v20  ;;  %v539_v22 = vmin.f32 %v535_v31, %v2771_v20 }
 0x201   :  { %v546_v26 = vmax.f32 %v542_v32, 0.0  ;;  %v547_v58 = vmax.f32 %v543_v13, 0.0 }
 0x202   :  { %v550_v4 = vsub.f32 %v538_v3, %v492_v56  ;;  %v551_v5 = vsub.f32 %v539_v22, %v493_v11  ;;  %v557_v48 = vmul.f32 %v553_v27, %v545_v2  ;;  %v556_v51 = vmul.f32 %v552_v57, %v544_v30 }
 0x203   :  { %v570_v59 = vpop.permute.xlu0 %569  ;;  %v566_v12 = vpop.permute.xlu1 %565 }
 0x204   :  { %v554_v21 = vmax.f32 %v550_v4, 0.0  ;;  %v555_v63 = vmax.f32 %v551_v5, 0.0  ;;  %v580_v14 = vadd.f32 %v570_v59, %v2778_v25  ;;  %v579_v62 = vadd.f32 %v566_v12, %v2778_v25 }
 0x206   :  { %v584_v35 = vsub.f32 %v580_v14, %v557_v48  ;;  %v583_v20 = vsub.f32 %v579_v62, %v556_v51  ;;  %v559_v1 = vmul.f32 %v555_v63, %v547_v58  ;;  %v558_v15 = vmul.f32 %v554_v21, %v546_v26 }
 0x207   :  { %v578_v0 = vpop.permute.xlu0 %577  ;;  %v574_v61 = vpop.permute.xlu1 %573  ;;  %v2339_v62 = vmov %v2805_v43   ;;  %v2343_v26 = vmov 0.0  }
 0x208   :  { %v588_v17 = vmax.f32 %v584_v35, 1e-06  ;;  %v587_v44 = vmax.f32 %v583_v20, 1e-06  ;;  %v582_v47 = vadd.f32 %v578_v0, %v2778_v25  ;;  %v581_v57 = vadd.f32 %v574_v61, %v2778_v25 }
 0x20a   :  { %2297 = vrcp.f32 %v588_v17  ;;  %v586_v56 = vsub.f32 %v582_v47, %v559_v1  ;;  %v585_v11 = vsub.f32 %v581_v57, %v558_v15 }
 0x20b   :  { %2299 = vrcp.f32 %v587_v44  ;;  %v609_v3 = vpop.permute.xlu0 %608  ;;  %v605_v22 = vpop.permute.xlu1 %604 }
 0x20c   :  { %v590_v31 = vmax.f32 %v586_v56, 1e-06  ;;  %v589_v27 = vmax.f32 %v585_v11, 1e-06  ;;  %vm619_vm7 = vcmp.eq.s32.totalorder %v609_v3, %v2795_v39  ;;  %vm618_vm10 = vcmp.eq.s32.totalorder %v605_v22, %v2795_v39 }
 0x20e   :  { %2301 = vrcp.f32 %v590_v31 }
 0x20f   :  { %2303 = vrcp.f32 %v589_v27  ;;  %v617_v25 = vpop.permute.xlu0 %616  ;;  %v613_v5 = vpop.permute.xlu1 %612 }
 0x210   :  { %vm621_vm4 = vcmp.eq.s32.totalorder %v617_v25, %v2795_v39  ;;  %vm620_vm15 = vcmp.eq.s32.totalorder %v613_v5, %v2795_v39 }
 0x214   :  { %v2298_v30 = vpop.eup %2297 }
 0x215   :  { %v2300_v2 = vpop.eup %2299  ;;  %v594_v32 = vmul.f32 %v2298_v30, %v557_v48 }
 0x216   :  { %v592_v13 = vmul.f32 %v2300_v2, %v556_v51  ;;  %v3528_v51 = vmov 0.0  }
 0x217   :  { %vm623_vm9 = vcmp.gt.f32.partialorder %v594_v32, 0.5 }
 0x218   :  { %v2302_v4 = vpop.eup %2301  ;;  %vm627_vm11 = vmand %vm623_vm9, %vm619_vm7  ;;  %vm622_vm13 = vcmp.gt.f32.partialorder %v592_v13, 0.5 }
 0x219   :  { %v2304_v59 = vpop.eup %2303  ;;  %vm631_vm14 = vmand %vm627_vm11, %vm3500_vm8  ;;  %v598_v48 = vmul.f32 %v2302_v4, %v559_v1 }
 0x21a   :  { %v2838_v12 = vsel %vm631_vm14, 1.0, %v3528_v51  ;;  %vm626_vm5 = vmand %vm622_vm13, %vm618_vm10  ;;  %v596_v21 = vmul.f32 %v2304_v59, %v558_v15  ;;  %vm3507_vm14 = vcmp.ne.s32.totalorder %v2423_v9, %v2413_v6 }
 0x21b   :  { %vm630_vm7 = vmand %vm626_vm5, %vm3508_vm12  ;;  %vm625_vm9 = vcmp.gt.f32.partialorder %v598_v48, 0.5 }
 0x21c   :  { %v2847_v63 = vsel %vm630_vm7, 1.0, %v3528_v51  ;;  %vm629_vm11 = vmand %vm625_vm9, %vm621_vm4  ;;  %vm624_vm8 = vcmp.gt.f32.partialorder %v596_v21, 0.5 }
 0x21d   :  { %vm633_vm10 = vmand %vm629_vm11, %vm3506_vm6 }
 0x21e   :  { %v2855_v14 = vsel %vm633_vm10, 1.0, %v3528_v51  ;;  %vm628_vm13 = vmand %vm624_vm8, %vm620_vm15 }
 0x21f   :  { %vm632_vm5 = vmand %vm628_vm13, %vm3507_vm14 }
 0x220   :  { %v1829_v39 = vsel %vm632_vm5, 1.0, %v3528_v51 }
 0x221 LB: > { %v653_v58 = vstv %s2349_s4  ;;  %vm658_vm15 = vcmask 253952   ;;  %vm3509_vm10 = vcmask 261120   ;;  %v2366_v21 = vmov 0.0   ;;  %s650_s4 = sadd.s32 1, %s2349_s4   ;;  %s2349_s4 = sphi %s2862_s4, %s650_s4   ;;  %v2345_v26 = vphi %v2343_v26, %v2344_v26   ;;  %v2341_v62 = vphi %v2339_v62, %v696_v62  }
 0x222   : > { %vm654_vm8 = vcmp.eq.s32.totalorder %v2413_v6, %v653_v58  ;;  %vm673_vm4 = vcmp.eq.s32.totalorder %v2415_v7, %v653_v58  ;;  %vm674_vm7 = vcmp.eq.s32.totalorder %v2418_v8, %v653_v58  ;;  %vm675_vm9 = vcmp.eq.s32.totalorder %v2423_v9, %v653_v58  ;;  %p647_p0 = scmp.ge.s32.totalorder %s650_s4, 32  }
 0x223   : > { %v657_v35 = vsel %vm654_vm8, %v2341_v62, 0.0  ;;  %vm676_vm11 = vcmp.eq.s32.totalorder %v2426_v10, %v653_v58  ;;  %v677_v57 = vsel %vm673_vm4, %v2847_v63, 0.0  ;;  %v678_v56 = vsel %vm674_vm7, %v2838_v12, 0.0  ;;  %vm2897_vm13 = vmpackc.low (%p647_p0), %vm36_vm1, %vm35_vm0  ;;  %v1923_v58 = vld [vmem:[%s3469_s1 + $0x170] sm:$0xff] (%p647_p0)  ;;  %s3402_s12 = smov (%p647_p0), 0  }
 0x224   : > { %v659_v20 = vsel %vm658_vm15, %v657_v35, -inf  ;;  %v679_v11 = vsel %vm675_vm9, %v1829_v39, 0.0  ;;  %v680_v31 = vsel %vm676_vm11, %v2855_v14, 0.0  ;;  %v682_v27 = vsel %vm3509_vm10, %v677_v57, -inf  ;;  %vm2916_vm0 = vmpackc.low (%p647_p0), %vm38_vm3, %vm37_vm2  ;;  %v1907_v14 = vld [vmem:[%s3469_s1 + $0xf0] sm:$0xff] (%p647_p0)  ;;  %v1924_v39 = vld [vmem:[%s3469_s1 + $0x178] sm:$0xff] (%p647_p0) }
 0x225   : > { %660 = vmax.xlane.f32.xlu0 %v659_v20  ;;  %v683_v3 = vsel %vm3509_vm10, %v678_v56, -inf  ;;  %v684_v22 = vsel %vm3509_vm10, %v679_v11, -inf  ;;  %v685_v30 = vsel %vm3509_vm10, %v680_v31, -inf  ;;  %v1832_v35 = vsel %vm654_vm8, 1.0, %v2366_v21  ;;  %1097 = vxpose.xlu1.b32.start [1/16] (narrow) (%p647_p0), %v1907_v14, 8  ;;  %v1926_v57 = vld [vmem:[%s3469_s1 + $0x188] sm:$0xff] (%p647_p0) }
 0x226   : > { %v686_v2 = vmax.f32 %v682_v27, %v683_v3  ;;  %v687_v32 = vmax.f32 %v684_v22, %v685_v30  ;;  %vm3505_vm5 = vmmov (%p647_p0), 0   ;;  %v3534_v12 = vmov (%p647_p0), 0.0   ;;  %v1910_v56 = vld [vmem:[%s3469_s1 + $0x108] sm:$0xff] (%p647_p0)  ;;  %v1927_v11 = vld [vmem:[%s3469_s1 + $0x190] sm:$0xff] (%p647_p0)  ;;  %v1928_v27 = vld [vmem:[%s3469_s1 + $0x198] sm:$0xff] (%p647_p0) }
 0x227   :  { %2012 = vmatprep.mubr.msk.f32.mxu0 (%p647_p0), %vm3505_vm5, %v3534_v12  ;;  %v3535_v63 = vmov (%p647_p0), 0  ;;  %v1911_v31 = vld [vmem:[%s3469_s1 + $0x110] sm:$0xff] (%p647_p0)  ;;  %v1912_v3 = vld [vmem:[%s3469_s1 + $0x118] sm:$0xff] (%p647_p0)  ;;  %v1929_v22 = vld [vmem:[%s3469_s1 + $0x1a0] sm:$0xff] (%p647_p0)  ;;  %vm3504_vm15 = vcmask (%p647_p0), 1041408   ;;  %vm3503_vm9 = vcmask (%p647_p0), 1042432  }
 0x228   : > { %v688_v13 = vmax.f32 %v686_v2, %v687_v32  ;;  %v3536_v63 = vsel (%p647_p0), %vm2916_vm0, 4294967295, %v3535_v63  ;;  %v1913_v30 = vld [vmem:[%s3469_s1 + $0x120] sm:$0xff] (%p647_p0)  ;;  %v1930_v2 = vld [vmem:[%s3469_s1 + $0x1a8] sm:$0xff] (%p647_p0)  ;;  %vm3502_vm11 = vcmask (%p647_p0), 1043456  }
 0x229   :  { %v1914_v32 = vld [vmem:[%s3469_s1 + $0x128] sm:$0xff] (%p647_p0) }
 0x22a   : > { %v689_v25 = vrot.slane %v688_v13, 4  ;;  %v1918_v21 = vld [vmem:[%s3469_s1 + $0x148] sm:$0xff] (%p647_p0) }
 0x22b   :  { %v1922_v14 = vld [vmem:[%s3469_s1 + $0x168] sm:$0xff] (%p647_p0) }
 0x22c   : > { %v690_v4 = vmax.f32 %v688_v13, %v689_v25  ;;  %v1931_v13 = vld [vmem:[%s3469_s1 + $0x1b0] sm:$0xff] (%p647_p0) }
 0x22d   :  { %v1915_v25 = vld [vmem:[%s3469_s1 + $0x130] sm:$0xff] (%p647_p0) }
 0x22e   : > { %v691_v5 = vrot.slane %v690_v4, 2 }
 0x230   : > { %v692_v59 = vmax.f32 %v690_v4, %v691_v5  ;;  %v1932_v4 = vld [vmem:[%s3469_s1 + $0x1b8] sm:$0xff] (%p647_p0) }
 0x231   :  { %v1916_v5 = vld [vmem:[%s3469_s1 + $0x138] sm:$0xff] (%p647_p0) }
 0x232   : > { %v693_v48 = vrot.slane %v692_v59, 1 }
 0x234   : > { %v694_v51 = vmax.f32 %v692_v59, %v693_v48  ;;  %v1933_v59 = vld [vmem:[%s3469_s1 + $0x1c0] sm:$0xff] (%p647_p0) }
 0x235   :  { %v1917_v48 = vld [vmem:[%s3469_s1 + $0x140] sm:$0xff] (%p647_p0) }
 0x252   :  { %1129 = vxpose.xlu0.b32.start [1/14] (short) (narrow) (%p647_p0), %v1923_v58, 8  ;;  %v1921_v58 = vld [vmem:[%s3469_s1 + $0x160] sm:$0xff] (%p647_p0) }
 0x256   :  { %1130 = vxpose.xlu0.b32.cont [2/14] (short) (narrow) (%p647_p0), %v1924_v39, 8  ;;  %v3015_v39 = vrot.slane (%p647_p0), %v2452_v16, %v2746_v60  ;;  %v792_v16 = vcvt.s32.f32 (%p647_p0), %v2789_v36 }
 0x258   :  { %vm906_vm1 = vcmp.eq.s32.totalorder (%p647_p0), %v2415_v7, %v3015_v39  ;;  %vm907_vm2 = vcmp.eq.s32.totalorder (%p647_p0), %v2418_v8, %v3015_v39  ;;  %vm908_vm8 = vcmp.eq.s32.totalorder (%p647_p0), %v2423_v9, %v3015_v39  ;;  %vm909_vm4 = vcmp.eq.s32.totalorder (%p647_p0), %v2426_v10, %v3015_v39 }
 0x259   :  { %vm3021_vm3 = vmpackc.low (%p647_p0), %vm907_vm2, %vm906_vm1  ;;  %vm3501_vm1 = vcmask (%p647_p0), 1044480   ;;  %vm910_vm2 = vcmp.eq.s32.totalorder (%p647_p0), %v2459_v18, %v3015_v39 }
 0x25a   :  { %vm3038_vm7 = vmpackc.low (%p647_p0), %vm909_vm4, %vm908_vm8  ;;  %vm911_vm8 = vcmp.eq.s32.totalorder (%p647_p0), %v2468_v19, %v3015_v39 }
 0x25b   :  { %vm3056_vm4 = vmpackc.low (%p647_p0), %vm911_vm8, %vm910_vm2  ;;  %vm914_vm8 = vcmp.eq.s32.totalorder (%p647_p0), %v2512_v28, %v3015_v39 }
 0x2b2   : > { %v661_v1 = vpop.xlane.xlu0 %660 }
 0x2b3   : > { %v662_v0 = vrot.slane %v661_v1, 4 }
 0x2b5   : > { %v663_v15 = vmax.f32 %v661_v1, %v662_v0 }
 0x2b7   : > { %v664_v61 = vrot.slane %v663_v15, 2 }
 0x2b9   : > { %v665_v17 = vmax.f32 %v663_v15, %v664_v61  ;;  %v3530_v61 = vmov (%p647_p0), 0.0|0.0  }
 0x2ba   :  { %2126 = vmatprep.subr.bf16.mxu0 (%p647_p0), %v3530_v61 }
 0x2bb   : > { %v666_v44 = vrot.slane %v665_v17, 1 }
 0x2bd   : > { %v667_v47 = vmax.f32 %v665_v17, %v666_v44  ;;  %v3533_v17 = vmov (%p647_p0), 1.0|1.0   ;;  %v1925_v44 = vld [vmem:[%s3469_s1 + $0x180] sm:$0xff] (%p647_p0) }
 0x2be   :  { %2128 = vmatpush3.bf16.msk.msra.mxu0 (%p647_p0), %vm2897_vm13, %v3533_v17  ;;  %1131 = vxpose.xlu0.b32.cont [3/14] (short) (narrow) (%p647_p0), %v1925_v44, 8  ;;  %v794_v44 = vrot.slane (%p647_p0), %v2735_v55, 6  ;;  %v800_v55 = vrot.slane (%p647_p0), %v792_v16, 3 }
 0x2bf   : > { %2228 = vpush %v667_v47  ;;  %2129 = vmatprep.subr.bf16.mxu0 (%p647_p0), %v3530_v61  ;;  %v1909_v47 = vld [vmem:[%s3469_s1 + $0x100] sm:$0xff] (%p647_p0) }
 0x2c2   :  { %2131 = vmatpush3.bf16.msk.msra.mxu0 (%p647_p0), %vm2916_vm0, %v3533_v17  ;;  %1132 = vxpose.xlu0.b32.cont [4/14] (short) (narrow) (%p647_p0), %v1926_v57, 8  ;;  %v803_v57 = vsel (%p647_p0), %vm3504_vm15, %v2733_v52, %v794_v44 }
 0x2c3   :  { %2177 = vmatprep.subr.bf16.mxu0 (%p647_p0), %v3530_v61 }
 0x2c6   :  { %1133 = vxpose.xlu0.b32.cont [5/14] (short) (narrow) (%p647_p0), %v1927_v11, 8  ;;  %v805_v11 = vsel (%p647_p0), %vm3503_vm9, %v803_v57, %v794_v44  ;;  %vm915_vm9 = vcmp.eq.s32.totalorder (%p647_p0), %v2515_v29, %v3015_v39  ;;  %v3587_v44 = vld [vmem:[#allocation13_spill] sm:$0xff] (%p647_p0) }
 0x2c7   :  { %vm3082_vm15 = vmpackc.low (%p647_p0), %vm915_vm9, %vm914_vm8  ;;  %vm918_vm9 = vcmp.eq.s32.totalorder (%p647_p0), %v2558_v37, %v3015_v39  ;;  %vm919_vm8 = vcmp.eq.s32.totalorder (%p647_p0), %v2561_v38, %v3015_v39  ;;  %v3559_v37 = vld [vmem:[#allocation5_spill] sm:$0xff] (%p647_p0)  ;;  %v3560_v38 = vld [vmem:[#allocation6_spill] sm:$0xff] (%p647_p0) }
 0x2c8   :  { %vm3106_vm6 = vmpackc.low (%p647_p0), %vm919_vm8, %vm918_vm9  ;;  %vm922_vm9 = vcmp.eq.s32.totalorder (%p647_p0), %v2598_v45, %v3015_v39  ;;  %vm923_vm8 = vcmp.eq.s32.totalorder (%p647_p0), %v2601_v46, %v3015_v39  ;;  %v3564_v45 = vld [vmem:[#allocation8_spill] sm:$0xff] (%p647_p0)  ;;  %v3565_v46 = vmov (%p647_p0), 0 }
 0x2c9   :  { %vm3130_vm12 = vmpackc.low (%p647_p0), %vm923_vm8, %vm922_vm9  ;;  %vm926_vm9 = vcmp.eq.s32.totalorder (%p647_p0), %v2638_v53, %v3015_v39  ;;  %vm927_vm8 = vcmp.eq.s32.totalorder (%p647_p0), %v2641_v54, %v3015_v39  ;;  %v3571_v54 = vld [vmem:[#allocation11_spill] sm:$0xff] (%p647_p0) }
 0x2ca   :  { %1134 = vxpose.xlu0.b32.cont [6/14] (short) (narrow) (%p647_p0), %v1928_v27, 8  ;;  %vm3154_vm0 = vmpackc.low (%p647_p0), %vm927_vm8, %vm926_vm9  ;;  %vm931_vm8 = vcmp.eq.s32.totalorder (%p647_p0), %v3564_v45, %v3015_v39 }
 0x2ce   :  { %1135 = vxpose.xlu0.b32.cont [7/14] (short) (narrow) (%p647_p0), %v1929_v22, 8  ;;  %v3573_v22 = vmov (%p647_p0), 0 }
 0x2d2   :  { %1136 = vxpose.xlu0.b32.cont [8/14] (short) (narrow) (%p647_p0), %v1930_v2, 8 }
 0x2d6   :  { %1137 = vxpose.xlu0.b32.cont [9/14] (short) (narrow) (%p647_p0), %v1931_v13, 8 }
 0x2da   :  { %1138 = vxpose.xlu0.b32.cont [10/14] (short) (narrow) (%p647_p0), %v1932_v4, 8 }
 0x2de   :  { %1139 = vxpose.xlu0.b32.cont [11/14] (short) (narrow) (%p647_p0), %v1933_v59, 8  ;;  %v3576_v59 = vld [vmem:[#allocation2_spill] sm:$0xff] (%p647_p0) }
 0x2f0   : > { %s2229_s6 = spop %2228 }
 0x2f1   : > { %s669_s7 = ssub.f32 1.0, %s2229_s6 }
 0x2f3   : > { %v670_v20 = vstv %s669_s7  ;;  %649 = sbr.rel (!%p647_p0) target bundleno = 545 (0x221), region = 56 }
 0x2f4   : > { %v671_v1 = vmul.f32 %v1832_v35, %v670_v20  ;;  %v695_v0 = vmul.f32 %v694_v51, %v670_v20  ;;  %v1934_v51 = vld [vmem:[%s3469_s1 + $0x1c8] sm:$0xff] (%p647_p0)  ;;  %v1935_v35 = vld [vmem:[%s3469_s1 + $0x1d0] sm:$0xff] (%p647_p0) }
 0x2f5   :  { %1140 = vxpose.xlu0.b32.cont [12/14] (short) (narrow) (%p647_p0), %v1934_v51, 8  ;;  %v1919_v20 = vld [vmem:[%s3469_s1 + $0x150] sm:$0xff] (%p647_p0) }
 0x2f6   : > { %v2884_v26 = vadd.f32 %v2345_v26, %v671_v1   ;;  %v696_v62 = vmax.f32 %v2341_v62, %v695_v0   ;;  %v1936_v1 = vld [vmem:[%s3469_s1 + $0x1d8] sm:$0xff] (%p647_p0) }
 0x2f7   :  { %v1908_v62 = vld [vmem:[%s3469_s1 + $0xf8] sm:$0xff] (%p647_p0) }
 0x2f8   : > { %v3529_v15 = vmov %v2884_v26  ;;  %1098 = vxpose.xlu1.b32.cont [2/16] (narrow) (%p647_p0), %v1908_v62, 8  ;;  %v1920_v0 = vld [vmem:[%s3469_s1 + $0x158] sm:$0xff] (%p647_p0) }
 0x2f9   : > { %v2344_v26 = vmov %v3529_v15   ;;  %2013 = vmatmul.mubr.msk.f32.vlgmr.msra.gmra.mrb[2].mxu0 (%p647_p0), %vm3509_vm10, %v3529_v15  ;;  %1141 = vxpose.xlu0.b32.cont [13/14] (short) (narrow) (%p647_p0), %v1935_v35, 8 }
 0x2fa   :  { %v3531_v26 = vmov 0  ;;  %2179 = vmatpush1.bf16.msk.msra.mxu0 %vm3021_vm3, %v3533_v17 }
 0x2fb   :  { %v3532_v26 = vsel %vm2897_vm13, 4294967295, %v3531_v26  ;;  %2180 = vmatprep.subr.bf16.mxu0 %v3530_v61 }
 0x2fc   :  { %1099 = vxpose.xlu1.b32.cont [3/16] (narrow) %v1909_v47, 8  ;;  %v797_v47 = vrot.slane %v2799_v40, 4 }
 0x2fd   :  { %1142 = vxpose.xlu0.b32.end [14/14] (short) (narrow) %v1936_v1, 8 }
 0x2fe   :  { %2182 = vmatpush1.bf16.msk.msra.mxu0 %vm3038_vm7, %v3533_v17 }
 0x2ff   :  { %2183 = vmatprep.subr.bf16.mxu0 %v3530_v61 }
 0x300   :  { %1100 = vxpose.xlu1.b32.cont [4/16] (narrow) %v1910_v56, 8 }
 0x302   :  { %2185 = vmatpush1.bf16.msk.msra.mxu0 %vm3056_vm4, %v3533_v17 }
 0x303   :  { %2186 = vmatprep.subr.bf16.mxu0 %v3530_v61 }
 0x304   :  { %1101 = vxpose.xlu1.b32.cont [5/16] (narrow) %v1911_v31, 8  ;;  %v807_v31 = vsel %vm3502_vm11, %v805_v11, %v797_v47  ;;  %vm913_vm11 = vcmp.eq.s32.totalorder %v2490_v24, %v3015_v39 }
 0x305   :  { %v809_v52 = vsel %vm3501_vm1, %v807_v31, %v800_v55  ;;  %vm912_vm1 = vcmp.eq.s32.totalorder %v2487_v23, %v3015_v39 }
 0x306   :  { %2015 = vmatprep.subr.msk.mxu1 %vm3509_vm10, %v809_v52  ;;  %vm3070_vm2 = vmpackc.low %vm913_vm11, %vm912_vm1  ;;  %vm916_vm11 = vcmp.eq.s32.totalorder %v2536_v33, %v3015_v39  ;;  %vm917_vm1 = vcmp.eq.s32.totalorder %v2539_v34, %v3015_v39  ;;  %v3557_v34 = vmov 0 }
 0x307   :  { %2016 = vmatpush3.xpose.msk.msra.mxu1 %vm3509_vm10, %v809_v52  ;;  %2188 = vmatpush1.bf16.msk.msra.mxu0 %vm3070_vm2, %v3533_v17  ;;  %vm3094_vm5 = vmpackc.low %vm917_vm1, %vm916_vm11  ;;  %vm920_vm11 = vcmp.eq.s32.totalorder %v2578_v41, %v3015_v39  ;;  %vm921_vm1 = vcmp.eq.s32.totalorder %v2581_v42, %v3015_v39  ;;  %v3558_v34 = vsel %vm3154_vm0, 4294967295, %v3557_v34  ;;  %v3561_v41 = vmov 0  ;;  %v3563_v42 = vld [vmem:[#allocation7_spill] sm:$0xff] }
 0x308   :  { %1102 = vxpose.xlu1.b32.cont [6/16] (narrow) %v1912_v3, 8  ;;  %2132 = vmatprep.subr.bf16.mxu1 %v3530_v61  ;;  %vm3118_vm14 = vmpackc.low %vm921_vm1, %vm920_vm11  ;;  %vm924_vm11 = vcmp.eq.s32.totalorder %v2618_v49, %v3015_v39  ;;  %vm925_vm1 = vcmp.eq.s32.totalorder %v2621_v50, %v3015_v39  ;;  %vm930_vm9 = vcmp.eq.s32.totalorder %v3563_v42, %v3015_v39  ;;  %v3567_v49 = vld [vmem:[#allocation9_spill] sm:$0xff]  ;;  %v3568_v50 = vld [vmem:[#allocation10_spill] sm:$0xff] }
 0x309   :  { %2189 = vmatprep.subr.bf16.mxu0 %v3530_v61  ;;  %vm3142_vm10 = vmpackc.low %vm925_vm1, %vm924_vm11  ;;  %vm928_vm11 = vcmp.eq.s32.totalorder %v3559_v37, %v3015_v39  ;;  %vm929_vm1 = vcmp.eq.s32.totalorder %v3560_v38, %v3015_v39  ;;  %v3572_v3 = vld [vmem:[#allocation12_spill] sm:$0xff] }
 0x30a   :  { %vm3166_vm13 = vmpackc.low %vm929_vm1, %vm928_vm11  ;;  %vm932_vm11 = vcmp.eq.s32.totalorder %v3567_v49, %v3015_v39  ;;  %vm933_vm1 = vcmp.eq.s32.totalorder %v3568_v50, %v3015_v39 }
 0x30b   :  { %2191 = vmatpush1.bf16.msk.msra.mxu0 %vm3082_vm15, %v3533_v17  ;;  %v3562_v41 = vsel %vm3166_vm13, 4294967295, %v3561_v41 }
 0x30c   :  { %1103 = vxpose.xlu1.b32.cont [7/16] (narrow) %v1913_v30, 8  ;;  %2192 = vmatprep.subr.bf16.mxu0 %v3530_v61 }
 0x30f   :  { %2194 = vmatpush1.bf16.msk.msra.mxu0 %vm3094_vm5, %v3533_v17 }
 0x310   :  { %1104 = vxpose.xlu1.b32.cont [8/16] (narrow) %v1914_v32, 8  ;;  %2195 = vmatprep.subr.bf16.mxu0 %v3530_v61 }
 0x313   :  { %2197 = vmatpush1.bf16.msk.msra.mxu0 %vm3106_vm6, %v3533_v17 }
 0x314   :  { %1105 = vxpose.xlu1.b32.cont [9/16] (narrow) %v1915_v25, 8  ;;  %2198 = vmatprep.subr.bf16.mxu0 %v3530_v61 }
 0x317   :  { %2200 = vmatpush1.bf16.msk.msra.mxu0 %vm3118_vm14, %v3533_v17 }
 0x318   :  { %1106 = vxpose.xlu1.b32.cont [10/16] (narrow) %v1916_v5, 8  ;;  %2201 = vmatprep.subr.bf16.mxu0 %v3530_v61 }
 0x31b   :  { %2203 = vmatpush1.bf16.msk.msra.mxu0 %vm3130_vm12, %v3533_v17 }
 0x31c   :  { %1107 = vxpose.xlu1.b32.cont [11/16] (narrow) %v1917_v48, 8  ;;  %2204 = vmatprep.subr.bf16.mxu0 %v3530_v61 }
 0x31f   :  { %2206 = vmatpush1.bf16.msk.msra.mxu0 %vm3142_vm10, %v3533_v17 }
 0x320   :  { %1108 = vxpose.xlu1.b32.cont [12/16] (narrow) %v1918_v21, 8  ;;  %2207 = vmatprep.subr.bf16.mxu0 %v3530_v61 }
 0x323   :  { %2209 = vmatpush1.bf16.msk.msra.mxu0 %vm3154_vm0, %v3533_v17  ;;  %vm3178_vm0 = vmpackc.low %vm931_vm8, %vm930_vm9  ;;  %vm934_vm9 = vcmp.eq.s32.totalorder %v3571_v54, %v3015_v39  ;;  %vm935_vm8 = vcmp.eq.s32.totalorder %v3572_v3, %v3015_v39 }
 0x324   :  { %1109 = vxpose.xlu1.b32.cont [13/16] (narrow) %v1919_v20, 8  ;;  %2210 = vmatprep.subr.bf16.mxu0 %v3530_v61  ;;  %v3566_v46 = vsel %vm3178_vm0, 4294967295, %v3565_v46 }
 0x327   :  { %2212 = vmatpush1.bf16.msk.msra.mxu0 %vm3166_vm13, %v3533_v17  ;;  %vm3190_vm13 = vmpackc.low %vm933_vm1, %vm932_vm11  ;;  %vm3575_vm11 = vcmask 916480  }
 0x328   :  { %1110 = vxpose.xlu1.b32.cont [14/16] (narrow) %v1920_v0, 8  ;;  %2213 = vmatprep.subr.bf16.mxu0 %v3530_v61  ;;  %v3580_v0 = vld [vmem:[#allocation4_spill] sm:$0xff] }
 0x32b   :  { %2215 = vmatpush1.bf16.msk.msra.mxu0 %vm3178_vm0, %v3533_v17  ;;  %vm3202_vm0 = vmpackc.low %vm935_vm8, %vm934_vm9  ;;  %vm3577_vm8 = vcmask 261120  }
 0x32c   :  { %1111 = vxpose.xlu1.b32.cont [15/16] (narrow) %v1921_v58, 8  ;;  %2216 = vmatprep.subr.bf16.mxu0 %v3530_v61  ;;  %v3574_v22 = vsel %vm3202_vm0, 4294967295, %v3573_v22 }
 0x32f   :  { %2218 = vmatpush1.bf16.msk.msra.mxu0 %vm3190_vm13, %v3533_v17 }
 0x330   :  { %1112 = vxpose.xlu1.b32.end [16/16] (narrow) %v1922_v14, 8  ;;  %2219 = vmatprep.subr.bf16.mxu0 %v3530_v61 }
 0x333   :  { %2221 = vmatpush1.bf16.msk.msra.mxu0 %vm3202_vm0, %v3533_v17  ;;  %vm3579_vm0 = vmmov %vm3577_vm8 }
 0x349   :  { %v1145_v30 = vpop.trf.xlu0 }
 0x34a   :  { %1967 = vmatprep.mubr.msk.f32.mxu0 %vm3575_vm11, %v1145_v30  ;;  %vm3578_vm11 = vmmov %vm3577_vm8 }
 0x374   :  { %v1113_v2 = vpop.trf.xlu1 }
 0x375   :  { %1229 = vmatmul.mubr.f32.vlgmr.msra.gmra.mrb[4].mxu0 %v1113_v2 }
 0x3cc   :  { %v767_v32 = vpop.f32.mrb[2].mxu0 }
 0x3cd   :  { %v2230_v13 = vtrunc.f32 %v767_v32  ;;  %v2014_v25 = vpop.f32.mrb[3].mxu0  ;;  %v3341_v32 = vrot.slane %v2789_v36, %v2746_v60 }
 0x3cf   :  { %v2231_v4 = vcvt.f32.s32 %v2230_v13 }
 0x3d1   :  { %v1838_v5 = vadd.s32 4294967295, %v2231_v4 }
 0x3d3   :  { %v776_v48 = vrot.slane %v1838_v5, %v3576_v59 }
 0x3d5   :  { %vm778_vm1 = vcmp.eq.s32.totalorder %v2418_v8, %v776_v48  ;;  %vm777_vm9 = vcmp.eq.s32.totalorder %v2415_v7, %v776_v48 }
 0x3d6   :  { %v1839_v51 = vsel %vm777_vm9, 1.0, %v3534_v12  ;;  %v1840_v21 = vsel %vm778_vm1, 1.0, %v3534_v12  ;;  %vm3581_vm9 = vcmask 916480  }
 0x3d7   :  { %v783_v35 = vmul.f32 %v1839_v51, %v3529_v15  ;;  %v3217_v20 = vmul.f32 %v1840_v21, %v3529_v15  ;;  %v3586_v15 = vld [vmem:[#allocation3_spill] sm:$0xff] }
 0x3d9   :  { %2017 = vmatprep.mubr.msk.f32.mxu1 %vm3577_vm8, %v783_v35  ;;  %v785_v1 = vsel %vm3578_vm11, %v783_v35, 0.0 }
 0x3da   :  { %2018 = vmatmul.mubr.msk.f32.vlgmr.msra.gmra.mrb[2].mxu1 %vm3579_vm0, %v3217_v20  ;;  %786 = vadd.xlane.f32.xlu0 %v785_v1 }
 0x3db   :  { %2134 = vmatpush1.bf16.msk.msra.mxu1 %vm3021_vm3, %v3533_v17  ;;  %1906 = vmatprep.mubr.msk.f32.mxu1 %vm3581_vm9, %v3580_v0  ;;  %vm3589_vm9 = vcmp.ne.s32.totalorder %v2423_v9, %v2413_v6 }
 0x3dc   :  { %2135 = vmatprep.subr.bf16.mxu1 %v3530_v61 }
 0x3df   :  { %2137 = vmatpush1.bf16.msk.msra.mxu1 %vm3038_vm7, %v3533_v17  ;;  %vm3588_vm7 = vcmp.ne.s32.totalorder %v2415_v7, %v2413_v6 }
 0x3e0   :  { %2138 = vmatprep.subr.bf16.mxu1 %v3530_v61 }
 0x3e3   :  { %2140 = vmatpush1.bf16.msk.msra.mxu1 %vm3056_vm4, %v3533_v17 }
 0x3e4   :  { %2141 = vmatprep.subr.bf16.mxu1 %v3530_v61 }
 0x3e7   :  { %2143 = vmatpush1.bf16.msk.msra.mxu1 %vm3070_vm2, %v3533_v17 }
 0x3e8   :  { %2144 = vmatprep.subr.bf16.mxu1 %v3530_v61 }
 0x3eb   :  { %2146 = vmatpush1.bf16.msk.msra.mxu1 %vm3082_vm15, %v3533_v17 }
 0x3ec   :  { %2147 = vmatprep.subr.bf16.mxu1 %v3530_v61 }
 0x3ef   :  { %2149 = vmatpush1.bf16.msk.msra.mxu1 %vm3094_vm5, %v3533_v17  ;;  %vm898_vm5 = vcmask 48128  }
 0x3f0   :  { %2150 = vmatprep.subr.bf16.mxu1 %v3530_v61 }
 0x3f3   :  { %2152 = vmatpush1.bf16.msk.msra.mxu1 %vm3106_vm6, %v3533_v17  ;;  %vm3582_vm6 = vnez %v3558_v34 }
 0x3f4   :  { %2153 = vmatprep.subr.bf16.mxu1 %v3530_v61 }
 0x3f7   :  { %2155 = vmatpush1.bf16.msk.msra.mxu1 %vm3118_vm14, %v3533_v17  ;;  %vm3583_vm14 = vnez %v3562_v41 }
 0x3f8   :  { %2156 = vmatprep.subr.bf16.mxu1 %v3530_v61 }
 0x3fb   :  { %2158 = vmatpush1.bf16.msk.msra.mxu1 %vm3130_vm12, %v3533_v17  ;;  %vm3584_vm12 = vnez %v3566_v46 }
 0x3fc   :  { %2159 = vmatprep.subr.bf16.mxu1 %v3530_v61 }
 0x3ff   :  { %2161 = vmatpush1.bf16.msk.msra.mxu1 %vm3142_vm10, %v3533_v17  ;;  %vm3585_vm10 = vnez %v3574_v22 }
 0x400   :  { %2162 = vmatprep.subr.bf16.mxu1 %v3530_v61 }
 0x403   :  { %2164 = vmatpush1.bf16.msk.msra.mxu1 %vm3582_vm6, %v3533_v17 }
 0x404   :  { %2165 = vmatprep.subr.bf16.mxu1 %v3530_v61 }
 0x407   :  { %2167 = vmatpush1.bf16.msk.msra.mxu1 %vm3583_vm14, %v3533_v17 }
 0x408   :  { %2168 = vmatprep.subr.bf16.mxu1 %v3530_v61 }
 0x40b   :  { %2170 = vmatpush1.bf16.msk.msra.mxu1 %vm3584_vm12, %v3533_v17 }
 0x40c   :  { %2171 = vmatprep.subr.bf16.mxu1 %v3530_v61 }
 0x40f   :  { %2173 = vmatpush1.bf16.msk.msra.mxu1 %vm3190_vm13, %v3533_v17  ;;  %vm788_vm13 = vcmask 254976  }
 0x410   :  { %2174 = vmatprep.subr.bf16.mxu1 %v3530_v61  ;;  %v789_v2 = vsel %vm788_vm13, %v3217_v20, 0.0 }
 0x413   :  { %2176 = vmatpush1.bf16.msk.msra.mxu1 %vm3585_vm10, %v3533_v17  ;;  %vm3590_vm10 = vcmp.ne.s32.totalorder %v2418_v8, %v2413_v6 }
 0x416   :  { %1061 = vmatmul.mubr.f32.vlgmr.msra.gmra.mrb[4].mxu1 %v3586_v15 }
 0x448   :  { %v1230_v58 = vpop.f32.mrb[4].mxu0 }
 0x449   :  { %v1232_v14 = vpop.f32.mrb[5].mxu0  ;;  %v1234_v61 = vmin.f32 %v1230_v58, 4.1351666 }
 0x44b   :  { %v1249_v17 = vmul.f32 1.442695, %v1234_v61 }
 0x44d   :  { %2305 = vpow2.f32 %v1249_v17 }
 0x457   :  { %v2306_v27 = vpop.eup %2305 }
 0x467   :  { %v787_v39 = vpop.xlane.xlu0 %786 }
 0x468   :  { %v1841_v62 = vadd.f32 -1.0, %v787_v39 }
 0x46a   :  { %v812_v47 = vmul.f32 %v1841_v62, %v3587_v44 }
 0x4ad   :  { %v3286_v57 = vpop.f32.mrb[2].mxu1 }
 0x4ae   :  { %v889_v56 = vpop.f32.mrb[3].mxu1 }
 0x4af   :  { %v890_v55 = vadd.f32 %v889_v56, %v812_v47 }
 0x4b1   :  { %899 = vst.msk [vmem:[%s3470_s5] sm:$0xff] %vm898_vm5, %v890_v55 }
 0x4e9   :  { %v1062_v11 = vpop.f32.mrb[4].mxu1 }
 0x4ea   :  { %v1236_v31 = vrot.slane %v1062_v11, 6  ;;  %v1064_v52 = vpop.f32.mrb[5].mxu1 }
 0x4ec   :  { %v1238_v18 = vsub.f32 %v1062_v11, %v1236_v31 }
 0x4ee   :  { %v1239_v19 = vmul.f32 0.5, %v1238_v18  ;;  %v1245_v23 = vrot.slane %v1238_v18, 2  ;;  %v1251_v24 = vmul.f32 %v2306_v27, %v1238_v18 }
 0x4f0   :  { %v1241_v28 = vrot.slane %v1239_v19, 2  ;;  %v1247_v29 = vmul.f32 %v1245_v23, %v1230_v58  ;;  %v1252_v33 = vmul.f32 0.5, %v1251_v24 }
 0x4f2   :  { %v1243_v34 = vadd.f32 %v1241_v28, %v1062_v11  ;;  %v1254_v38 = vrot.slane %v1252_v33, 2 }
 0x4f4   :  { %v1248_v37 = vadd.f32 %v1247_v29, %v1243_v34 }
 0x4f6   :  { %v3292_v41 = vsub.f32 %v1248_v37, %v1254_v38  ;;  %v3294_v42 = vadd.f32 %v1254_v38, %v1248_v37 }
 0x4f8   :  { %v1258_v45 = vsub.f32 %v3294_v42, %v3292_v41  ;;  %v3300_v46 = vrot.slane %v3292_v41, %v3576_v59  ;;  %v3306_v50 = vrot.slane %v3294_v42, %v3576_v59  ;;  %v3312_v54 = vrot.slane %v3294_v42, %v2746_v60 }
 0x4f9   :  { %v3318_v22 = vrot.slane %v3292_v41, %v2746_v60 }
 0x4fa   :  { %1281 = vbcast.lane.b32.xlu0 %v3300_v46, 280  ;;  %1269 = vbcast.lane.b32.xlu1 %v3300_v46, 256  ;;  %v1259_v49 = vmax.f32 %v1258_v45, 0.0 }
 0x4fc   :  { %v1261_v53 = vrot.slane %v1259_v49, 1 }
 0x4fe   :  { %1323 = vbcast.lane.b32.xlu0 %v3306_v50, 272  ;;  %1273 = vbcast.lane.b32.xlu1 %v3300_v46, 264  ;;  %v1263_v3 = vmul.f32 %v1261_v53, %v1259_v49 }
 0x500   :  { %v3323_v30 = vrot.slane %v1263_v3, %v3576_v59 }
 0x502   :  { %1338 = vbcast.lane.b32.xlu0 %v3312_v54, 256  ;;  %1277 = vbcast.lane.b32.xlu1 %v3300_v46, 272 }
 0x506   :  { %1346 = vbcast.lane.b32.xlu0 %v3312_v54, 272  ;;  %1292 = vbcast.lane.b32.xlu1 %v3318_v22, 256 }
 0x50a   :  { %1296 = vbcast.lane.b32.xlu1 %v3318_v22, 264  ;;  %1381 = vbcast.lane.b32.xlu0 %v3323_v30, 256 }
 0x50e   :  { %1300 = vbcast.lane.b32.xlu1 %v3318_v22, 272  ;;  %1389 = vbcast.lane.b32.xlu0 %v3323_v30, 272 }
 0x512   :  { %1304 = vbcast.lane.b32.xlu1 %v3318_v22, 280 }
 0x516   :  { %1315 = vbcast.lane.b32.xlu1 %v3306_v50, 256 }
 0x51a   :  { %1319 = vbcast.lane.b32.xlu1 %v3306_v50, 264 }
 0x51e   :  { %1327 = vbcast.lane.b32.xlu1 %v3306_v50, 280 }
 0x522   :  { %1342 = vbcast.lane.b32.xlu1 %v3312_v54, 264 }
 0x526   :  { %1350 = vbcast.lane.b32.xlu1 %v3312_v54, 280 }
 0x52a   :  { %1385 = vbcast.lane.b32.xlu1 %v3323_v30, 264 }
 0x52d   :  { %790 = vadd.xlane.f32.xlu0 %v789_v2 }
 0x52e   :  { %1393 = vbcast.lane.b32.xlu1 %v3323_v30, 280 }
 0x532   :  { %1420 = vbcast.lane.b32.xlu1 %v3341_v32, 256 }
 0x536   :  { %1424 = vbcast.lane.b32.xlu1 %v3341_v32, 264 }
 0x53a   :  { %1428 = vbcast.lane.b32.xlu1 %v3341_v32, 272 }
 0x53e   :  { %1432 = vbcast.lane.b32.xlu1 %v3341_v32, 280 }
 0x56c   :  { %v1270_v13 = vpop.permute.xlu1 %1269  ;;  %v1282_v4 = vpop.permute.xlu0 %1281 }
 0x56d   :  { %v1283_v56 = vmax.f32 %v1270_v13, %v3300_v46 }
 0x570   :  { %v1274_v25 = vpop.permute.xlu1 %1273  ;;  %v1324_v59 = vpop.permute.xlu0 %1323 }
 0x571   :  { %v1331_v39 = vmin.f32 %v1324_v59, %v3306_v50  ;;  %v1284_v2 = vmax.f32 %v1274_v25, %v3300_v46 }
 0x574   :  { %v1278_v5 = vpop.permute.xlu1 %1277  ;;  %v1339_v21 = vpop.permute.xlu0 %1338 }
 0x575   :  { %v1285_v15 = vmax.f32 %v1278_v5, %v3300_v46  ;;  %v1352_v14 = vmin.f32 %v1339_v21, %v3312_v54 }
 0x577   :  { %v1358_v11 = vsub.f32 %v1331_v39, %v1285_v15 }
 0x578   :  { %v1293_v48 = vpop.permute.xlu1 %1292  ;;  %v1347_v20 = vpop.permute.xlu0 %1346 }
 0x579   :  { %v1306_v0 = vmax.f32 %v1293_v48, %v3318_v22  ;;  %v1354_v58 = vmin.f32 %v1347_v20, %v3312_v54  ;;  %v1362_v23 = vmax.f32 %v1358_v11, 0.0 }
 0x57b   :  { %v1364_v55 = vsub.f32 %v1352_v14, %v1306_v0 }
 0x57c   :  { %v1297_v51 = vpop.permute.xlu1 %1296  ;;  %v1382_v61 = vpop.permute.xlu0 %1381 }
 0x57d   :  { %v1368_v18 = vmax.f32 %v1364_v55, 0.0  ;;  %v1395_v24 = vadd.f32 %v1382_v61, %v3323_v30  ;;  %v1307_v13 = vmax.f32 %v1297_v51, %v3318_v22 }
 0x580   :  { %v1301_v35 = vpop.permute.xlu1 %1300  ;;  %v1390_v28 = vpop.permute.xlu0 %1389 }
 0x581   :  { %v1308_v60 = vmax.f32 %v1301_v35, %v3318_v22  ;;  %v1397_v38 = vadd.f32 %v1390_v28, %v3323_v30 }
 0x583   :  { %v1366_v62 = vsub.f32 %v1354_v58, %v1308_v60  ;;  %v1286_v60 = vmax.f32 %v1282_v4, %v3300_v46 }
 0x584   :  { %v1305_v1 = vpop.permute.xlu1 %1304 }
 0x585   :  { %v1370_v52 = vmax.f32 %v1366_v62, 0.0  ;;  %v1309_v0 = vmax.f32 %v1305_v1, %v3318_v22 }
 0x587   :  { %v1374_v33 = vmul.f32 %v1370_v52, %v1362_v23 }
 0x588   :  { %v1316_v47 = vpop.permute.xlu1 %1315 }
 0x589   :  { %v1329_v17 = vmin.f32 %v1316_v47, %v3306_v50  ;;  %v1401_v53 = vsub.f32 %v1397_v38, %v1374_v33 }
 0x58b   :  { %v1356_v31 = vsub.f32 %v1329_v17, %v1283_v56  ;;  %v1405_v35 = vmax.f32 %v1401_v53, 1e-06 }
 0x58c   :  { %v1320_v27 = vpop.permute.xlu1 %1319 }
 0x58d   :  { %v1360_v19 = vmax.f32 %v1356_v31, 0.0  ;;  %v1330_v45 = vmin.f32 %v1320_v27, %v3306_v50 }
 0x58f   :  { %v1372_v29 = vmul.f32 %v1368_v18, %v1360_v19  ;;  %v1357_v59 = vsub.f32 %v1330_v45, %v1284_v2  ;;  %v2355_v2 = vmov 0.0  }
 0x590   :  { %v1328_v34 = vpop.permute.xlu1 %1327 }
 0x591   :  { %v1399_v37 = vsub.f32 %v1395_v24, %v1372_v29  ;;  %v1332_v48 = vmin.f32 %v1328_v34, %v3306_v50  ;;  %v1361_v14 = vmax.f32 %v1357_v59, 0.0 }
 0x593   :  { %v1403_v49 = vmax.f32 %v1399_v37, 1e-06  ;;  %v1359_v25 = vsub.f32 %v1332_v48, %v1286_v60 }
 0x594   :  { %v1343_v3 = vpop.permute.xlu1 %1342 }
 0x595   :  { %v1353_v5 = vmin.f32 %v1343_v3, %v3312_v54  ;;  %2307 = vrcp.f32 %v1403_v49  ;;  %v1363_v55 = vmax.f32 %v1359_v25, 0.0 }
 0x596   :  { %2309 = vrcp.f32 %v1405_v35 }
 0x597   :  { %v1365_v21 = vsub.f32 %v1353_v5, %v1307_v13 }
 0x598   :  { %v1351_v20 = vpop.permute.xlu1 %1350 }
 0x599   :  { %v1369_v15 = vmax.f32 %v1365_v21, 0.0  ;;  %v1355_v58 = vmin.f32 %v1351_v20, %v3312_v54 }
 0x59b   :  { %v1367_v39 = vsub.f32 %v1355_v58, %v1309_v0  ;;  %v1373_v47 = vmul.f32 %v1369_v15, %v1361_v14 }
 0x59c   :  { %v1386_v51 = vpop.permute.xlu1 %1385 }
 0x59d   :  { %v1371_v62 = vmax.f32 %v1367_v39, 0.0  ;;  %v1396_v56 = vadd.f32 %v1386_v51, %v3323_v30 }
 0x59f   :  { %v2308_v50 = vpop.eup %2307  ;;  %v1400_v61 = vsub.f32 %v1396_v56, %v1373_v47  ;;  %v1375_v46 = vmul.f32 %v1371_v62, %v1363_v55 }
 0x5a0   :  { %v1394_v17 = vpop.permute.xlu1 %1393  ;;  %v1408_v4 = vmul.f32 %v2308_v50, %v1372_v29  ;;  %v2310_v52 = vpop.eup %2309 }
 0x5a1   :  { %v1404_v11 = vmax.f32 %v1400_v61, 1e-06  ;;  %v1398_v22 = vadd.f32 %v1394_v17, %v3323_v30  ;;  %v1412_v30 = vmul.f32 %v2310_v52, %v1374_v33 }
 0x5a2   :  { %vm1438_vm3 = vcmp.gt.f32.partialorder %v1408_v4, 0.5 }
 0x5a3   :  { %2311 = vrcp.f32 %v1404_v11  ;;  %v1402_v54 = vsub.f32 %v1398_v22, %v1375_v46  ;;  %vm1440_vm1 = vcmp.gt.f32.partialorder %v1412_v30, 0.5 }
 0x5a4   :  { %v1421_v1 = vpop.permute.xlu1 %1420 }
 0x5a5   :  { %v1406_v31 = vmax.f32 %v1402_v54, 1e-06  ;;  %vm1434_vm0 = vcmp.eq.s32.totalorder %v1421_v1, %v3341_v32 }
 0x5a6   :  { %vm1442_vm15 = vmand %vm1438_vm3, %vm1434_vm0 }
 0x5a7   :  { %2313 = vrcp.f32 %v1406_v31  ;;  %vm1446_vm4 = vmand %vm1442_vm15, %vm3588_vm7 }
 0x5a8   :  { %v3372_v27 = vsel %vm1446_vm4, 1.0, %v3534_v12  ;;  %v1425_v18 = vpop.permute.xlu1 %1424  ;;  %vm3591_vm4 = vcmp.ne.s32.totalorder %v2426_v10, %v2413_v6 }
 0x5a9   :  { %vm1435_vm8 = vcmp.eq.s32.totalorder %v1425_v18, %v3341_v32 }
 0x5ac   :  { %v1429_v19 = vpop.permute.xlu1 %1428 }
 0x5ad   :  { %v2312_v23 = vpop.eup %2311  ;;  %vm1436_vm2 = vcmp.eq.s32.totalorder %v1429_v19, %v3341_v32 }
 0x5ae   :  { %v1410_v24 = vmul.f32 %v2312_v23, %v1373_v47  ;;  %vm1444_vm11 = vmand %vm1440_vm1, %vm1436_vm2  ;;  %vm900_vm1 = vcmask 41984  }
 0x5af   :  { %vm1448_vm6 = vmand %vm1444_vm11, %vm3589_vm9 }
 0x5b0   :  { %vm1439_vm14 = vcmp.gt.f32.partialorder %v1410_v24, 0.5  ;;  %v3380_v28 = vsel %vm1448_vm6, 1.0, %v3534_v12  ;;  %v1433_v29 = vpop.permute.xlu1 %1432 }
 0x5b1   :  { %v2314_v34 = vpop.eup %2313  ;;  %vm1443_vm12 = vmand %vm1439_vm14, %vm1435_vm8  ;;  %vm1437_vm3 = vcmp.eq.s32.totalorder %v1433_v29, %v3341_v32  ;;  %v2351_v32 = vmov %v2805_v43  }
 0x5b2   :  { %vm1447_vm0 = vmand %vm1443_vm12, %vm3590_vm10  ;;  %v1414_v33 = vmul.f32 %v2314_v34, %v1375_v46 }
 0x5b3   :  { %v3387_v37 = vsel %vm1447_vm0, 1.0, %v3534_v12 }
 0x5b4   :  { %vm1441_vm15 = vcmp.gt.f32.partialorder %v1414_v33, 0.5 }
 0x5b5   :  { %vm1445_vm7 = vmand %vm1441_vm15, %vm1437_vm3 }
 0x5b6   :  { %vm1449_vm2 = vmand %vm1445_vm7, %vm3591_vm4 }
 0x5b7   :  { %v3393_v38 = vsel %vm1449_vm2, 1.0, %v3534_v12 }
 0x5ba   :  { %v791_v45 = vpop.xlane.xlu0 %790 }
 0x5bb   :  { %v1842_v49 = vadd.f32 -1.0, %v791_v45 }
 0x5bd   :  { %v813_v53 = vmul.f32 %v1842_v49, %v3587_v44 }
 0x5bf   :  { %v895_v3 = vadd.f32 %v3286_v57, %v813_v53 }
 0x5c1   :  { %901 = vst.msk [vmem:[%s3470_s5 + $0x8] sm:$0x3] %vm900_vm1, %v895_v3 }
 0x5c2 LB: > { %v1466_v12 = vstv %s2361_s12  ;;  %vm1471_vm8 = vcmask 254977   ;;  %vm3592_vm10 = vcmask 261120   ;;  %v2368_v46 = vmov 0.0   ;;  %s1463_s12 = sadd.s32 1, %s2361_s12   ;;  %s2361_s12 = sphi %s3402_s12, %s1463_s12   ;;  %v2357_v2 = vphi %v2355_v2, %v2356_v2   ;;  %v2353_v32 = vphi %v2351_v32, %v1508_v32  }
 0x5c3   : > { %vm1467_vm11 = vcmp.eq.s32.totalorder %v2413_v6, %v1466_v12  ;;  %vm1486_vm9 = vcmp.eq.s32.totalorder %v2415_v7, %v1466_v12  ;;  %vm1487_vm6 = vcmp.eq.s32.totalorder %v2418_v8, %v1466_v12  ;;  %vm1488_vm14 = vcmp.eq.s32.totalorder %v2423_v9, %v1466_v12  ;;  %vm3593_vm0 = vmmov %vm3592_vm10  ;;  %p1460_p1 = scmp.ge.s32.totalorder %s1463_s12, 32  }
 0x5c4   : > { %v1470_v44 = vsel %vm1467_vm11, %v2353_v32, 0.0  ;;  %vm1489_vm12 = vcmp.eq.s32.totalorder %v2426_v10, %v1466_v12  ;;  %v1490_v20 = vsel %vm1486_vm9, %v3372_v27, 0.0  ;;  %v1491_v60 = vsel %vm1487_vm6, %v3387_v37, 0.0  ;;  %vm3594_vm3 = vmmov %vm3593_vm0  ;;  %v3609_v29 = vld [vmem:[#allocation2_spill] sm:$0xff] (%p1460_p1)  ;;  %v3613_v53 = vld [vmem:[#allocation13_spill] sm:$0xff] (%p1460_p1) }
 0x5c5   : > { %v1472_v57 = vsel %vm1471_vm8, %v1470_v44, -inf  ;;  %v1492_v0 = vsel %vm1488_vm14, %v3380_v28, 0.0  ;;  %v1493_v15 = vsel %vm1489_vm12, %v3393_v38, 0.0  ;;  %v1494_v58 = vsel %vm3592_vm10, %v1490_v20, -inf  ;;  %vm3595_vm15 = vmmov %vm3593_vm0 }
 0x5c6   : > { %1473 = vmax.xlane.f32.xlu0 %v1472_v57  ;;  %v1495_v14 = vsel %vm3593_vm0, %v1491_v60, -inf  ;;  %v1496_v25 = vsel %vm3594_vm3, %v1492_v0, -inf  ;;  %v1497_v39 = vsel %vm3595_vm15, %v1493_v15, -inf  ;;  %v1972_v22 = vsel %vm1467_vm11, 1.0, %v2368_v46 }
 0x5c7   : > { %v1498_v51 = vmax.f32 %v1494_v58, %v1495_v14  ;;  %v1499_v62 = vmax.f32 %v1496_v25, %v1497_v39  ;;  %v3596_v52 = vmov (%p1460_p1), 0.0|0.0   ;;  %v3597_v18 = vmov (%p1460_p1), 0.0  }
 0x5c8   :  { %2222 = vmatprep.subr.bf16.mxu1 (%p1460_p1), %v3596_v52  ;;  %vm3598_vm7 = vmmov (%p1460_p1), 0   ;;  %v3599_v30 = vmov (%p1460_p1), 1.0|1.0   ;;  %vm3600_vm4 = vnez (%p1460_p1), %v3532_v26  ;;  %vm3601_vm2 = vnez (%p1460_p1), %v3536_v63 }
 0x5c9   : > { %v1500_v47 = vmax.f32 %v1498_v51, %v1499_v62  ;;  %2028 = vmatprep.mubr.msk.f32.mxu1 (%p1460_p1), %vm3598_vm7, %v3597_v18  ;;  %2224 = vmatpush3.bf16.msk.msra.mxu1 (%p1460_p1), %vm3600_vm4, %v3599_v30  ;;  %vm3602_vm8 = vcmask (%p1460_p1), 261120   ;;  %v1603_v19 = vrot.slane (%p1460_p1), %v3294_v42, 6  ;;  %v1605_v6 = vrot.slane (%p1460_p1), %v2799_v40, 5 }
 0x5ca   :  { %2225 = vmatprep.subr.bf16.mxu1 (%p1460_p1), %v3596_v52  ;;  %vm3603_vm11 = vcmask (%p1460_p1), 1041408   ;;  %v1607_v10 = vrot.slane (%p1460_p1), %v792_v16, 4  ;;  %vm3604_vm9 = vcmask (%p1460_p1), 1042432   ;;  %vm3605_vm6 = vcmask (%p1460_p1), 1043456   ;;  %vm3607_vm12 = vmmov (%p1460_p1), %vm3602_vm8 }
 0x5cb   : > { %v1501_v56 = vrot.slane %v1500_v47, 4  ;;  %v1609_v9 = vsel (%p1460_p1), %vm3603_vm11, %v3292_v41, %v1603_v19  ;;  %vm3606_vm14 = vcmask (%p1460_p1), 1044480   ;;  %vm3608_vm10 = vmmov (%p1460_p1), %vm3602_vm8 }
 0x5cc   :  { %v1610_v26 = vsel (%p1460_p1), %vm3604_vm9, %v1609_v9, %v1603_v19  ;;  %vm3610_vm15 = vmmov (%p1460_p1), %vm3602_vm8 }
 0x5cd   : > { %v1502_v50 = vmax.f32 %v1500_v47, %v1501_v56  ;;  %2227 = vmatpush3.bf16.msk.msra.mxu1 (%p1460_p1), %vm3601_vm2, %v3599_v30  ;;  %v1611_v27 = vsel (%p1460_p1), %vm3605_vm6, %v1610_v26, %v1605_v6  ;;  %vm3611_vm7 = vmmov (%p1460_p1), %vm3602_vm8 }
 0x5ce   :  { %v1612_v23 = vsel (%p1460_p1), %vm3606_vm14, %v1611_v27, %v1607_v10  ;;  %vm3612_vm4 = vmmov (%p1460_p1), %vm3611_vm7 }
 0x5cf   : > { %v1503_v55 = vrot.slane %v1502_v50, 2  ;;  %2031 = vmatprep.subr.msk.mxu0 (%p1460_p1), %vm3607_vm12, %v1612_v23 }
 0x5d0   :  { %2032 = vmatpush3.xpose.msk.msra.mxu0 (%p1460_p1), %vm3608_vm10, %v1612_v23 }
 0x5d1   : > { %v1504_v61 = vmax.f32 %v1502_v50, %v1503_v55 }
 0x5d3   : > { %v1505_v17 = vrot.slane %v1504_v61, 1 }
 0x5d5   : > { %v1506_v11 = vmax.f32 %v1504_v61, %v1505_v17 }
 0x653   : > { %v1474_v43 = vpop.xlane.xlu0 %1473 }
 0x654   : > { %v1475_v13 = vrot.slane %v1474_v43, 4 }
 0x656   : > { %v1476_v5 = vmax.f32 %v1474_v43, %v1475_v13 }
 0x658   : > { %v1477_v59 = vrot.slane %v1476_v5, 2 }
 0x65a   : > { %v1478_v48 = vmax.f32 %v1476_v5, %v1477_v59 }
 0x65c   : > { %v1479_v21 = vrot.slane %v1478_v48, 1 }
 0x65e   : > { %v1480_v35 = vmax.f32 %v1478_v48, %v1479_v21 }
 0x660   : > { %2232 = vpush %v1480_v35 }
 0x691   : > { %s2233_s13 = spop %2232 }
 0x692   : > { %s1482_s14 = ssub.f32 1.0, %s2233_s13 }
 0x693   :  { %1462 = sbr.rel (!%p1460_p1) target bundleno = 1474 (0x5c2), region = 67 }
 0x694   : > { %v1483_v4 = vstv %s1482_s14 }
 0x695   : > { %v1484_v54 = vmul.f32 %v1972_v22, %v1483_v4  ;;  %v1507_v1 = vmul.f32 %v1506_v11, %v1483_v4 }
 0x697   : > { %v1485_v31 = vadd.f32 %v2357_v2, %v1484_v54   ;;  %v1508_v32 = vmax.f32 %v2353_v32, %v1507_v1  }
 0x699   : > { %v2356_v2 = vmov %v1485_v31   ;;  %2029 = vmatmul.mubr.msk.f32.vlgmr.msra.gmra.mrb[6].mxu1 (%p1460_p1), %vm3602_vm8, %v1485_v31 }
 0x76c   :  { %v1578_v63 = vpop.f32.mrb[6].mxu1 }
 0x76d   :  { %v2234_v42 = vtrunc.f32 %v1578_v63  ;;  %v2030_v24 = vpop.f32.mrb[7].mxu1 }
 0x76f   :  { %v2235_v40 = vcvt.f32.s32 %v2234_v42 }
 0x771   :  { %v1978_v28 = vadd.s32 4294967295, %v2235_v40 }
 0x773   :  { %v1587_v41 = vrot.slane %v1978_v28, %v3609_v29 }
 0x775   :  { %vm1589_vm0 = vcmp.eq.s32.totalorder %v2418_v8, %v1587_v41  ;;  %vm1588_vm3 = vcmp.eq.s32.totalorder %v2415_v7, %v1587_v41 }
 0x776   :  { %v1979_v36 = vsel %vm1588_vm3, 1.0, %v3597_v18  ;;  %v1980_v16 = vsel %vm1589_vm0, 1.0, %v3597_v18 }
 0x777   :  { %v1594_v34 = vmul.f32 %v1979_v36, %v1485_v31  ;;  %v1595_v33 = vmul.f32 %v1980_v16, %v1485_v31 }
 0x779   :  { %2033 = vmatprep.mubr.msk.f32.mxu0 %vm3610_vm15, %v1594_v34  ;;  %v1596_v37 = vsel %vm3611_vm7, %v1594_v34, 0.0  ;;  %v1599_v38 = vsel %vm788_vm13, %v1595_v33, 0.0 }
 0x77a   :  { %2034 = vmatmul.mubr.msk.f32.vlgmr.msra.gmra.mrb[6].mxu0 %vm3612_vm4, %v1595_v33  ;;  %1597 = vadd.xlane.f32.xlu0 %v1596_v37 }
 0x77e   :  { %1600 = vadd.xlane.f32.xlu0 %v1599_v38 }
 0x807   :  { %v1598_v45 = vpop.xlane.xlu0 %1597 }
 0x808   :  { %v1981_v7 = vadd.f32 -1.0, %v1598_v45 }
 0x80a   :  { %v1615_v32 = vmul.f32 %v1981_v7, %v3613_v53 }
 0x80b   :  { %v1601_v8 = vpop.xlane.xlu0 %1600 }
 0x80c   :  { %v1982_v49 = vadd.f32 -1.0, %v1601_v8 }
 0x80e   :  { %v1616_v3 = vmul.f32 %v1982_v49, %v3613_v53 }
 0x84d   :  { %v2035_v2 = vpop.f32.mrb[6].mxu0 }
 0x84e   :  { %v1698_v12 = vadd.f32 %v2035_v2, %v1616_v3  ;;  %v1692_v44 = vpop.f32.mrb[7].mxu0 }
 0x84f   :  { %v1693_v57 = vadd.f32 %v1692_v44, %v1615_v32 }
 0x850   :  { %1987 = vst.msk [vmem:[%s3470_s5 + $0x18] sm:$0x3] %vm900_vm1, %v1698_v12 }
 0x851   :  { %1986 = vst.msk [vmem:[%s3470_s5 + $0x10] sm:$0xff] %vm898_vm5, %v1693_v57 }

</bundles_post_ra>
